<compile_context>
chip_gen: v7x
topology: tpu7x:2x2x1
jax: 0.10.0
libtpu: 0.0.40
codegen_flags: <defaults>
</compile_context>

<pallas_src>
import functools

import numpy as np
import jax
import jax.numpy as jnp
from jax.experimental import pallas as pl
from jax.experimental.pallas import tpu as pltpu


def _round_up(x, m):
    return ((x + m - 1) // m) * m


# ---------------------------------------------------------------------------
# Pallas kernel: fused im2col + 3x3/stride-2 conv (9 shifted matmuls) + bias
# ---------------------------------------------------------------------------
def _conv3x3_s2_kernel(a_ref, w_ref, b_ref, o_ref, a32_ref, *, tap_rows, n_rows):
    # a_ref  : (4*I*J, Cin_p)  bf16  parity-reordered padded input, one image
    # w_ref  : (9, Cin_p, Cout) f32  per-tap weight matrices (t = kh*3 + kw)
    # b_ref  : (1, Cout)        f32  bias
    # o_ref  : (n_rows, Cout)        output rows (Hout x (Wout+1), last col garbage)
    # a32_ref: (4*I*J, Cin_p)   f32  VMEM scratch (32-bit copy of the A block)
    a32_ref[...] = a_ref[...].astype(jnp.float32)

    cout = o_ref.shape[-1]
    # Accumulator initialized with the broadcast bias (no separate zero-fill / add).
    acc = jnp.broadcast_to(b_ref[...], (n_rows, cout))
    for t, r0 in enumerate(tap_rows):          # 9 static taps, unrolled
        a_t = a32_ref[pl.ds(r0, n_rows), :]    # contiguous row window of this tap
        acc = acc + jnp.dot(a_t, w_ref[t], preferred_element_type=jnp.float32)
    o_ref[...] = acc.astype(o_ref.dtype)


def conv3x3_s2_p1(x_nhwc, weight, bias, *, n_keep=None, out_dtype=jnp.bfloat16):
    """Conv2d(Cin, Cout, kernel=3, stride=2, padding=1), NHWC activations.

    weight: PyTorch layout (Cout, Cin, 3, 3).  Only the first `n_keep` output
    channels are computed.  Returns (N, Hout, Wout, n_keep).
    """
    N, H, W, Cin = x_nhwc.shape
    cout_full = weight.shape[0]
    n_keep = cout_full if n_keep is None else int(n_keep)

    Hout = (H - 1) // 2 + 1
    Wout = (W - 1) // 2 + 1
    I, J = Hout + 2, Wout + 1          # parity-grid extents (1 halo row / garbage col)
    L = Hout * J                       # output rows per image (incl. garbage column)
    cin_p = _round_up(Cin, 8)          # keep the contracting dim >= 8 lanes

    # --- XLA glue (~1x input-sized copy): zero-pad + parity re-order ------------
    Hp, Wp = 2 * I, 2 * J
    xp = jnp.pad(
        x_nhwc.astype(jnp.bfloat16),
        ((0, 0), (1, Hp - H - 1), (1, Wp - W - 1), (0, cin_p - Cin)),
    )
    xr = xp.reshape(N, I, 2, J, 2, cin_p).transpose(0, 2, 4, 1, 3, 5)
    ar = xr.reshape(N, 4 * I * J, cin_p)                       # (N, 4*I*J, Cin_p)

    # Weights: (Cout, Cin, 3, 3) -> (3, 3, Cin_p, n_keep) -> (9, Cin_p, n_keep), f32.
    w9 = jnp.transpose(weight[:n_keep], (2, 3, 1, 0)).astype(jnp.float32)
    w9 = jnp.pad(w9, ((0, 0), (0, 0), (0, cin_p - Cin), (0, 0))).reshape(9, cin_p, n_keep)
    b2 = bias[:n_keep].astype(jnp.float32).reshape(1, n_keep)

    # Start row of each tap's contiguous window inside the parity array.
    tap_rows = tuple(
        (((kh % 2) * 2 + (kw % 2)) * I + kh // 2) * J + (kw // 2)
        for kh in range(3) for kw in range(3)
    )

    kernel = functools.partial(_conv3x3_s2_kernel, tap_rows=tap_rows, n_rows=L)

    out = pl.pallas_call(
        kernel,
        out_shape=jax.ShapeDtypeStruct((N, L, n_keep), out_dtype),
        grid_spec=pltpu.PrefetchScalarGridSpec(
            num_scalar_prefetch=0,
            grid=(N,),
            in_specs=[
                pl.BlockSpec((None, 4 * I * J, cin_p), lambda n: (n, 0, 0)),
                pl.BlockSpec((9, cin_p, n_keep), lambda n: (0, 0, 0)),
                pl.BlockSpec((1, n_keep), lambda n: (0, 0)),
            ],
            out_specs=pl.BlockSpec((None, L, n_keep), lambda n: (n, 0, 0)),
            scratch_shapes=[pltpu.VMEM((4 * I * J, cin_p), jnp.float32)],
        ),
        compiler_params=pltpu.CompilerParams(
            dimension_semantics=("parallel",)
        ),
    )(ar, w9, b2)

    # Drop the throw-away last W column (slice fuses into the next consumer's copy).
    return out.reshape(N, Hout, J, n_keep)[:, :, :Wout, :]


# ---------------------------------------------------------------------------
# AdaptiveAvgPool2d((8, 8)) — exact PyTorch window rule (tiny XLA glue)
# ---------------------------------------------------------------------------
def _adaptive_pool_matrix(in_size, out_size):
    P = np.zeros((out_size, in_size), dtype=np.float32)
    for i in range(out_size):
        start = (i * in_size) // out_size
        end = -((-(i + 1) * in_size) // out_size)      # ceil((i+1)*in/out)
        P[i, start:end] = 1.0 / (end - start)
    return jnp.asarray(P)


def adaptive_avg_pool_8x8(x_nhwc):
    N, H, W, C = x_nhwc.shape
    Ph = _adaptive_pool_matrix(H, 8)
    Pw = _adaptive_pool_matrix(W, 8)
    return jnp.einsum("ih,nhwc,jw->nijc", Ph, x_nhwc.astype(jnp.float32), Pw)


# ---------------------------------------------------------------------------
# Parameters (deterministic synthetic init matching the PyTorch conv shapes)
# ---------------------------------------------------------------------------
_CONV_CFG = [(3, 32), (32, 64), (64, 128), (128, 512)]


def init_params(key):
    params = []
    for cin, cout in _CONV_CFG:
        key, kw, kb = jax.random.split(key, 3)
        fan_in = cin * 3 * 3
        w = jax.random.normal(kw, (cout, cin, 3, 3), dtype=jnp.float32) / np.sqrt(fan_in)
        b = jax.random.normal(kb, (cout,), dtype=jnp.float32) * 0.01
        params.append((w, b))
    return params


# ---------------------------------------------------------------------------
# Full ImageEncoder forward
# ---------------------------------------------------------------------------
def image_encoder_forward(x, params, latent_dim=512):
    """x: (b, c, h, w, t) float32 — same axis convention as the PyTorch module."""
    b, c, h, w, t = x.shape
    # 'b c h w t -> (b t) c h w', then NCHW -> NHWC for the TPU kernels.
    x = jnp.transpose(x, (0, 4, 1, 2, 3)).reshape(b * t, c, h, w)
    x = jnp.transpose(x, (0, 2, 3, 1))

    cout_last = params[-1][0].shape[0]
    # 8x8 pool + NCHW flatten + [:, :latent_dim] only reads ceil(latent_dim/64)
    # channels of the last conv.  Guard so a config change can't silently truncate.
    assert 0 < latent_dim <= 64 * cout_last, "latent-dim trick would truncate channels"
    n_keep_last = -(-latent_dim // 64)

    n_layers = len(params)
    for li, (wgt, bias) in enumerate(params):
        last = li == n_layers - 1
        x = conv3x3_s2_p1(
            x, wgt, bias,
            n_keep=n_keep_last if last else None,
            out_dtype=jnp.float32 if last else jnp.bfloat16,
        )

    # Note: for small inputs (e.g. 16x16) the last conv is 1x1 spatially, so the
    # adaptive pool replicates one value into all 64 positions — matches PyTorch.
    x = adaptive_avg_pool_8x8(x)                       # (bt, 8, 8, n_keep_last) f32
    x = jnp.transpose(x, (0, 3, 1, 2)).reshape(x.shape[0], -1)   # NCHW flatten
    return x[:, :latent_dim]


# ---------------------------------------------------------------------------
# Pure-XLA float32 reference (for a correctness cross-check)
# ---------------------------------------------------------------------------
def reference_forward(x, params, latent_dim=512):
    b, c, h, w, t = x.shape
    y = jnp.transpose(x, (0, 4, 1, 2, 3)).reshape(b * t, c, h, w)
    y = jnp.transpose(y, (0, 2, 3, 1))
    for wgt, bias in params:
        k = jnp.transpose(wgt, (2, 3, 1, 0))           # HWIO
        y = jax.lax.conv_general_dilated(
            y, k, window_strides=(2, 2), padding=((1, 1), (1, 1)),
            dimension_numbers=("NHWC", "HWIO", "NHWC"),
            precision=jax.lax.Precision.HIGHEST,
        ) + bias
    y = adaptive_avg_pool_8x8(y)
    y = jnp.transpose(y, (0, 3, 1, 2)).reshape(y.shape[0], -1)
    return y[:, :latent_dim]


if __name__ == "__main__":
    key = jax.random.PRNGKey(0)
    kx, kp = jax.random.split(key)

    b, c, h, w, t = 2, 3, 16, 16, 2
    x = jax.random.normal(kx, (b, c, h, w, t), dtype=jnp.float32)
    params = init_params(kp)

    fwd = jax.jit(image_encoder_forward, static_argnames="latent_dim")
    out = jax.block_until_ready(fwd(x, params, latent_dim=512))

    assert out.shape == (b * t, 512), out.shape
    assert out.dtype == jnp.float32
    assert bool(jnp.all(jnp.isfinite(out)))

    # Cross-check against the f32 XLA reference (activations travel as bf16
    # between layers in the Pallas path, hence the loose tolerance).
    ref = jax.block_until_ready(
        jax.jit(reference_forward, static_argnames="latent_dim")(x, params, latent_dim=512)
    )
    err = float(jnp.max(jnp.abs(out - ref)))
    assert err < 0.3, f"max|diff| vs f32 reference = {err}"

    print("KERNEL_OK")
</pallas_src>

<mosaic_0001>
module attributes {stable_mosaic.version = 11 : i64} {
  func.func @_conv3x3_s2_kernel(%arg0: i32, %arg1: memref<1x360x8xbf16, #tpu.memory_space<vmem>>, %arg2: memref<9x8x32xf32, #tpu.memory_space<vmem>>, %arg3: memref<1x32xf32, #tpu.memory_space<vmem>>, %arg4: memref<1x72x32xbf16, #tpu.memory_space<vmem>>, %arg5: memref<360x8xf32, #tpu.memory_space<vmem>>) attributes {dimension_semantics = [#tpu.dimension_semantics<parallel>], iteration_bounds = array<i64: 4>, scalar_prefetch = 0 : i64, scratch_operands = 1 : i64, tpu.core_type = #tpu.core_type<tc>, window_params = [{transform_indices = @transform_0, window_bounds = array<i64: 1, 360, 8>}, {pipeline_mode = #tpu.pipeline_mode<synchronous>, transform_indices = @transform_1, window_bounds = array<i64: 9, 8, 32>}, {pipeline_mode = #tpu.pipeline_mode<synchronous>, transform_indices = @transform_2, window_bounds = array<i64: 1, 32>}, {transform_indices = @transform_3, window_bounds = array<i64: 1, 72, 32>}]} {
    %c0 = arith.constant 0 : index
    %c0_0 = arith.constant 0 : index
    %c0_1 = arith.constant 0 : index
    %0 = vector.load %arg1[%c0, %c0_0, %c0_1] : memref<1x360x8xbf16, #tpu.memory_space<vmem>>, vector<1x360x8xbf16>
    %1 = vector.shape_cast %0 : vector<1x360x8xbf16> to vector<360x8xbf16>
    %2 = arith.extf %1 : vector<360x8xbf16> to vector<360x8xf32>
    %c0_2 = arith.constant 0 : index
    %c0_3 = arith.constant 0 : index
    %3 = vector.load %arg5[%c0_2, %c0_3] : memref<360x8xf32, #tpu.memory_space<vmem>>, vector<360x8xf32>
    tpu.vector_store %arg5[%c0_2, %c0_3], %2 {strides = array<i32>} : memref<360x8xf32, #tpu.memory_space<vmem>>, vector<360x8xf32>,
    %c0_4 = arith.constant 0 : index
    %c0_5 = arith.constant 0 : index
    %4 = vector.load %arg3[%c0_4, %c0_5] : memref<1x32xf32, #tpu.memory_space<vmem>>, vector<1x32xf32>
    %5 = vector.shape_cast %4 : vector<1x32xf32> to vector<1x32xf32>
    %6 = vector.broadcast %5 : vector<1x32xf32> to vector<72x32xf32>
    %c0_6 = arith.constant 0 : index
    %c0_7 = arith.constant 0 : index
    %7 = vector.load %arg5[%c0_6, %c0_7] : memref<360x8xf32, #tpu.memory_space<vmem>>, vector<72x8xf32>
    %c0_8 = arith.constant 0 : index
    %c0_9 = arith.constant 0 : index
    %c0_10 = arith.constant 0 : index
    %8 = vector.load %arg2[%c0_8, %c0_9, %c0_10] : memref<9x8x32xf32, #tpu.memory_space<vmem>>, vector<1x8x32xf32>
    %9 = vector.shape_cast %8 : vector<1x8x32xf32> to vector<8x32xf32>
    %cst = arith.constant dense<0.000000e+00> : vector<72x32xf32>
    %10 = tpu.matmul %7, %9, %cst {dimension_numbers = #tpu.dot_dimension_numbers<[1], [0], [0], [1], [0, 0, 1, 1], [], []>} : vector<72x8xf32>, vector<8x32xf32>, vector<72x32xf32> -> vector<72x32xf32>
    %11 = arith.addf %6, %10 : vector<72x32xf32>
    %c90 = arith.constant 90 : index
    %c0_11 = arith.constant 0 : index
    %12 = vector.load %arg5[%c90, %c0_11] : memref<360x8xf32, #tpu.memory_space<vmem>>, vector<72x8xf32>
    %c1 = arith.constant 1 : index
    %c0_12 = arith.constant 0 : index
    %c0_13 = arith.constant 0 : index
    %13 = vector.load %arg2[%c1, %c0_12, %c0_13] : memref<9x8x32xf32, #tpu.memory_space<vmem>>, vector<1x8x32xf32>
    %14 = vector.shape_cast %13 : vector<1x8x32xf32> to vector<8x32xf32>
    %cst_14 = arith.constant dense<0.000000e+00> : vector<72x32xf32>
    %15 = tpu.matmul %12, %14, %cst_14 {dimension_numbers = #tpu.dot_dimension_numbers<[1], [0], [0], [1], [0, 0, 1, 1], [], []>} : vector<72x8xf32>, vector<8x32xf32>, vector<72x32xf32> -> vector<72x32xf32>
    %16 = arith.addf %11, %15 : vector<72x32xf32>
    %c1_15 = arith.constant 1 : index
    %c0_16 = arith.constant 0 : index
    %17 = vector.load %arg5[%c1_15, %c0_16] : memref<360x8xf32, #tpu.memory_space<vmem>>, vector<72x8xf32>
    %c2 = arith.constant 2 : index
    %c0_17 = arith.constant 0 : index
    %c0_18 = arith.constant 0 : index
    %18 = vector.load %arg2[%c2, %c0_17, %c0_18] : memref<9x8x32xf32, #tpu.memory_space<vmem>>, vector<1x8x32xf32>
    %19 = vector.shape_cast %18 : vector<1x8x32xf32> to vector<8x32xf32>
    %cst_19 = arith.constant dense<0.000000e+00> : vector<72x32xf32>
    %20 = tpu.matmul %17, %19, %cst_19 {dimension_numbers = #tpu.dot_dimension_numbers<[1], [0], [0], [1], [0, 0, 1, 1], [], []>} : vector<72x8xf32>, vector<8x32xf32>, vector<72x32xf32> -> vector<72x32xf32>
    %21 = arith.addf %16, %20 : vector<72x32xf32>
    %c180 = arith.constant 180 : index
    %c0_20 = arith.constant 0 : index
    %22 = vector.load %arg5[%c180, %c0_20] : memref<360x8xf32, #tpu.memory_space<vmem>>, vector<72x8xf32>
    %c3 = arith.constant 3 : index
    %c0_21 = arith.constant 0 : index
    %c0_22 = arith.constant 0 : index
    %23 = vector.load %arg2[%c3, %c0_21, %c0_22] : memref<9x8x32xf32, #tpu.memory_space<vmem>>, vector<1x8x32xf32>
    %24 = vector.shape_cast %23 : vector<1x8x32xf32> to vector<8x32xf32>
    %cst_23 = arith.constant dense<0.000000e+00> : vector<72x32xf32>
    %25 = tpu.matmul %22, %24, %cst_23 {dimension_numbers = #tpu.dot_dimension_numbers<[1], [0], [0], [1], [0, 0, 1, 1], [], []>} : vector<72x8xf32>, vector<8x32xf32>, vector<72x32xf32> -> vector<72x32xf32>
    %26 = arith.addf %21, %25 : vector<72x32xf32>
    %c270 = arith.constant 270 : index
    %c0_24 = arith.constant 0 : index
    %27 = vector.load %arg5[%c270, %c0_24] : memref<360x8xf32, #tpu.memory_space<vmem>>, vector<72x8xf32>
    %c4 = arith.constant 4 : index
    %c0_25 = arith.constant 0 : index
    %c0_26 = arith.constant 0 : index
    %28 = vector.load %arg2[%c4, %c0_25, %c0_26] : memref<9x8x32xf32, #tpu.memory_space<vmem>>, vector<1x8x32xf32>
    %29 = vector.shape_cast %28 : vector<1x8x32xf32> to vector<8x32xf32>
    %cst_27 = arith.constant dense<0.000000e+00> : vector<72x32xf32>
    %30 = tpu.matmul %27, %29, %cst_27 {dimension_numbers = #tpu.dot_dimension_numbers<[1], [0], [0], [1], [0, 0, 1, 1], [], []>} : vector<72x8xf32>, vector<8x32xf32>, vector<72x32xf32> -> vector<72x32xf32>
    %31 = arith.addf %26, %30 : vector<72x32xf32>
    %c181 = arith.constant 181 : index
    %c0_28 = arith.constant 0 : index
    %32 = vector.load %arg5[%c181, %c0_28] : memref<360x8xf32, #tpu.memory_space<vmem>>, vector<72x8xf32>
    %c5 = arith.constant 5 : index
    %c0_29 = arith.constant 0 : index
    %c0_30 = arith.constant 0 : index
    %33 = vector.load %arg2[%c5, %c0_29, %c0_30] : memref<9x8x32xf32, #tpu.memory_space<vmem>>, vector<1x8x32xf32>
    %34 = vector.shape_cast %33 : vector<1x8x32xf32> to vector<8x32xf32>
    %cst_31 = arith.constant dense<0.000000e+00> : vector<72x32xf32>
    %35 = tpu.matmul %32, %34, %cst_31 {dimension_numbers = #tpu.dot_dimension_numbers<[1], [0], [0], [1], [0, 0, 1, 1], [], []>} : vector<72x8xf32>, vector<8x32xf32>, vector<72x32xf32> -> vector<72x32xf32>
    %36 = arith.addf %31, %35 : vector<72x32xf32>
    %c9 = arith.constant 9 : index
    %c0_32 = arith.constant 0 : index
    %37 = vector.load %arg5[%c9, %c0_32] : memref<360x8xf32, #tpu.memory_space<vmem>>, vector<72x8xf32>
    %c6 = arith.constant 6 : index
    %c0_33 = arith.constant 0 : index
    %c0_34 = arith.constant 0 : index
    %38 = vector.load %arg2[%c6, %c0_33, %c0_34] : memref<9x8x32xf32, #tpu.memory_space<vmem>>, vector<1x8x32xf32>
    %39 = vector.shape_cast %38 : vector<1x8x32xf32> to vector<8x32xf32>
    %cst_35 = arith.constant dense<0.000000e+00> : vector<72x32xf32>
    %40 = tpu.matmul %37, %39, %cst_35 {dimension_numbers = #tpu.dot_dimension_numbers<[1], [0], [0], [1], [0, 0, 1, 1], [], []>} : vector<72x8xf32>, vector<8x32xf32>, vector<72x32xf32> -> vector<72x32xf32>
    %41 = arith.addf %36, %40 : vector<72x32xf32>
    %c99 = arith.constant 99 : index
    %c0_36 = arith.constant 0 : index
    %42 = vector.load %arg5[%c99, %c0_36] : memref<360x8xf32, #tpu.memory_space<vmem>>, vector<72x8xf32>
    %c7 = arith.constant 7 : index
    %c0_37 = arith.constant 0 : index
    %c0_38 = arith.constant 0 : index
    %43 = vector.load %arg2[%c7, %c0_37, %c0_38] : memref<9x8x32xf32, #tpu.memory_space<vmem>>, vector<1x8x32xf32>
    %44 = vector.shape_cast %43 : vector<1x8x32xf32> to vector<8x32xf32>
    %cst_39 = arith.constant dense<0.000000e+00> : vector<72x32xf32>
    %45 = tpu.matmul %42, %44, %cst_39 {dimension_numbers = #tpu.dot_dimension_numbers<[1], [0], [0], [1], [0, 0, 1, 1], [], []>} : vector<72x8xf32>, vector<8x32xf32>, vector<72x32xf32> -> vector<72x32xf32>
    %46 = arith.addf %41, %45 : vector<72x32xf32>
    %c10 = arith.constant 10 : index
    %c0_40 = arith.constant 0 : index
    %47 = vector.load %arg5[%c10, %c0_40] : memref<360x8xf32, #tpu.memory_space<vmem>>, vector<72x8xf32>
    %c8 = arith.constant 8 : index
    %c0_41 = arith.constant 0 : index
    %c0_42 = arith.constant 0 : index
    %48 = vector.load %arg2[%c8, %c0_41, %c0_42] : memref<9x8x32xf32, #tpu.memory_space<vmem>>, vector<1x8x32xf32>
    %49 = vector.shape_cast %48 : vector<1x8x32xf32> to vector<8x32xf32>
    %cst_43 = arith.constant dense<0.000000e+00> : vector<72x32xf32>
    %50 = tpu.matmul %47, %49, %cst_43 {dimension_numbers = #tpu.dot_dimension_numbers<[1], [0], [0], [1], [0, 0, 1, 1], [], []>} : vector<72x8xf32>, vector<8x32xf32>, vector<72x32xf32> -> vector<72x32xf32>
    %51 = arith.addf %46, %50 : vector<72x32xf32>
    %52 = arith.truncf %51 : vector<72x32xf32> to vector<72x32xbf16>
    %c0_44 = arith.constant 0 : index
    %c0_45 = arith.constant 0 : index
    %c0_46 = arith.constant 0 : index
    %53 = vector.load %arg4[%c0_44, %c0_45, %c0_46] : memref<1x72x32xbf16, #tpu.memory_space<vmem>>, vector<1x72x32xbf16>
    %54 = vector.shape_cast %53 : vector<1x72x32xbf16> to vector<72x32xbf16>
    %55 = vector.shape_cast %52 : vector<72x32xbf16> to vector<1x72x32xbf16>
    tpu.vector_store %arg4[%c0_44, %c0_45, %c0_46], %55 {strides = array<i32>} : memref<1x72x32xbf16, #tpu.memory_space<vmem>>, vector<1x72x32xbf16>,
    return
  }
  func.func @transform_0(%arg0: i32) -> (i32, i32, i32) {
    %c0_i32 = arith.constant 0 : i32
    %c0_i32_0 = arith.constant 0 : i32
    %c0_i32_1 = arith.constant 0 : i32
    return %arg0, %c0_i32, %c0_i32_0 : i32, i32, i32
  }
  func.func @transform_1(%arg0: i32) -> (i32, i32, i32) {
    %c0_i32 = arith.constant 0 : i32
    %c0_i32_0 = arith.constant 0 : i32
    %c0_i32_1 = arith.constant 0 : i32
    %c0_i32_2 = arith.constant 0 : i32
    return %c0_i32, %c0_i32_0, %c0_i32_1 : i32, i32, i32
  }
  func.func @transform_2(%arg0: i32) -> (i32, i32) {
    %c0_i32 = arith.constant 0 : i32
    %c0_i32_0 = arith.constant 0 : i32
    %c0_i32_1 = arith.constant 0 : i32
    return %c0_i32, %c0_i32_0 : i32, i32
  }
  func.func @transform_3(%arg0: i32) -> (i32, i32, i32) {
    %c0_i32 = arith.constant 0 : i32
    %c0_i32_0 = arith.constant 0 : i32
    %c0_i32_1 = arith.constant 0 : i32
    return %arg0, %c0_i32, %c0_i32_0 : i32, i32, i32
  }
}

module attributes {stable_mosaic.version = 11 : i64} {
  func.func @_conv3x3_s2_kernel(%arg0: i32, %arg1: memref<1x120x32xbf16, #tpu.memory_space<vmem>>, %arg2: memref<9x32x64xf32, #tpu.memory_space<vmem>>, %arg3: memref<1x64xf32, #tpu.memory_space<vmem>>, %arg4: memref<1x20x64xbf16, #tpu.memory_space<vmem>>, %arg5: memref<120x32xf32, #tpu.memory_space<vmem>>) attributes {dimension_semantics = [#tpu.dimension_semantics<parallel>], iteration_bounds = array<i64: 4>, scalar_prefetch = 0 : i64, scratch_operands = 1 : i64, tpu.core_type = #tpu.core_type<tc>, window_params = [{transform_indices = @transform_0, window_bounds = array<i64: 1, 120, 32>}, {pipeline_mode = #tpu.pipeline_mode<synchronous>, transform_indices = @transform_1, window_bounds = array<i64: 9, 32, 64>}, {pipeline_mode = #tpu.pipeline_mode<synchronous>, transform_indices = @transform_2, window_bounds = array<i64: 1, 64>}, {transform_indices = @transform_3, window_bounds = array<i64: 1, 20, 64>}]} {
    %c0 = arith.constant 0 : index
    %c0_0 = arith.constant 0 : index
    %c0_1 = arith.constant 0 : index
    %0 = vector.load %arg1[%c0, %c0_0, %c0_1] : memref<1x120x32xbf16, #tpu.memory_space<vmem>>, vector<1x120x32xbf16>
    %1 = vector.shape_cast %0 : vector<1x120x32xbf16> to vector<120x32xbf16>
    %2 = arith.extf %1 : vector<120x32xbf16> to vector<120x32xf32>
    %c0_2 = arith.constant 0 : index
    %c0_3 = arith.constant 0 : index
    %3 = vector.load %arg5[%c0_2, %c0_3] : memref<120x32xf32, #tpu.memory_space<vmem>>, vector<120x32xf32>
    tpu.vector_store %arg5[%c0_2, %c0_3], %2 {strides = array<i32>} : memref<120x32xf32, #tpu.memory_space<vmem>>, vector<120x32xf32>,
    %c0_4 = arith.constant 0 : index
    %c0_5 = arith.constant 0 : index
    %4 = vector.load %arg3[%c0_4, %c0_5] : memref<1x64xf32, #tpu.memory_space<vmem>>, vector<1x64xf32>
    %5 = vector.shape_cast %4 : vector<1x64xf32> to vector<1x64xf32>
    %6 = vector.broadcast %5 : vector<1x64xf32> to vector<20x64xf32>
    %c0_6 = arith.constant 0 : index
    %c0_7 = arith.constant 0 : index
    %7 = vector.load %arg5[%c0_6, %c0_7] : memref<120x32xf32, #tpu.memory_space<vmem>>, vector<20x32xf32>
    %c0_8 = arith.constant 0 : index
    %c0_9 = arith.constant 0 : index
    %c0_10 = arith.constant 0 : index
    %8 = vector.load %arg2[%c0_8, %c0_9, %c0_10] : memref<9x32x64xf32, #tpu.memory_space<vmem>>, vector<1x32x64xf32>
    %9 = vector.shape_cast %8 : vector<1x32x64xf32> to vector<32x64xf32>
    %cst = arith.constant dense<0.000000e+00> : vector<20x64xf32>
    %10 = tpu.matmul %7, %9, %cst {dimension_numbers = #tpu.dot_dimension_numbers<[1], [0], [0], [1], [0, 0, 1, 1], [], []>} : vector<20x32xf32>, vector<32x64xf32>, vector<20x64xf32> -> vector<20x64xf32>
    %11 = arith.addf %6, %10 : vector<20x64xf32>
    %c30 = arith.constant 30 : index
    %c0_11 = arith.constant 0 : index
    %12 = vector.load %arg5[%c30, %c0_11] : memref<120x32xf32, #tpu.memory_space<vmem>>, vector<20x32xf32>
    %c1 = arith.constant 1 : index
    %c0_12 = arith.constant 0 : index
    %c0_13 = arith.constant 0 : index
    %13 = vector.load %arg2[%c1, %c0_12, %c0_13] : memref<9x32x64xf32, #tpu.memory_space<vmem>>, vector<1x32x64xf32>
    %14 = vector.shape_cast %13 : vector<1x32x64xf32> to vector<32x64xf32>
    %cst_14 = arith.constant dense<0.000000e+00> : vector<20x64xf32>
    %15 = tpu.matmul %12, %14, %cst_14 {dimension_numbers = #tpu.dot_dimension_numbers<[1], [0], [0], [1], [0, 0, 1, 1], [], []>} : vector<20x32xf32>, vector<32x64xf32>, vector<20x64xf32> -> vector<20x64xf32>
    %16 = arith.addf %11, %15 : vector<20x64xf32>
    %c1_15 = arith.constant 1 : index
    %c0_16 = arith.constant 0 : index
    %17 = vector.load %arg5[%c1_15, %c0_16] : memref<120x32xf32, #tpu.memory_space<vmem>>, vector<20x32xf32>
    %c2 = arith.constant 2 : index
    %c0_17 = arith.constant 0 : index
    %c0_18 = arith.constant 0 : index
    %18 = vector.load %arg2[%c2, %c0_17, %c0_18] : memref<9x32x64xf32, #tpu.memory_space<vmem>>, vector<1x32x64xf32>
    %19 = vector.shape_cast %18 : vector<1x32x64xf32> to vector<32x64xf32>
    %cst_19 = arith.constant dense<0.000000e+00> : vector<20x64xf32>
    %20 = tpu.matmul %17, %19, %cst_19 {dimension_numbers = #tpu.dot_dimension_numbers<[1], [0], [0], [1], [0, 0, 1, 1], [], []>} : vector<20x32xf32>, vector<32x64xf32>, vector<20x64xf32> -> vector<20x64xf32>
    %21 = arith.addf %16, %20 : vector<20x64xf32>
    %c60 = arith.constant 60 : index
    %c0_20 = arith.constant 0 : index
    %22 = vector.load %arg5[%c60, %c0_20] : memref<120x32xf32, #tpu.memory_space<vmem>>, vector<20x32xf32>
    %c3 = arith.constant 3 : index
    %c0_21 = arith.constant 0 : index
    %c0_22 = arith.constant 0 : index
    %23 = vector.load %arg2[%c3, %c0_21, %c0_22] : memref<9x32x64xf32, #tpu.memory_space<vmem>>, vector<1x32x64xf32>
    %24 = vector.shape_cast %23 : vector<1x32x64xf32> to vector<32x64xf32>
    %cst_23 = arith.constant dense<0.000000e+00> : vector<20x64xf32>
    %25 = tpu.matmul %22, %24, %cst_23 {dimension_numbers = #tpu.dot_dimension_numbers<[1], [0], [0], [1], [0, 0, 1, 1], [], []>} : vector<20x32xf32>, vector<32x64xf32>, vector<20x64xf32> -> vector<20x64xf32>
    %26 = arith.addf %21, %25 : vector<20x64xf32>
    %c90 = arith.constant 90 : index
    %c0_24 = arith.constant 0 : index
    %27 = vector.load %arg5[%c90, %c0_24] : memref<120x32xf32, #tpu.memory_space<vmem>>, vector<20x32xf32>
    %c4 = arith.constant 4 : index
    %c0_25 = arith.constant 0 : index
    %c0_26 = arith.constant 0 : index
    %28 = vector.load %arg2[%c4, %c0_25, %c0_26] : memref<9x32x64xf32, #tpu.memory_space<vmem>>, vector<1x32x64xf32>
    %29 = vector.shape_cast %28 : vector<1x32x64xf32> to vector<32x64xf32>
    %cst_27 = arith.constant dense<0.000000e+00> : vector<20x64xf32>
    %30 = tpu.matmul %27, %29, %cst_27 {dimension_numbers = #tpu.dot_dimension_numbers<[1], [0], [0], [1], [0, 0, 1, 1], [], []>} : vector<20x32xf32>, vector<32x64xf32>, vector<20x64xf32> -> vector<20x64xf32>
    %31 = arith.addf %26, %30 : vector<20x64xf32>
    %c61 = arith.constant 61 : index
    %c0_28 = arith.constant 0 : index
    %32 = vector.load %arg5[%c61, %c0_28] : memref<120x32xf32, #tpu.memory_space<vmem>>, vector<20x32xf32>
    %c5 = arith.constant 5 : index
    %c0_29 = arith.constant 0 : index
    %c0_30 = arith.constant 0 : index
    %33 = vector.load %arg2[%c5, %c0_29, %c0_30] : memref<9x32x64xf32, #tpu.memory_space<vmem>>, vector<1x32x64xf32>
    %34 = vector.shape_cast %33 : vector<1x32x64xf32> to vector<32x64xf32>
    %cst_31 = arith.constant dense<0.000000e+00> : vector<20x64xf32>
    %35 = tpu.matmul %32, %34, %cst_31 {dimension_numbers = #tpu.dot_dimension_numbers<[1], [0], [0], [1], [0, 0, 1, 1], [], []>} : vector<20x32xf32>, vector<32x64xf32>, vector<20x64xf32> -> vector<20x64xf32>
    %36 = arith.addf %31, %35 : vector<20x64xf32>
    %c5_32 = arith.constant 5 : index
    %c0_33 = arith.constant 0 : index
    %37 = vector.load %arg5[%c5_32, %c0_33] : memref<120x32xf32, #tpu.memory_space<vmem>>, vector<20x32xf32>
    %c6 = arith.constant 6 : index
    %c0_34 = arith.constant 0 : index
    %c0_35 = arith.constant 0 : index
    %38 = vector.load %arg2[%c6, %c0_34, %c0_35] : memref<9x32x64xf32, #tpu.memory_space<vmem>>, vector<1x32x64xf32>
    %39 = vector.shape_cast %38 : vector<1x32x64xf32> to vector<32x64xf32>
    %cst_36 = arith.constant dense<0.000000e+00> : vector<20x64xf32>
    %40 = tpu.matmul %37, %39, %cst_36 {dimension_numbers = #tpu.dot_dimension_numbers<[1], [0], [0], [1], [0, 0, 1, 1], [], []>} : vector<20x32xf32>, vector<32x64xf32>, vector<20x64xf32> -> vector<20x64xf32>
    %41 = arith.addf %36, %40 : vector<20x64xf32>
    %c35 = arith.constant 35 : index
    %c0_37 = arith.constant 0 : index
    %42 = vector.load %arg5[%c35, %c0_37] : memref<120x32xf32, #tpu.memory_space<vmem>>, vector<20x32xf32>
    %c7 = arith.constant 7 : index
    %c0_38 = arith.constant 0 : index
    %c0_39 = arith.constant 0 : index
    %43 = vector.load %arg2[%c7, %c0_38, %c0_39] : memref<9x32x64xf32, #tpu.memory_space<vmem>>, vector<1x32x64xf32>
    %44 = vector.shape_cast %43 : vector<1x32x64xf32> to vector<32x64xf32>
    %cst_40 = arith.constant dense<0.000000e+00> : vector<20x64xf32>
    %45 = tpu.matmul %42, %44, %cst_40 {dimension_numbers = #tpu.dot_dimension_numbers<[1], [0], [0], [1], [0, 0, 1, 1], [], []>} : vector<20x32xf32>, vector<32x64xf32>, vector<20x64xf32> -> vector<20x64xf32>
    %46 = arith.addf %41, %45 : vector<20x64xf32>
    %c6_41 = arith.constant 6 : index
    %c0_42 = arith.constant 0 : index
    %47 = vector.load %arg5[%c6_41, %c0_42] : memref<120x32xf32, #tpu.memory_space<vmem>>, vector<20x32xf32>
    %c8 = arith.constant 8 : index
    %c0_43 = arith.constant 0 : index
    %c0_44 = arith.constant 0 : index
    %48 = vector.load %arg2[%c8, %c0_43, %c0_44] : memref<9x32x64xf32, #tpu.memory_space<vmem>>, vector<1x32x64xf32>
    %49 = vector.shape_cast %48 : vector<1x32x64xf32> to vector<32x64xf32>
    %cst_45 = arith.constant dense<0.000000e+00> : vector<20x64xf32>
    %50 = tpu.matmul %47, %49, %cst_45 {dimension_numbers = #tpu.dot_dimension_numbers<[1], [0], [0], [1], [0, 0, 1, 1], [], []>} : vector<20x32xf32>, vector<32x64xf32>, vector<20x64xf32> -> vector<20x64xf32>
    %51 = arith.addf %46, %50 : vector<20x64xf32>
    %52 = arith.truncf %51 : vector<20x64xf32> to vector<20x64xbf16>
    %c0_46 = arith.constant 0 : index
    %c0_47 = arith.constant 0 : index
    %c0_48 = arith.constant 0 : index
    %53 = vector.load %arg4[%c0_46, %c0_47, %c0_48] : memref<1x20x64xbf16, #tpu.memory_space<vmem>>, vector<1x20x64xbf16>
    %54 = vector.shape_cast %53 : vector<1x20x64xbf16> to vector<20x64xbf16>
    %55 = vector.shape_cast %52 : vector<20x64xbf16> to vector<1x20x64xbf16>
    tpu.vector_store %arg4[%c0_46, %c0_47, %c0_48], %55 {strides = array<i32>} : memref<1x20x64xbf16, #tpu.memory_space<vmem>>, vector<1x20x64xbf16>,
    return
  }
  func.func @transform_0(%arg0: i32) -> (i32, i32, i32) {
    %c0_i32 = arith.constant 0 : i32
    %c0_i32_0 = arith.constant 0 : i32
    %c0_i32_1 = arith.constant 0 : i32
    return %arg0, %c0_i32, %c0_i32_0 : i32, i32, i32
  }
  func.func @transform_1(%arg0: i32) -> (i32, i32, i32) {
    %c0_i32 = arith.constant 0 : i32
    %c0_i32_0 = arith.constant 0 : i32
    %c0_i32_1 = arith.constant 0 : i32
    %c0_i32_2 = arith.constant 0 : i32
    return %c0_i32, %c0_i32_0, %c0_i32_1 : i32, i32, i32
  }
  func.func @transform_2(%arg0: i32) -> (i32, i32) {
    %c0_i32 = arith.constant 0 : i32
    %c0_i32_0 = arith.constant 0 : i32
    %c0_i32_1 = arith.constant 0 : i32
    return %c0_i32, %c0_i32_0 : i32, i32
  }
  func.func @transform_3(%arg0: i32) -> (i32, i32, i32) {
    %c0_i32 = arith.constant 0 : i32
    %c0_i32_0 = arith.constant 0 : i32
    %c0_i32_1 = arith.constant 0 : i32
    return %arg0, %c0_i32, %c0_i32_0 : i32, i32, i32
  }
}

module attributes {stable_mosaic.version = 11 : i64} {
  func.func @_conv3x3_s2_kernel(%arg0: i32, %arg1: memref<1x48x64xbf16, #tpu.memory_space<vmem>>, %arg2: memref<9x64x128xf32, #tpu.memory_space<vmem>>, %arg3: memref<1x128xf32, #tpu.memory_space<vmem>>, %arg4: memref<1x6x128xbf16, #tpu.memory_space<vmem>>, %arg5: memref<48x64xf32, #tpu.memory_space<vmem>>) attributes {dimension_semantics = [#tpu.dimension_semantics<parallel>], iteration_bounds = array<i64: 4>, scalar_prefetch = 0 : i64, scratch_operands = 1 : i64, tpu.core_type = #tpu.core_type<tc>, window_params = [{transform_indices = @transform_0, window_bounds = array<i64: 1, 48, 64>}, {pipeline_mode = #tpu.pipeline_mode<synchronous>, transform_indices = @transform_1, window_bounds = array<i64: 9, 64, 128>}, {pipeline_mode = #tpu.pipeline_mode<synchronous>, transform_indices = @transform_2, window_bounds = array<i64: 1, 128>}, {transform_indices = @transform_3, window_bounds = array<i64: 1, 6, 128>}]} {
    %c0 = arith.constant 0 : index
    %c0_0 = arith.constant 0 : index
    %c0_1 = arith.constant 0 : index
    %0 = vector.load %arg1[%c0, %c0_0, %c0_1] : memref<1x48x64xbf16, #tpu.memory_space<vmem>>, vector<1x48x64xbf16>
    %1 = vector.shape_cast %0 : vector<1x48x64xbf16> to vector<48x64xbf16>
    %2 = arith.extf %1 : vector<48x64xbf16> to vector<48x64xf32>
    %c0_2 = arith.constant 0 : index
    %c0_3 = arith.constant 0 : index
    %3 = vector.load %arg5[%c0_2, %c0_3] : memref<48x64xf32, #tpu.memory_space<vmem>>, vector<48x64xf32>
    tpu.vector_store %arg5[%c0_2, %c0_3], %2 {strides = array<i32>} : memref<48x64xf32, #tpu.memory_space<vmem>>, vector<48x64xf32>,
    %c0_4 = arith.constant 0 : index
    %c0_5 = arith.constant 0 : index
    %4 = vector.load %arg3[%c0_4, %c0_5] : memref<1x128xf32, #tpu.memory_space<vmem>>, vector<1x128xf32>
    %5 = vector.shape_cast %4 : vector<1x128xf32> to vector<1x128xf32>
    %6 = vector.broadcast %5 : vector<1x128xf32> to vector<6x128xf32>
    %c0_6 = arith.constant 0 : index
    %c0_7 = arith.constant 0 : index
    %7 = vector.load %arg5[%c0_6, %c0_7] : memref<48x64xf32, #tpu.memory_space<vmem>>, vector<6x64xf32>
    %c0_8 = arith.constant 0 : index
    %c0_9 = arith.constant 0 : index
    %c0_10 = arith.constant 0 : index
    %8 = vector.load %arg2[%c0_8, %c0_9, %c0_10] : memref<9x64x128xf32, #tpu.memory_space<vmem>>, vector<1x64x128xf32>
    %9 = vector.shape_cast %8 : vector<1x64x128xf32> to vector<64x128xf32>
    %cst = arith.constant dense<0.000000e+00> : vector<6x128xf32>
    %10 = tpu.matmul %7, %9, %cst {dimension_numbers = #tpu.dot_dimension_numbers<[1], [0], [0], [1], [0, 0, 1, 1], [], []>} : vector<6x64xf32>, vector<64x128xf32>, vector<6x128xf32> -> vector<6x128xf32>
    %11 = arith.addf %6, %10 : vector<6x128xf32>
    %c12 = arith.constant 12 : index
    %c0_11 = arith.constant 0 : index
    %12 = vector.load %arg5[%c12, %c0_11] : memref<48x64xf32, #tpu.memory_space<vmem>>, vector<6x64xf32>
    %c1 = arith.constant 1 : index
    %c0_12 = arith.constant 0 : index
    %c0_13 = arith.constant 0 : index
    %13 = vector.load %arg2[%c1, %c0_12, %c0_13] : memref<9x64x128xf32, #tpu.memory_space<vmem>>, vector<1x64x128xf32>
    %14 = vector.shape_cast %13 : vector<1x64x128xf32> to vector<64x128xf32>
    %cst_14 = arith.constant dense<0.000000e+00> : vector<6x128xf32>
    %15 = tpu.matmul %12, %14, %cst_14 {dimension_numbers = #tpu.dot_dimension_numbers<[1], [0], [0], [1], [0, 0, 1, 1], [], []>} : vector<6x64xf32>, vector<64x128xf32>, vector<6x128xf32> -> vector<6x128xf32>
    %16 = arith.addf %11, %15 : vector<6x128xf32>
    %c1_15 = arith.constant 1 : index
    %c0_16 = arith.constant 0 : index
    %17 = vector.load %arg5[%c1_15, %c0_16] : memref<48x64xf32, #tpu.memory_space<vmem>>, vector<6x64xf32>
    %c2 = arith.constant 2 : index
    %c0_17 = arith.constant 0 : index
    %c0_18 = arith.constant 0 : index
    %18 = vector.load %arg2[%c2, %c0_17, %c0_18] : memref<9x64x128xf32, #tpu.memory_space<vmem>>, vector<1x64x128xf32>
    %19 = vector.shape_cast %18 : vector<1x64x128xf32> to vector<64x128xf32>
    %cst_19 = arith.constant dense<0.000000e+00> : vector<6x128xf32>
    %20 = tpu.matmul %17, %19, %cst_19 {dimension_numbers = #tpu.dot_dimension_numbers<[1], [0], [0], [1], [0, 0, 1, 1], [], []>} : vector<6x64xf32>, vector<64x128xf32>, vector<6x128xf32> -> vector<6x128xf32>
    %21 = arith.addf %16, %20 : vector<6x128xf32>
    %c24 = arith.constant 24 : index
    %c0_20 = arith.constant 0 : index
    %22 = vector.load %arg5[%c24, %c0_20] : memref<48x64xf32, #tpu.memory_space<vmem>>, vector<6x64xf32>
    %c3 = arith.constant 3 : index
    %c0_21 = arith.constant 0 : index
    %c0_22 = arith.constant 0 : index
    %23 = vector.load %arg2[%c3, %c0_21, %c0_22] : memref<9x64x128xf32, #tpu.memory_space<vmem>>, vector<1x64x128xf32>
    %24 = vector.shape_cast %23 : vector<1x64x128xf32> to vector<64x128xf32>
    %cst_23 = arith.constant dense<0.000000e+00> : vector<6x128xf32>
    %25 = tpu.matmul %22, %24, %cst_23 {dimension_numbers = #tpu.dot_dimension_numbers<[1], [0], [0], [1], [0, 0, 1, 1], [], []>} : vector<6x64xf32>, vector<64x128xf32>, vector<6x128xf32> -> vector<6x128xf32>
    %26 = arith.addf %21, %25 : vector<6x128xf32>
    %c36 = arith.constant 36 : index
    %c0_24 = arith.constant 0 : index
    %27 = vector.load %arg5[%c36, %c0_24] : memref<48x64xf32, #tpu.memory_space<vmem>>, vector<6x64xf32>
    %c4 = arith.constant 4 : index
    %c0_25 = arith.constant 0 : index
    %c0_26 = arith.constant 0 : index
    %28 = vector.load %arg2[%c4, %c0_25, %c0_26] : memref<9x64x128xf32, #tpu.memory_space<vmem>>, vector<1x64x128xf32>
    %29 = vector.shape_cast %28 : vector<1x64x128xf32> to vector<64x128xf32>
    %cst_27 = arith.constant dense<0.000000e+00> : vector<6x128xf32>
    %30 = tpu.matmul %27, %29, %cst_27 {dimension_numbers = #tpu.dot_dimension_numbers<[1], [0], [0], [1], [0, 0, 1, 1], [], []>} : vector<6x64xf32>, vector<64x128xf32>, vector<6x128xf32> -> vector<6x128xf32>
    %31 = arith.addf %26, %30 : vector<6x128xf32>
    %c25 = arith.constant 25 : index
    %c0_28 = arith.constant 0 : index
    %32 = vector.load %arg5[%c25, %c0_28] : memref<48x64xf32, #tpu.memory_space<vmem>>, vector<6x64xf32>
    %c5 = arith.constant 5 : index
    %c0_29 = arith.constant 0 : index
    %c0_30 = arith.constant 0 : index
    %33 = vector.load %arg2[%c5, %c0_29, %c0_30] : memref<9x64x128xf32, #tpu.memory_space<vmem>>, vector<1x64x128xf32>
    %34 = vector.shape_cast %33 : vector<1x64x128xf32> to vector<64x128xf32>
    %cst_31 = arith.constant dense<0.000000e+00> : vector<6x128xf32>
    %35 = tpu.matmul %32, %34, %cst_31 {dimension_numbers = #tpu.dot_dimension_numbers<[1], [0], [0], [1], [0, 0, 1, 1], [], []>} : vector<6x64xf32>, vector<64x128xf32>, vector<6x128xf32> -> vector<6x128xf32>
    %36 = arith.addf %31, %35 : vector<6x128xf32>
    %c3_32 = arith.constant 3 : index
    %c0_33 = arith.constant 0 : index
    %37 = vector.load %arg5[%c3_32, %c0_33] : memref<48x64xf32, #tpu.memory_space<vmem>>, vector<6x64xf32>
    %c6 = arith.constant 6 : index
    %c0_34 = arith.constant 0 : index
    %c0_35 = arith.constant 0 : index
    %38 = vector.load %arg2[%c6, %c0_34, %c0_35] : memref<9x64x128xf32, #tpu.memory_space<vmem>>, vector<1x64x128xf32>
    %39 = vector.shape_cast %38 : vector<1x64x128xf32> to vector<64x128xf32>
    %cst_36 = arith.constant dense<0.000000e+00> : vector<6x128xf32>
    %40 = tpu.matmul %37, %39, %cst_36 {dimension_numbers = #tpu.dot_dimension_numbers<[1], [0], [0], [1], [0, 0, 1, 1], [], []>} : vector<6x64xf32>, vector<64x128xf32>, vector<6x128xf32> -> vector<6x128xf32>
    %41 = arith.addf %36, %40 : vector<6x128xf32>
    %c15 = arith.constant 15 : index
    %c0_37 = arith.constant 0 : index
    %42 = vector.load %arg5[%c15, %c0_37] : memref<48x64xf32, #tpu.memory_space<vmem>>, vector<6x64xf32>
    %c7 = arith.constant 7 : index
    %c0_38 = arith.constant 0 : index
    %c0_39 = arith.constant 0 : index
    %43 = vector.load %arg2[%c7, %c0_38, %c0_39] : memref<9x64x128xf32, #tpu.memory_space<vmem>>, vector<1x64x128xf32>
    %44 = vector.shape_cast %43 : vector<1x64x128xf32> to vector<64x128xf32>
    %cst_40 = arith.constant dense<0.000000e+00> : vector<6x128xf32>
    %45 = tpu.matmul %42, %44, %cst_40 {dimension_numbers = #tpu.dot_dimension_numbers<[1], [0], [0], [1], [0, 0, 1, 1], [], []>} : vector<6x64xf32>, vector<64x128xf32>, vector<6x128xf32> -> vector<6x128xf32>
    %46 = arith.addf %41, %45 : vector<6x128xf32>
    %c4_41 = arith.constant 4 : index
    %c0_42 = arith.constant 0 : index
    %47 = vector.load %arg5[%c4_41, %c0_42] : memref<48x64xf32, #tpu.memory_space<vmem>>, vector<6x64xf32>
    %c8 = arith.constant 8 : index
    %c0_43 = arith.constant 0 : index
    %c0_44 = arith.constant 0 : index
    %48 = vector.load %arg2[%c8, %c0_43, %c0_44] : memref<9x64x128xf32, #tpu.memory_space<vmem>>, vector<1x64x128xf32>
    %49 = vector.shape_cast %48 : vector<1x64x128xf32> to vector<64x128xf32>
    %cst_45 = arith.constant dense<0.000000e+00> : vector<6x128xf32>
    %50 = tpu.matmul %47, %49, %cst_45 {dimension_numbers = #tpu.dot_dimension_numbers<[1], [0], [0], [1], [0, 0, 1, 1], [], []>} : vector<6x64xf32>, vector<64x128xf32>, vector<6x128xf32> -> vector<6x128xf32>
    %51 = arith.addf %46, %50 : vector<6x128xf32>
    %52 = arith.truncf %51 : vector<6x128xf32> to vector<6x128xbf16>
    %c0_46 = arith.constant 0 : index
    %c0_47 = arith.constant 0 : index
    %c0_48 = arith.constant 0 : index
    %53 = vector.load %arg4[%c0_46, %c0_47, %c0_48] : memref<1x6x128xbf16, #tpu.memory_space<vmem>>, vector<1x6x128xbf16>
    %54 = vector.shape_cast %53 : vector<1x6x128xbf16> to vector<6x128xbf16>
    %55 = vector.shape_cast %52 : vector<6x128xbf16> to vector<1x6x128xbf16>
    tpu.vector_store %arg4[%c0_46, %c0_47, %c0_48], %55 {strides = array<i32>} : memref<1x6x128xbf16, #tpu.memory_space<vmem>>, vector<1x6x128xbf16>,
    return
  }
  func.func @transform_0(%arg0: i32) -> (i32, i32, i32) {
    %c0_i32 = arith.constant 0 : i32
    %c0_i32_0 = arith.constant 0 : i32
    %c0_i32_1 = arith.constant 0 : i32
    return %arg0, %c0_i32, %c0_i32_0 : i32, i32, i32
  }
  func.func @transform_1(%arg0: i32) -> (i32, i32, i32) {
    %c0_i32 = arith.constant 0 : i32
    %c0_i32_0 = arith.constant 0 : i32
    %c0_i32_1 = arith.constant 0 : i32
    %c0_i32_2 = arith.constant 0 : i32
    return %c0_i32, %c0_i32_0, %c0_i32_1 : i32, i32, i32
  }
  func.func @transform_2(%arg0: i32) -> (i32, i32) {
    %c0_i32 = arith.constant 0 : i32
    %c0_i32_0 = arith.constant 0 : i32
    %c0_i32_1 = arith.constant 0 : i32
    return %c0_i32, %c0_i32_0 : i32, i32
  }
  func.func @transform_3(%arg0: i32) -> (i32, i32, i32) {
    %c0_i32 = arith.constant 0 : i32
    %c0_i32_0 = arith.constant 0 : i32
    %c0_i32_1 = arith.constant 0 : i32
    return %arg0, %c0_i32, %c0_i32_0 : i32, i32, i32
  }
}

module attributes {stable_mosaic.version = 11 : i64} {
  func.func @_conv3x3_s2_kernel(%arg0: i32, %arg1: memref<1x24x128xbf16, #tpu.memory_space<vmem>>, %arg2: memref<9x128x8xf32, #tpu.memory_space<vmem>>, %arg3: memref<1x8xf32, #tpu.memory_space<vmem>>, %arg4: memref<1x2x8xf32, #tpu.memory_space<vmem>>, %arg5: memref<24x128xf32, #tpu.memory_space<vmem>>) attributes {dimension_semantics = [#tpu.dimension_semantics<parallel>], iteration_bounds = array<i64: 4>, scalar_prefetch = 0 : i64, scratch_operands = 1 : i64, tpu.core_type = #tpu.core_type<tc>, window_params = [{transform_indices = @transform_0, window_bounds = array<i64: 1, 24, 128>}, {pipeline_mode = #tpu.pipeline_mode<synchronous>, transform_indices = @transform_1, window_bounds = array<i64: 9, 128, 8>}, {pipeline_mode = #tpu.pipeline_mode<synchronous>, transform_indices = @transform_2, window_bounds = array<i64: 1, 8>}, {transform_indices = @transform_3, window_bounds = array<i64: 1, 2, 8>}]} {
    %c0 = arith.constant 0 : index
    %c0_0 = arith.constant 0 : index
    %c0_1 = arith.constant 0 : index
    %0 = vector.load %arg1[%c0, %c0_0, %c0_1] : memref<1x24x128xbf16, #tpu.memory_space<vmem>>, vector<1x24x128xbf16>
    %1 = vector.shape_cast %0 : vector<1x24x128xbf16> to vector<24x128xbf16>
    %2 = arith.extf %1 : vector<24x128xbf16> to vector<24x128xf32>
    %c0_2 = arith.constant 0 : index
    %c0_3 = arith.constant 0 : index
    %3 = vector.load %arg5[%c0_2, %c0_3] : memref<24x128xf32, #tpu.memory_space<vmem>>, vector<24x128xf32>
    tpu.vector_store %arg5[%c0_2, %c0_3], %2 {strides = array<i32>} : memref<24x128xf32, #tpu.memory_space<vmem>>, vector<24x128xf32>,
    %c0_4 = arith.constant 0 : index
    %c0_5 = arith.constant 0 : index
    %4 = vector.load %arg3[%c0_4, %c0_5] : memref<1x8xf32, #tpu.memory_space<vmem>>, vector<1x8xf32>
    %5 = vector.shape_cast %4 : vector<1x8xf32> to vector<1x8xf32>
    %6 = vector.broadcast %5 : vector<1x8xf32> to vector<2x8xf32>
    %c0_6 = arith.constant 0 : index
    %c0_7 = arith.constant 0 : index
    %7 = vector.load %arg5[%c0_6, %c0_7] : memref<24x128xf32, #tpu.memory_space<vmem>>, vector<2x128xf32>
    %c0_8 = arith.constant 0 : index
    %c0_9 = arith.constant 0 : index
    %c0_10 = arith.constant 0 : index
    %8 = vector.load %arg2[%c0_8, %c0_9, %c0_10] : memref<9x128x8xf32, #tpu.memory_space<vmem>>, vector<1x128x8xf32>
    %9 = vector.shape_cast %8 : vector<1x128x8xf32> to vector<128x8xf32>
    %cst = arith.constant dense<0.000000e+00> : vector<2x8xf32>
    %10 = tpu.matmul %7, %9, %cst {dimension_numbers = #tpu.dot_dimension_numbers<[1], [0], [0], [1], [0, 0, 1, 1], [], []>} : vector<2x128xf32>, vector<128x8xf32>, vector<2x8xf32> -> vector<2x8xf32>
    %11 = arith.addf %6, %10 : vector<2x8xf32>
    %c6 = arith.constant 6 : index
    %c0_11 = arith.constant 0 : index
    %12 = vector.load %arg5[%c6, %c0_11] : memref<24x128xf32, #tpu.memory_space<vmem>>, vector<2x128xf32>
    %c1 = arith.constant 1 : index
    %c0_12 = arith.constant 0 : index
    %c0_13 = arith.constant 0 : index
    %13 = vector.load %arg2[%c1, %c0_12, %c0_13] : memref<9x128x8xf32, #tpu.memory_space<vmem>>, vector<1x128x8xf32>
    %14 = vector.shape_cast %13 : vector<1x128x8xf32> to vector<128x8xf32>
    %cst_14 = arith.constant dense<0.000000e+00> : vector<2x8xf32>
    %15 = tpu.matmul %12, %14, %cst_14 {dimension_numbers = #tpu.dot_dimension_numbers<[1], [0], [0], [1], [0, 0, 1, 1], [], []>} : vector<2x128xf32>, vector<128x8xf32>, vector<2x8xf32> -> vector<2x8xf32>
    %16 = arith.addf %11, %15 : vector<2x8xf32>
    %c1_15 = arith.constant 1 : index
    %c0_16 = arith.constant 0 : index
    %17 = vector.load %arg5[%c1_15, %c0_16] : memref<24x128xf32, #tpu.memory_space<vmem>>, vector<2x128xf32>
    %c2 = arith.constant 2 : index
    %c0_17 = arith.constant 0 : index
    %c0_18 = arith.constant 0 : index
    %18 = vector.load %arg2[%c2, %c0_17, %c0_18] : memref<9x128x8xf32, #tpu.memory_space<vmem>>, vector<1x128x8xf32>
    %19 = vector.shape_cast %18 : vector<1x128x8xf32> to vector<128x8xf32>
    %cst_19 = arith.constant dense<0.000000e+00> : vector<2x8xf32>
    %20 = tpu.matmul %17, %19, %cst_19 {dimension_numbers = #tpu.dot_dimension_numbers<[1], [0], [0], [1], [0, 0, 1, 1], [], []>} : vector<2x128xf32>, vector<128x8xf32>, vector<2x8xf32> -> vector<2x8xf32>
    %21 = arith.addf %16, %20 : vector<2x8xf32>
    %c12 = arith.constant 12 : index
    %c0_20 = arith.constant 0 : index
    %22 = vector.load %arg5[%c12, %c0_20] : memref<24x128xf32, #tpu.memory_space<vmem>>, vector<2x128xf32>
    %c3 = arith.constant 3 : index
    %c0_21 = arith.constant 0 : index
    %c0_22 = arith.constant 0 : index
    %23 = vector.load %arg2[%c3, %c0_21, %c0_22] : memref<9x128x8xf32, #tpu.memory_space<vmem>>, vector<1x128x8xf32>
    %24 = vector.shape_cast %23 : vector<1x128x8xf32> to vector<128x8xf32>
    %cst_23 = arith.constant dense<0.000000e+00> : vector<2x8xf32>
    %25 = tpu.matmul %22, %24, %cst_23 {dimension_numbers = #tpu.dot_dimension_numbers<[1], [0], [0], [1], [0, 0, 1, 1], [], []>} : vector<2x128xf32>, vector<128x8xf32>, vector<2x8xf32> -> vector<2x8xf32>
    %26 = arith.addf %21, %25 : vector<2x8xf32>
    %c18 = arith.constant 18 : index
    %c0_24 = arith.constant 0 : index
    %27 = vector.load %arg5[%c18, %c0_24] : memref<24x128xf32, #tpu.memory_space<vmem>>, vector<2x128xf32>
    %c4 = arith.constant 4 : index
    %c0_25 = arith.constant 0 : index
    %c0_26 = arith.constant 0 : index
    %28 = vector.load %arg2[%c4, %c0_25, %c0_26] : memref<9x128x8xf32, #tpu.memory_space<vmem>>, vector<1x128x8xf32>
    %29 = vector.shape_cast %28 : vector<1x128x8xf32> to vector<128x8xf32>
    %cst_27 = arith.constant dense<0.000000e+00> : vector<2x8xf32>
    %30 = tpu.matmul %27, %29, %cst_27 {dimension_numbers = #tpu.dot_dimension_numbers<[1], [0], [0], [1], [0, 0, 1, 1], [], []>} : vector<2x128xf32>, vector<128x8xf32>, vector<2x8xf32> -> vector<2x8xf32>
    %31 = arith.addf %26, %30 : vector<2x8xf32>
    %c13 = arith.constant 13 : index
    %c0_28 = arith.constant 0 : index
    %32 = vector.load %arg5[%c13, %c0_28] : memref<24x128xf32, #tpu.memory_space<vmem>>, vector<2x128xf32>
    %c5 = arith.constant 5 : index
    %c0_29 = arith.constant 0 : index
    %c0_30 = arith.constant 0 : index
    %33 = vector.load %arg2[%c5, %c0_29, %c0_30] : memref<9x128x8xf32, #tpu.memory_space<vmem>>, vector<1x128x8xf32>
    %34 = vector.shape_cast %33 : vector<1x128x8xf32> to vector<128x8xf32>
    %cst_31 = arith.constant dense<0.000000e+00> : vector<2x8xf32>
    %35 = tpu.matmul %32, %34, %cst_31 {dimension_numbers = #tpu.dot_dimension_numbers<[1], [0], [0], [1], [0, 0, 1, 1], [], []>} : vector<2x128xf32>, vector<128x8xf32>, vector<2x8xf32> -> vector<2x8xf32>
    %36 = arith.addf %31, %35 : vector<2x8xf32>
    %c2_32 = arith.constant 2 : index
    %c0_33 = arith.constant 0 : index
    %37 = vector.load %arg5[%c2_32, %c0_33] : memref<24x128xf32, #tpu.memory_space<vmem>>, vector<2x128xf32>
    %c6_34 = arith.constant 6 : index
    %c0_35 = arith.constant 0 : index
    %c0_36 = arith.constant 0 : index
    %38 = vector.load %arg2[%c6_34, %c0_35, %c0_36] : memref<9x128x8xf32, #tpu.memory_space<vmem>>, vector<1x128x8xf32>
    %39 = vector.shape_cast %38 : vector<1x128x8xf32> to vector<128x8xf32>
    %cst_37 = arith.constant dense<0.000000e+00> : vector<2x8xf32>
    %40 = tpu.matmul %37, %39, %cst_37 {dimension_numbers = #tpu.dot_dimension_numbers<[1], [0], [0], [1], [0, 0, 1, 1], [], []>} : vector<2x128xf32>, vector<128x8xf32>, vector<2x8xf32> -> vector<2x8xf32>
    %41 = arith.addf %36, %40 : vector<2x8xf32>
    %c8 = arith.constant 8 : index
    %c0_38 = arith.constant 0 : index
    %42 = vector.load %arg5[%c8, %c0_38] : memref<24x128xf32, #tpu.memory_space<vmem>>, vector<2x128xf32>
    %c7 = arith.constant 7 : index
    %c0_39 = arith.constant 0 : index
    %c0_40 = arith.constant 0 : index
    %43 = vector.load %arg2[%c7, %c0_39, %c0_40] : memref<9x128x8xf32, #tpu.memory_space<vmem>>, vector<1x128x8xf32>
    %44 = vector.shape_cast %43 : vector<1x128x8xf32> to vector<128x8xf32>
    %cst_41 = arith.constant dense<0.000000e+00> : vector<2x8xf32>
    %45 = tpu.matmul %42, %44, %cst_41 {dimension_numbers = #tpu.dot_dimension_numbers<[1], [0], [0], [1], [0, 0, 1, 1], [], []>} : vector<2x128xf32>, vector<128x8xf32>, vector<2x8xf32> -> vector<2x8xf32>
    %46 = arith.addf %41, %45 : vector<2x8xf32>
    %c3_42 = arith.constant 3 : index
    %c0_43 = arith.constant 0 : index
    %47 = vector.load %arg5[%c3_42, %c0_43] : memref<24x128xf32, #tpu.memory_space<vmem>>, vector<2x128xf32>
    %c8_44 = arith.constant 8 : index
    %c0_45 = arith.constant 0 : index
    %c0_46 = arith.constant 0 : index
    %48 = vector.load %arg2[%c8_44, %c0_45, %c0_46] : memref<9x128x8xf32, #tpu.memory_space<vmem>>, vector<1x128x8xf32>
    %49 = vector.shape_cast %48 : vector<1x128x8xf32> to vector<128x8xf32>
    %cst_47 = arith.constant dense<0.000000e+00> : vector<2x8xf32>
    %50 = tpu.matmul %47, %49, %cst_47 {dimension_numbers = #tpu.dot_dimension_numbers<[1], [0], [0], [1], [0, 0, 1, 1], [], []>} : vector<2x128xf32>, vector<128x8xf32>, vector<2x8xf32> -> vector<2x8xf32>
    %51 = arith.addf %46, %50 : vector<2x8xf32>
    %c0_48 = arith.constant 0 : index
    %c0_49 = arith.constant 0 : index
    %c0_50 = arith.constant 0 : index
    %52 = vector.load %arg4[%c0_48, %c0_49, %c0_50] : memref<1x2x8xf32, #tpu.memory_space<vmem>>, vector<1x2x8xf32>
    %53 = vector.shape_cast %52 : vector<1x2x8xf32> to vector<2x8xf32>
    %54 = vector.shape_cast %51 : vector<2x8xf32> to vector<1x2x8xf32>
    tpu.vector_store %arg4[%c0_48, %c0_49, %c0_50], %54 {strides = array<i32>} : memref<1x2x8xf32, #tpu.memory_space<vmem>>, vector<1x2x8xf32>,
    return
  }
  func.func @transform_0(%arg0: i32) -> (i32, i32, i32) {
    %c0_i32 = arith.constant 0 : i32
    %c0_i32_0 = arith.constant 0 : i32
    %c0_i32_1 = arith.constant 0 : i32
    return %arg0, %c0_i32, %c0_i32_0 : i32, i32, i32
  }
  func.func @transform_1(%arg0: i32) -> (i32, i32, i32) {
    %c0_i32 = arith.constant 0 : i32
    %c0_i32_0 = arith.constant 0 : i32
    %c0_i32_1 = arith.constant 0 : i32
    %c0_i32_2 = arith.constant 0 : i32
    return %c0_i32, %c0_i32_0, %c0_i32_1 : i32, i32, i32
  }
  func.func @transform_2(%arg0: i32) -> (i32, i32) {
    %c0_i32 = arith.constant 0 : i32
    %c0_i32_0 = arith.constant 0 : i32
    %c0_i32_1 = arith.constant 0 : i32
    return %c0_i32, %c0_i32_0 : i32, i32
  }
  func.func @transform_3(%arg0: i32) -> (i32, i32, i32) {
    %c0_i32 = arith.constant 0 : i32
    %c0_i32_0 = arith.constant 0 : i32
    %c0_i32_1 = arith.constant 0 : i32
    return %arg0, %c0_i32, %c0_i32_0 : i32, i32, i32
  }
}

</mosaic_0001>

<bundles_post_ra>
// kernel: image_encoder_forward.4
= control target key start
LH: loop header
LB: loop body
LE: loop exit
PB: predicated region body
PF: predicated region fallthrough
CT: control target
= control target key end

     0   :  { %s2593_s12 = smov 0   ;;  %s2995_s0 = inlined_call_operand.vmem [shape: bf16[4,360,8], index: 0, kind: input, shape index: {}]   ;;  %s2996_s1 = inlined_call_operand.vmem [shape: f32[9,8,32], index: 1, kind: input, shape index: {}]   ;;  %s2997_s2 = inlined_call_operand.vmem [shape: f32[1,32], index: 2, kind: input, shape index: {}]   ;;  %s2998_s3 = inlined_call_operand.vmem [shape: bf16[4,72,32], index: 3, kind: output, shape index: {}]  }
   0x1 LB: > { %s1828_s13 = sadd.s32 4294967295, %s2569_s12   ;;  %p1832_p0 = scmp.ge.s32.totalorder %s2569_s12, 1  ;;  %s2569_s12 = sphi %s2593_s12, %s13_s12  }
   0x2   : > { %p137_p1 = scmp.lt.s32.totalorder %s2569_s12, 5 }
   0x4   : > { %p138_p2 = pnand %p1832_p0, %p137_p1 }
   0x5   : > { %v2604_v0 = vld [vmem:[%s2996_s1 + $0x20] sm:$0xff] (!%p138_p2)  ;;  %p161_p3 = scmp.lt.s32.totalorder (!%p138_p2), %s1828_s13, 3  ;;  %v2571_v2 = vmov (!%p138_p2), 0.0   ;;  %vm2572_vm0 = vmmov (!%p138_p2), 0   ;;  %vm261_vm1 = vcmask (!%p138_p2), 64512   ;;  %v1845_v53 = vld [vmem:[%s2996_s1 + $0x8] sm:$0xff] (!%p138_p2) }
   0x6   : > { %141 = sbr.rel (%p138_p2) target bundleno = 406 (0x196), region = 32  ;;  %v323_v1 = vld [vmem:[%s2996_s1] sm:$0xff] (!%p138_p2)  ;;  %2260 = vmatprep.subr.mxu0 (!%p138_p2), %v2571_v2  ;;  %2144 = vmatprep.subr.mxu1 (!%p138_p2), %v2571_v2  ;;  %v1885_v59 = vld [vmem:[%s2996_s1 + $0x28] sm:$0xff] (!%p138_p2)  ;;  %vm1763_vm2 = vcmask (!%p138_p2), 257024  }
   0x7   : > { %2261 = vmatpush3.msra.mxu0 (!%p138_p2), %v2604_v0  ;;  %2145 = vmatpush3.msra.mxu1 (!%p138_p2), %v323_v1 }
   0x8   : > { %2146 = vmatprep.mubr.msk.f32.mxu1 (!%p138_p2), %vm2572_vm0, %v2571_v2  ;;  %2262 = vmatprep.mubr.msk.f32.mxu0 (!%p138_p2), %vm2572_vm0, %v2571_v2 }
   0x9   : > { %2289 = vmatprep.subr.mxu0 (!%p138_p2), %v2571_v2  ;;  %2173 = vmatprep.subr.mxu1 (!%p138_p2), %v2571_v2 }
   0xd   : > { %s3000_s13 = smov (!%p161_p3, %s1828_s13), 3 }
   0xe   : > { %s2551_s18 = smul.u32 180, %s3000_s13 }
   0xf   : > { %s2552_s11 = smul.u32 36, %s3000_s13 }
  0x10   : > { %s2624_s21 = scalar_lea.vmem %s2995_s0, %s2551_s18 }
  0x11   : > { %v1946_v3 = vld [vmem:[%s2624_s21] sm:$0xff]   ;;  %v2049_v7 = vld [vmem:[%s2624_s21 + $0x88] sm:$0xff]   ;;  %v2050_v9 = vld [vmem:[%s2624_s21 + $0x90] sm:$0xff]   ;;  %s2972_s16 = scalar_lea.vmem %s2998_s3, %s2552_s11 }
  0x12   : > { %v2048_v4 = vld [vmem:[%s2624_s21 + $0x80] sm:$0xff]   ;;  %v1947_v5 = vunpack.c.l.bf16 %v1946_v3  ;;  %v2033_v8 = vld [vmem:[%s2624_s21 + $0x8] sm:$0xff]   ;;  %v2015_v10 = vunpack.c.l.bf16 %v2049_v7  ;;  %v1948_v11 = vunpack.c.h.bf16 %v1946_v3  ;;  %v2016_v12 = vunpack.c.h.bf16 %v2049_v7  ;;  %v2034_v14 = vld [vmem:[%s2624_s21 + $0x10] sm:$0xff]  }
  0x13   : > { %v2012_v6 = vunpack.c.h.bf16 %v2048_v4  ;;  %v1951_v13 = vunpack.c.l.bf16 %v2033_v8  ;;  %v2051_v15 = vld [vmem:[%s2624_s21 + $0x98] sm:$0xff]   ;;  %v2019_v17 = vunpack.c.l.bf16 %v2050_v9  ;;  %v1952_v18 = vunpack.c.h.bf16 %v2033_v8  ;;  %v2044_v22 = vld [vmem:[%s2624_s21 + $0x60] sm:$0xff]   ;;  %v2045_v28 = vld [vmem:[%s2624_s21 + $0x68] sm:$0xff]  }
  0x14   : > { %v2043_v16 = vld [vmem:[%s2624_s21 + $0x58] sm:$0xff]   ;;  %262 = vst.msk [vmem:[#allocation2] sm:$0xff] %vm261_vm1, %v1947_v5  ;;  %v2020_v19 = vunpack.c.h.bf16 %v2050_v9  ;;  %v1955_v20 = vunpack.c.l.bf16 %v2034_v14  ;;  %v2639_v23 = vld [vmem:[%s2624_s21 + $0x20] sm:$0xff]   ;;  %296 = vst.msk [vmem:[#allocation2 + $0x110] sm:$0xff] %vm261_vm1, %v2015_v10  ;;  %v2023_v24 = vunpack.c.l.bf16 %v2051_v15  ;;  %v2024_v25 = vunpack.c.h.bf16 %v2051_v15 }
  0x15   : > { %295 = vst.msk [vmem:[#allocation2 + $0x108] sm:$0xff] %vm261_vm1, %v2012_v6  ;;  %v2035_v21 = vld [vmem:[%s2624_s21 + $0x18] sm:$0xff]   ;;  %263 = vst.msk [vmem:[#allocation2 + $0x8] sm:$0xff] %vm261_vm1, %v1948_v11  ;;  %v1956_v26 = vunpack.c.h.bf16 %v2034_v14  ;;  %v1991_v27 = vunpack.c.l.bf16 %v2043_v16  ;;  %v2647_v29 = vld [vmem:[%s2624_s21 + $0x28] sm:$0xff]   ;;  %v1992_v31 = vunpack.c.h.bf16 %v2043_v16  ;;  %v1995_v33 = vunpack.c.l.bf16 %v2044_v22 }
  0x16   : > { %297 = vst.msk [vmem:[#allocation2 + $0x118] sm:$0xff] %vm261_vm1, %v2016_v12  ;;  %264 = vst.msk [vmem:[#allocation2 + $0x10] sm:$0xff] %vm261_vm1, %v1951_v13  ;;  %v2038_v30 = vld [vmem:[%s2624_s21 + $0x30] sm:$0xff]   ;;  %v1959_v32 = vunpack.c.l.bf16 %v2035_v21  ;;  %v1960_v34 = vunpack.c.h.bf16 %v2035_v21  ;;  %v2039_v36 = vld [vmem:[%s2624_s21 + $0x38] sm:$0xff]   ;;  %v1996_v38 = vunpack.c.h.bf16 %v2044_v22  ;;  %v1963_v39 = vunpack.c.l.bf16 %v2639_v23 }
  0x17   : > { %298 = vst.msk [vmem:[#allocation2 + $0x120] sm:$0xff] %vm261_vm1, %v2019_v17  ;;  %265 = vst.msk [vmem:[#allocation2 + $0x18] sm:$0xff] %vm261_vm1, %v1952_v18  ;;  %v2046_v35 = vld [vmem:[%s2624_s21 + $0x70] sm:$0xff]   ;;  %v2047_v37 = vld [vmem:[%s2624_s21 + $0x78] sm:$0xff]   ;;  %v1999_v40 = vunpack.c.l.bf16 %v2045_v28  ;;  %v1968_v41 = vunpack.c.h.bf16 %v2647_v29  ;;  %v1971_v44 = vunpack.c.l.bf16 %v2038_v30  ;;  %v2000_v45 = vunpack.c.h.bf16 %v2045_v28 }
  0x18   : > { %299 = vst.msk [vmem:[#allocation2 + $0x128] sm:$0xff] %vm261_vm1, %v2020_v19  ;;  %266 = vst.msk [vmem:[#allocation2 + $0x20] sm:$0xff] %vm261_vm1, %v1955_v20  ;;  %v2040_v42 = vld [vmem:[%s2624_s21 + $0x40] sm:$0xff]   ;;  %v2041_v43 = vld [vmem:[%s2624_s21 + $0x48] sm:$0xff]   ;;  %v1972_v46 = vunpack.c.h.bf16 %v2038_v30  ;;  %v2003_v47 = vunpack.c.l.bf16 %v2046_v35  ;;  %v1975_v49 = vunpack.c.l.bf16 %v2039_v36  ;;  %v2004_v50 = vunpack.c.h.bf16 %v2046_v35 }
  0x19   : > { %300 = vst.msk [vmem:[#allocation2 + $0x130] sm:$0xff] %vm261_vm1, %v2023_v24  ;;  %301 = vst.msk [vmem:[#allocation2 + $0x138] sm:$0xff] %vm261_vm1, %v2024_v25  ;;  %v2042_v48 = vld [vmem:[%s2624_s21 + $0x50] sm:$0xff]   ;;  %v1976_v51 = vunpack.c.h.bf16 %v2039_v36  ;;  %v2007_v52 = vunpack.c.l.bf16 %v2047_v37  ;;  %v1979_v54 = vunpack.c.l.bf16 %v2040_v42  ;;  %v2008_v55 = vunpack.c.h.bf16 %v2047_v37  ;;  %v2052_v16 = vld [vmem:[%s2624_s21 + $0xa0] sm:$0xff]  }
  0x1a   : > { %267 = vst.msk [vmem:[#allocation2 + $0x28] sm:$0xff] %vm261_vm1, %v1956_v26  ;;  %284 = vst.msk [vmem:[#allocation2 + $0xb0] sm:$0xff] %vm261_vm1, %v1991_v27  ;;  %v1980_v56 = vunpack.c.h.bf16 %v2040_v42  ;;  %v1983_v57 = vunpack.c.l.bf16 %v2041_v43  ;;  %v1984_v60 = vunpack.c.h.bf16 %v2041_v43  ;;  %v1987_v61 = vunpack.c.l.bf16 %v2042_v48  ;;  %v1895_v14 = vld [vmem:[%s2996_s1 + $0x30] sm:$0xff]  ;;  %v2053_v20 = vld [vmem:[%s2624_s21 + $0xa8] sm:$0xff]  }
  0x1b   : > { %285 = vst.msk [vmem:[#allocation2 + $0xb8] sm:$0xff] %vm261_vm1, %v1992_v31  ;;  %268 = vst.msk [vmem:[#allocation2 + $0x30] sm:$0xff] %vm261_vm1, %v1959_v32  ;;  %v314_v58 = vld [vmem:[#allocation2] sm:$0xff]  ;;  %v1964_v62 = vunpack.c.h.bf16 %v2639_v23  ;;  %v1967_v63 = vunpack.c.l.bf16 %v2647_v29  ;;  %v1988_v3 = vunpack.c.h.bf16 %v2042_v48  ;;  %v2027_v18 = vunpack.c.l.bf16 %v2052_v16  ;;  %v1855_v28 = vld [vmem:[%s2996_s1 + $0x10] sm:$0xff] }
  0x1c   : > { %286 = vst.msk [vmem:[#allocation2 + $0xc0] sm:$0xff] %vm261_vm1, %v1995_v33  ;;  %269 = vst.msk [vmem:[#allocation2 + $0x38] sm:$0xff] %vm261_vm1, %v1960_v34  ;;  %2147 = vmatmul.mubr.msk.f32.vlgmr.msra.gmra.mrb[0].mxu1 %vm261_vm1, %v314_v58  ;;  %v941_v1 = vld [vmem:[#allocation2 + $0x10e] sm:$0xff]  ;;  %v2028_v19 = vunpack.c.h.bf16 %v2052_v16  ;;  %v2031_v21 = vunpack.c.l.bf16 %v2053_v20  ;;  %v1865_v48 = vld [vmem:[%s2996_s1 + $0x18] sm:$0xff] }
  0x1d   : > { %287 = vst.msk [vmem:[#allocation2 + $0xc8] sm:$0xff] %vm261_vm1, %v1996_v38  ;;  %270 = vst.msk [vmem:[#allocation2 + $0x40] sm:$0xff] %vm261_vm1, %v1963_v39  ;;  %2263 = vmatmul.mubr.msk.f32.vlgmr.msra.gmra.mrb[0].mxu0 %vm261_vm1, %v941_v1  ;;  %2174 = vmatpush3.msra.mxu1 %v1845_v53  ;;  %v315_v4 = vld [vmem:[#allocation2 + $0x8] sm:$0xff]  ;;  %v942_v5 = vld [vmem:[#allocation2 + $0x116] sm:$0xff] }
  0x1e   : > { %288 = vst.msk [vmem:[#allocation2 + $0xd0] sm:$0xff] %vm261_vm1, %v1999_v40  ;;  %273 = vst.msk [vmem:[#allocation2 + $0x58] sm:$0xff] %vm261_vm1, %v1968_v41  ;;  %2290 = vmatpush3.msra.mxu0 %v1885_v59  ;;  %2149 = vmatprep.mubr.msk.f32.mxu1 %vm2572_vm0, %v2571_v2  ;;  %v316_v6 = vld [vmem:[#allocation2 + $0x10] sm:$0xff]  ;;  %v943_v7 = vld [vmem:[#allocation2 + $0x11e] sm:$0xff] }
  0x1f   : > { %274 = vst.msk [vmem:[#allocation2 + $0x60] sm:$0xff] %vm261_vm1, %v1971_v44  ;;  %289 = vst.msk [vmem:[#allocation2 + $0xd8] sm:$0xff] %vm261_vm1, %v2000_v45  ;;  %2265 = vmatprep.mubr.msk.f32.mxu0 %vm2572_vm0, %v2571_v2  ;;  %2318 = vmatprep.subr.mxu0 %v2571_v2  ;;  %v317_v8 = vld [vmem:[#allocation2 + $0x18] sm:$0xff]  ;;  %v944_v9 = vld [vmem:[#allocation2 + $0x126] sm:$0xff] }
  0x20   : > { %275 = vst.msk [vmem:[#allocation2 + $0x68] sm:$0xff] %vm261_vm1, %v1972_v46  ;;  %290 = vst.msk [vmem:[#allocation2 + $0xe0] sm:$0xff] %vm261_vm1, %v2003_v47  ;;  %2150 = vmatmul.mubr.msk.f32.gmra.mrb[2].mxu1 %vm261_vm1, %v315_v4  ;;  %2202 = vmatprep.subr.mxu1 %v2571_v2  ;;  %v318_v10 = vld [vmem:[#allocation2 + $0x20] sm:$0xff]  ;;  %v945_v11 = vld [vmem:[#allocation2 + $0x12e] sm:$0xff] }
  0x21   : > { %276 = vst.msk [vmem:[#allocation2 + $0x70] sm:$0xff] %vm261_vm1, %v1975_v49  ;;  %291 = vst.msk [vmem:[#allocation2 + $0xe8] sm:$0xff] %vm261_vm1, %v2004_v50  ;;  %2266 = vmatmul.mubr.msk.f32.gmra.mrb[2].mxu0 %vm261_vm1, %v942_v5  ;;  %2152 = vmatprep.mubr.msk.f32.mxu1 %vm2572_vm0, %v2571_v2  ;;  %v319_v12 = vld [vmem:[#allocation2 + $0x28] sm:$0xff]  ;;  %v1905_v39 = vld [vmem:[%s2996_s1 + $0x38] sm:$0xff] }
  0x22   : > { %277 = vst.msk [vmem:[#allocation2 + $0x78] sm:$0xff] %vm261_vm1, %v1976_v51  ;;  %292 = vst.msk [vmem:[#allocation2 + $0xf0] sm:$0xff] %vm261_vm1, %v2007_v52  ;;  %2268 = vmatprep.mubr.msk.f32.mxu0 %vm2572_vm0, %v2571_v2  ;;  %v1098_v13 = vld [vmem:[#allocation2 + $0xb5] sm:$0xff]  ;;  %v1255_v38 = vld [vmem:[#allocation2 + $0x9] sm:$0xff] }
  0x23   : > { %278 = vst.msk [vmem:[#allocation2 + $0x80] sm:$0xff] %vm261_vm1, %v1979_v54  ;;  %293 = vst.msk [vmem:[#allocation2 + $0xf8] sm:$0xff] %vm261_vm1, %v2008_v55  ;;  %v320_v15 = vld [vmem:[#allocation2 + $0x30] sm:$0xff]  ;;  %v1099_v17 = vld [vmem:[#allocation2 + $0xbd] sm:$0xff] }
  0x24   : > { %279 = vst.msk [vmem:[#allocation2 + $0x88] sm:$0xff] %vm261_vm1, %v1980_v56  ;;  %280 = vst.msk [vmem:[#allocation2 + $0x90] sm:$0xff] %vm261_vm1, %v1983_v57  ;;  %2153 = vmatmul.mubr.msk.f32.gmra.mrb[4].mxu1 %vm261_vm1, %v316_v6  ;;  %v321_v22 = vld [vmem:[#allocation2 + $0x38] sm:$0xff]  ;;  %v1100_v23 = vld [vmem:[#allocation2 + $0xc5] sm:$0xff] }
  0x25   : > { %281 = vst.msk [vmem:[#allocation2 + $0x98] sm:$0xff] %vm261_vm1, %v1984_v60  ;;  %282 = vst.msk [vmem:[#allocation2 + $0xa0] sm:$0xff] %vm261_vm1, %v1987_v61  ;;  %2269 = vmatmul.mubr.msk.f32.gmra.mrb[4].mxu0 %vm261_vm1, %v943_v7  ;;  %2155 = vmatprep.mubr.msk.f32.mxu1 %vm2572_vm0, %v2571_v2  ;;  %v322_v24 = vld [vmem:[#allocation2 + $0x40] sm:$0xff]  ;;  %v1101_v25 = vld [vmem:[#allocation2 + $0xcd] sm:$0xff] }
  0x26   : > { %271 = vst.msk [vmem:[#allocation2 + $0x48] sm:$0xff] %vm261_vm1, %v1964_v62  ;;  %272 = vst.msk [vmem:[#allocation2 + $0x50] sm:$0xff] %vm261_vm1, %v1967_v63  ;;  %2271 = vmatprep.mubr.msk.f32.mxu0 %vm2572_vm0, %v2571_v2  ;;  %v470_v26 = vld [vmem:[#allocation2 + $0x5a] sm:$0xff]  ;;  %v1256_v41 = vld [vmem:[#allocation2 + $0x11] sm:$0xff] }
  0x27   : > { %283 = vst.msk [vmem:[#allocation2 + $0xa8] sm:$0xff] %vm261_vm1, %v1988_v3  ;;  %302 = vst.msk [vmem:[#allocation2 + $0x140] sm:$0xff] %vm261_vm1, %v2027_v18  ;;  %v1102_v27 = vld [vmem:[#allocation2 + $0xd5] sm:$0xff]  ;;  %v471_v29 = vld [vmem:[#allocation2 + $0x62] sm:$0xff] }
  0x28   : > { %2156 = vmatmul.mubr.msk.f32.gmra.mrb[6].mxu1 %vm261_vm1, %v317_v8  ;;  %303 = vst.msk [vmem:[#allocation2 + $0x148] sm:$0xff] %vm261_vm1, %v2028_v19  ;;  %304 = vst.msk [vmem:[#allocation2 + $0x150] sm:$0xff] %vm261_vm1, %v2031_v21  ;;  %v1103_v30 = vld [vmem:[#allocation2 + $0xdd] sm:$0xff]  ;;  %v472_v31 = vld [vmem:[#allocation2 + $0x6a] sm:$0xff] }
  0x29   : > { %2272 = vmatmul.mubr.msk.f32.gmra.mrb[6].mxu0 %vm261_vm1, %v944_v9  ;;  %2158 = vmatprep.mubr.msk.f32.mxu1 %vm2572_vm0, %v2571_v2  ;;  %v1104_v32 = vld [vmem:[#allocation2 + $0xe5] sm:$0xff]  ;;  %v473_v33 = vld [vmem:[#allocation2 + $0x72] sm:$0xff]  ;;  %v785_v60 = vld [vmem:[#allocation2 + $0xbc] sm:$0xff] }
  0x2a   : > { %2274 = vmatprep.mubr.msk.f32.mxu0 %vm2572_vm0, %v2571_v2  ;;  %v1105_v34 = vld [vmem:[#allocation2 + $0xed] sm:$0xff]  ;;  %v474_v35 = vld [vmem:[#allocation2 + $0x7a] sm:$0xff]  ;;  %v1412_v53 = vld [vmem:[#allocation2 + $0x63] sm:$0xff] }
  0x2b   : > { %v1106_v36 = vld [vmem:[#allocation2 + $0xf5] sm:$0xff]  ;;  %v475_v37 = vld [vmem:[#allocation2 + $0x82] sm:$0xff]  ;;  %v476_v40 = vld [vmem:[#allocation2 + $0x8a] sm:$0xff] }
  0x2c   : > { %2159 = vmatmul.mubr.msk.f32.gmra.mrb[8].mxu1 %vm261_vm1, %v318_v10  ;;  %v477_v42 = vld [vmem:[#allocation2 + $0x92] sm:$0xff]  ;;  %v478_v44 = vld [vmem:[#allocation2 + $0x9a] sm:$0xff]  ;;  %v1259_v47 = vld [vmem:[#allocation2 + $0x29] sm:$0xff] }
  0x2d   : > { %2275 = vmatmul.mubr.msk.f32.gmra.mrb[8].mxu0 %vm261_vm1, %v945_v11  ;;  %2161 = vmatprep.mubr.msk.f32.mxu1 %vm2572_vm0, %v2571_v2  ;;  %v1257_v43 = vld [vmem:[#allocation2 + $0x19] sm:$0xff]  ;;  %v1258_v45 = vld [vmem:[#allocation2 + $0x21] sm:$0xff]  ;;  %v1260_v49 = vld [vmem:[#allocation2 + $0x31] sm:$0xff] }
  0x2e   : > { %2291 = vmatprep.mubr.msk.f32.mxu0 %vm2572_vm0, %v2571_v2  ;;  %v627_v46 = vld [vmem:[#allocation2 + $0x1] sm:$0xff]  ;;  %v1261_v50 = vld [vmem:[#allocation2 + $0x39] sm:$0xff]  ;;  %v1263_v52 = vld [vmem:[#allocation2 + $0x49] sm:$0xff] }
  0x2f   : > { %v1262_v51 = vld [vmem:[#allocation2 + $0x41] sm:$0xff]  ;;  %v1413_v55 = vld [vmem:[#allocation2 + $0x6b] sm:$0xff]  ;;  %v1414_v56 = vld [vmem:[#allocation2 + $0x73] sm:$0xff] }
  0x30   : > { %2162 = vmatmul.mubr.msk.f32.gmra.mrb[10].mxu1 %vm261_vm1, %v319_v12  ;;  %v1915_v54 = vld [vmem:[%s2996_s1 + $0x40] sm:$0xff]  ;;  %v784_v58 = vld [vmem:[#allocation2 + $0xb4] sm:$0xff]  ;;  %v1417_v61 = vld [vmem:[#allocation2 + $0x8b] sm:$0xff] }
  0x31   : > { %2292 = vmatmul.mubr.msk.f32.vlgmr.msra.gmra.mrb[0].mxu0 %vm261_vm1, %v1098_v13  ;;  %2164 = vmatprep.mubr.msk.f32.mxu1 %vm2572_vm0, %v2571_v2  ;;  %v1415_v57 = vld [vmem:[#allocation2 + $0x7b] sm:$0xff]  ;;  %v1416_v59 = vld [vmem:[#allocation2 + $0x83] sm:$0xff]  ;;  %v787_v63 = vld [vmem:[#allocation2 + $0xcc] sm:$0xff] }
  0x32   : > { %2319 = vmatpush3.msra.mxu0 %v1895_v14  ;;  %2294 = vmatprep.mubr.msk.f32.mxu0 %vm2572_vm0, %v2571_v2  ;;  %v786_v62 = vld [vmem:[#allocation2 + $0xc4] sm:$0xff]  ;;  %v1419_v1 = vld [vmem:[#allocation2 + $0x9b] sm:$0xff]  ;;  %v1570_v8 = vld [vmem:[#allocation2 + $0x12] sm:$0xff] }
  0x33   : > { %2347 = vmatprep.subr.mxu0 %v2571_v2  ;;  %v788_v3 = vld [vmem:[#allocation2 + $0xd4] sm:$0xff]  ;;  %v1420_v4 = vld [vmem:[#allocation2 + $0xa3] sm:$0xff]  ;;  %v791_v9 = vld [vmem:[#allocation2 + $0xec] sm:$0xff] }
  0x34   : > { %2165 = vmatmul.mubr.msk.f32.gmra.mrb[12].mxu1 %vm261_vm1, %v320_v15  ;;  %v789_v5 = vld [vmem:[#allocation2 + $0xdc] sm:$0xff]  ;;  %v1569_v6 = vld [vmem:[#allocation2 + $0xa] sm:$0xff]  ;;  %v792_v11 = vld [vmem:[#allocation2 + $0xf4] sm:$0xff] }
  0x35   : > { %2295 = vmatmul.mubr.msk.f32.gmra.mrb[2].mxu0 %vm261_vm1, %v1099_v17  ;;  %2167 = vmatprep.mubr.msk.f32.mxu1 %vm2572_vm0, %v2571_v2  ;;  %v790_v7 = vld [vmem:[#allocation2 + $0xe4] sm:$0xff]  ;;  %v1571_v10 = vld [vmem:[#allocation2 + $0x1a] sm:$0xff]  ;;  %v1574_v16 = vld [vmem:[#allocation2 + $0x32] sm:$0xff] }
  0x36   : > { %2297 = vmatprep.mubr.msk.f32.mxu0 %vm2572_vm0, %v2571_v2  ;;  %v1572_v12 = vld [vmem:[#allocation2 + $0x22] sm:$0xff]  ;;  %v946_v13 = vld [vmem:[#allocation2 + $0x136] sm:$0xff]  ;;  %v1573_v14 = vld [vmem:[#allocation2 + $0x2a] sm:$0xff] }
  0x37   : > { %v947_v15 = vld [vmem:[#allocation2 + $0x13e] sm:$0xff]  ;;  %v948_v17 = vld [vmem:[#allocation2 + $0x146] sm:$0xff]  ;;  %v949_v19 = vld [vmem:[#allocation2 + $0x14e] sm:$0xff] }
  0x38   : > { %2168 = vmatmul.mubr.msk.f32.gmra.mrb[14].mxu1 %vm261_vm1, %v321_v22  ;;  %v1575_v18 = vld [vmem:[#allocation2 + $0x3a] sm:$0xff]  ;;  %v1576_v20 = vld [vmem:[#allocation2 + $0x42] sm:$0xff]  ;;  %v1577_v21 = vld [vmem:[#allocation2 + $0x4a] sm:$0xff] }
  0x39   : > { %2298 = vmatmul.mubr.msk.f32.gmra.mrb[4].mxu0 %vm261_vm1, %v1100_v23  ;;  %2170 = vmatprep.mubr.msk.f32.mxu1 %vm2572_vm0, %v2571_v2 }
  0x3a   : > { %2300 = vmatprep.mubr.msk.f32.mxu0 %vm2572_vm0, %v2571_v2 }
  0x3c   : > { %2171 = vmatmul.mubr.msk.f32.gmra.mrb[16].mxu1 %vm261_vm1, %v322_v24 }
  0x3d   : > { %2301 = vmatmul.mubr.msk.f32.gmra.mrb[6].mxu0 %vm261_vm1, %v1101_v25  ;;  %2175 = vmatprep.mubr.msk.f32.mxu1 %vm2572_vm0, %v2571_v2 }
  0x3e   : > { %2303 = vmatprep.mubr.msk.f32.mxu0 %vm2572_vm0, %v2571_v2 }
  0x40   : > { %2176 = vmatmul.mubr.msk.f32.vlgmr.msra.gmra.mrb[0].mxu1 %vm261_vm1, %v470_v26 }
  0x41   : > { %2304 = vmatmul.mubr.msk.f32.gmra.mrb[8].mxu0 %vm261_vm1, %v1102_v27  ;;  %2203 = vmatpush3.msra.mxu1 %v1855_v28 }
  0x42   : > { %2178 = vmatprep.mubr.msk.f32.mxu1 %vm2572_vm0, %v2571_v2  ;;  %2306 = vmatprep.mubr.msk.f32.mxu0 %vm2572_vm0, %v2571_v2 }
  0x43   : > { %2231 = vmatprep.subr.mxu1 %v2571_v2 }
  0x44   : > { %2179 = vmatmul.mubr.msk.f32.gmra.mrb[2].mxu1 %vm261_vm1, %v471_v29 }
  0x45   : > { %2307 = vmatmul.mubr.msk.f32.gmra.mrb[10].mxu0 %vm261_vm1, %v1103_v30  ;;  %2181 = vmatprep.mubr.msk.f32.mxu1 %vm2572_vm0, %v2571_v2 }
  0x46   : > { %2309 = vmatprep.mubr.msk.f32.mxu0 %vm2572_vm0, %v2571_v2 }
  0x48   : > { %2182 = vmatmul.mubr.msk.f32.gmra.mrb[4].mxu1 %vm261_vm1, %v472_v31  ;;  %v1835_v31 = vld [vmem:[%s2997_s2] ss:$0 sm:$0xff] }
  0x49   : > { %2310 = vmatmul.mubr.msk.f32.gmra.mrb[12].mxu0 %vm261_vm1, %v1104_v32  ;;  %2184 = vmatprep.mubr.msk.f32.mxu1 %vm2572_vm0, %v2571_v2 }
  0x4a   : > { %2312 = vmatprep.mubr.msk.f32.mxu0 %vm2572_vm0, %v2571_v2 }
  0x4c   : > { %2185 = vmatmul.mubr.msk.f32.gmra.mrb[6].mxu1 %vm261_vm1, %v473_v33 }
  0x4d   : > { %2313 = vmatmul.mubr.msk.f32.gmra.mrb[14].mxu0 %vm261_vm1, %v1105_v34  ;;  %2187 = vmatprep.mubr.msk.f32.mxu1 %vm2572_vm0, %v2571_v2 }
  0x4e   : > { %2315 = vmatprep.mubr.msk.f32.mxu0 %vm2572_vm0, %v2571_v2 }
  0x50   : > { %2188 = vmatmul.mubr.msk.f32.gmra.mrb[8].mxu1 %vm261_vm1, %v474_v35 }
  0x51   : > { %2316 = vmatmul.mubr.msk.f32.gmra.mrb[16].mxu0 %vm261_vm1, %v1106_v36  ;;  %2190 = vmatprep.mubr.msk.f32.mxu1 %vm2572_vm0, %v2571_v2 }
  0x52   : > { %2320 = vmatprep.mubr.msk.f32.mxu0 %vm2572_vm0, %v2571_v2 }
  0x54   : > { %2191 = vmatmul.mubr.msk.f32.gmra.mrb[10].mxu1 %vm261_vm1, %v475_v37 }
  0x55   : > { %2321 = vmatmul.mubr.msk.f32.vlgmr.msra.gmra.mrb[0].mxu0 %vm261_vm1, %v1255_v38  ;;  %2193 = vmatprep.mubr.msk.f32.mxu1 %vm2572_vm0, %v2571_v2 }
  0x56   : > { %2348 = vmatpush3.msra.mxu0 %v1905_v39  ;;  %2323 = vmatprep.mubr.msk.f32.mxu0 %vm2572_vm0, %v2571_v2 }
  0x57   : > { %2376 = vmatprep.subr.mxu0 %v2571_v2 }
  0x58   : > { %2194 = vmatmul.mubr.msk.f32.gmra.mrb[12].mxu1 %vm261_vm1, %v476_v40 }
  0x59   : > { %2324 = vmatmul.mubr.msk.f32.gmra.mrb[2].mxu0 %vm261_vm1, %v1256_v41  ;;  %2196 = vmatprep.mubr.msk.f32.mxu1 %vm2572_vm0, %v2571_v2 }
  0x5a   : > { %2326 = vmatprep.mubr.msk.f32.mxu0 %vm2572_vm0, %v2571_v2 }
  0x5c   : > { %2197 = vmatmul.mubr.msk.f32.gmra.mrb[14].mxu1 %vm261_vm1, %v477_v42 }
  0x5d   : > { %2327 = vmatmul.mubr.msk.f32.gmra.mrb[4].mxu0 %vm261_vm1, %v1257_v43  ;;  %2199 = vmatprep.mubr.msk.f32.mxu1 %vm2572_vm0, %v2571_v2 }
  0x5e   : > { %2329 = vmatprep.mubr.msk.f32.mxu0 %vm2572_vm0, %v2571_v2 }
  0x60   : > { %2200 = vmatmul.mubr.msk.f32.gmra.mrb[16].mxu1 %vm261_vm1, %v478_v44 }
  0x61   : > { %2330 = vmatmul.mubr.msk.f32.gmra.mrb[6].mxu0 %vm261_vm1, %v1258_v45  ;;  %2204 = vmatprep.mubr.msk.f32.mxu1 %vm2572_vm0, %v2571_v2 }
  0x62   : > { %2332 = vmatprep.mubr.msk.f32.mxu0 %vm2572_vm0, %v2571_v2 }
  0x64   : > { %2205 = vmatmul.mubr.msk.f32.vlgmr.msra.gmra.mrb[0].mxu1 %vm261_vm1, %v627_v46 }
  0x65   : > { %2333 = vmatmul.mubr.msk.f32.gmra.mrb[8].mxu0 %vm261_vm1, %v1259_v47  ;;  %2232 = vmatpush3.msra.mxu1 %v1865_v48 }
  0x66   : > { %2207 = vmatprep.mubr.msk.f32.mxu1 %vm2572_vm0, %v2571_v2  ;;  %2335 = vmatprep.mubr.msk.f32.mxu0 %vm2572_vm0, %v2571_v2 }
  0x67   : > { %2405 = vmatprep.subr.mxu1 %v2571_v2 }
  0x68   : > { %2208 = vmatmul.mubr.msk.f32.gmra.mrb[2].mxu1 %vm261_vm1, %v1255_v38 }
  0x69   : > { %2336 = vmatmul.mubr.msk.f32.gmra.mrb[10].mxu0 %vm261_vm1, %v1260_v49  ;;  %2210 = vmatprep.mubr.msk.f32.mxu1 %vm2572_vm0, %v2571_v2 }
  0x6a   : > { %2338 = vmatprep.mubr.msk.f32.mxu0 %vm2572_vm0, %v2571_v2 }
  0x6c   : > { %2211 = vmatmul.mubr.msk.f32.gmra.mrb[4].mxu1 %vm261_vm1, %v1256_v41 }
  0x6d   : > { %2339 = vmatmul.mubr.msk.f32.gmra.mrb[12].mxu0 %vm261_vm1, %v1261_v50  ;;  %2213 = vmatprep.mubr.msk.f32.mxu1 %vm2572_vm0, %v2571_v2 }
  0x6e   : > { %2341 = vmatprep.mubr.msk.f32.mxu0 %vm2572_vm0, %v2571_v2 }
  0x70   : > { %2214 = vmatmul.mubr.msk.f32.gmra.mrb[6].mxu1 %vm261_vm1, %v1257_v43 }
  0x71   : > { %2342 = vmatmul.mubr.msk.f32.gmra.mrb[14].mxu0 %vm261_vm1, %v1262_v51  ;;  %2216 = vmatprep.mubr.msk.f32.mxu1 %vm2572_vm0, %v2571_v2 }
  0x72   : > { %2344 = vmatprep.mubr.msk.f32.mxu0 %vm2572_vm0, %v2571_v2 }
  0x74   : > { %2217 = vmatmul.mubr.msk.f32.gmra.mrb[8].mxu1 %vm261_vm1, %v1258_v45 }
  0x75   : > { %2345 = vmatmul.mubr.msk.f32.gmra.mrb[16].mxu0 %vm261_vm1, %v1263_v52  ;;  %2219 = vmatprep.mubr.msk.f32.mxu1 %vm2572_vm0, %v2571_v2 }
  0x76   : > { %2349 = vmatprep.mubr.msk.f32.mxu0 %vm2572_vm0, %v2571_v2 }
  0x78   : > { %2220 = vmatmul.mubr.msk.f32.gmra.mrb[10].mxu1 %vm261_vm1, %v1259_v47 }
  0x79   : > { %2350 = vmatmul.mubr.msk.f32.vlgmr.msra.gmra.mrb[0].mxu0 %vm261_vm1, %v1412_v53  ;;  %2222 = vmatprep.mubr.msk.f32.mxu1 %vm2572_vm0, %v2571_v2 }
  0x7a   : > { %2377 = vmatpush3.msra.mxu0 %v1915_v54  ;;  %2352 = vmatprep.mubr.msk.f32.mxu0 %vm2572_vm0, %v2571_v2 }
  0x7c   : > { %2223 = vmatmul.mubr.msk.f32.gmra.mrb[12].mxu1 %vm261_vm1, %v1260_v49 }
  0x7d   : > { %2353 = vmatmul.mubr.msk.f32.gmra.mrb[2].mxu0 %vm261_vm1, %v1413_v55  ;;  %2225 = vmatprep.mubr.msk.f32.mxu1 %vm2572_vm0, %v2571_v2 }
  0x7e   : > { %2355 = vmatprep.mubr.msk.f32.mxu0 %vm2572_vm0, %v2571_v2 }
  0x80   : > { %2226 = vmatmul.mubr.msk.f32.gmra.mrb[14].mxu1 %vm261_vm1, %v1261_v50 }
  0x81   : > { %2356 = vmatmul.mubr.msk.f32.gmra.mrb[4].mxu0 %vm261_vm1, %v1414_v56  ;;  %2228 = vmatprep.mubr.msk.f32.mxu1 %vm2572_vm0, %v2571_v2 }
  0x82   : > { %2358 = vmatprep.mubr.msk.f32.mxu0 %vm2572_vm0, %v2571_v2 }
  0x84   : > { %2229 = vmatmul.mubr.msk.f32.gmra.mrb[16].mxu1 %vm261_vm1, %v1262_v51 }
  0x85   : > { %2359 = vmatmul.mubr.msk.f32.gmra.mrb[6].mxu0 %vm261_vm1, %v1415_v57  ;;  %2233 = vmatprep.mubr.msk.f32.mxu1 %vm2572_vm0, %v2571_v2 }
  0x86   : > { %2361 = vmatprep.mubr.msk.f32.mxu0 %vm2572_vm0, %v2571_v2 }
  0x88   : > { %2234 = vmatmul.mubr.msk.f32.vlgmr.msra.gmra.mrb[0].mxu1 %vm261_vm1, %v784_v58 }
  0x89   : > { %2362 = vmatmul.mubr.msk.f32.gmra.mrb[8].mxu0 %vm261_vm1, %v1416_v59  ;;  %2406 = vmatpush3.msra.mxu1 %v2604_v0  ;;  %v1418_v0 = vld [vmem:[#allocation2 + $0x93] sm:$0xff] }
  0x8a   : > { %2236 = vmatprep.mubr.msk.f32.mxu1 %vm2572_vm0, %v2571_v2  ;;  %2364 = vmatprep.mubr.msk.f32.mxu0 %vm2572_vm0, %v2571_v2 }
  0x8c   : > { %2237 = vmatmul.mubr.msk.f32.gmra.mrb[2].mxu1 %vm261_vm1, %v785_v60 }
  0x8d   : > { %2365 = vmatmul.mubr.msk.f32.gmra.mrb[10].mxu0 %vm261_vm1, %v1417_v61  ;;  %2239 = vmatprep.mubr.msk.f32.mxu1 %vm2572_vm0, %v2571_v2 }
  0x8e   : > { %2367 = vmatprep.mubr.msk.f32.mxu0 %vm2572_vm0, %v2571_v2 }
  0x90   : > { %2240 = vmatmul.mubr.msk.f32.gmra.mrb[4].mxu1 %vm261_vm1, %v786_v62 }
  0x91   : > { %2368 = vmatmul.mubr.msk.f32.gmra.mrb[12].mxu0 %vm261_vm1, %v1418_v0  ;;  %2242 = vmatprep.mubr.msk.f32.mxu1 %vm2572_vm0, %v2571_v2 }
  0x92   : > { %2370 = vmatprep.mubr.msk.f32.mxu0 %vm2572_vm0, %v2571_v2 }
  0x94   : > { %2243 = vmatmul.mubr.msk.f32.gmra.mrb[6].mxu1 %vm261_vm1, %v787_v63 }
  0x95   : > { %2371 = vmatmul.mubr.msk.f32.gmra.mrb[14].mxu0 %vm261_vm1, %v1419_v1  ;;  %2245 = vmatprep.mubr.msk.f32.mxu1 %vm2572_vm0, %v2571_v2 }
  0x96   : > { %2373 = vmatprep.mubr.msk.f32.mxu0 %vm2572_vm0, %v2571_v2 }
  0x98   : > { %2246 = vmatmul.mubr.msk.f32.gmra.mrb[8].mxu1 %vm261_vm1, %v788_v3 }
  0x99   : > { %2374 = vmatmul.mubr.msk.f32.gmra.mrb[16].mxu0 %vm261_vm1, %v1420_v4  ;;  %2248 = vmatprep.mubr.msk.f32.mxu1 %vm2572_vm0, %v2571_v2 }
  0x9a   : > { %2378 = vmatprep.mubr.msk.f32.mxu0 %vm2572_vm0, %v2571_v2 }
  0x9c   : > { %2249 = vmatmul.mubr.msk.f32.gmra.mrb[10].mxu1 %vm261_vm1, %v789_v5 }
  0x9d   : > { %2379 = vmatmul.mubr.msk.f32.vlgmr.msra.gmra.mrb[0].mxu0 %vm261_vm1, %v1569_v6  ;;  %2251 = vmatprep.mubr.msk.f32.mxu1 %vm2572_vm0, %v2571_v2 }
  0x9e   : > { %2381 = vmatprep.mubr.msk.f32.mxu0 %vm2572_vm0, %v2571_v2 }
  0xa0   : > { %2252 = vmatmul.mubr.msk.f32.gmra.mrb[12].mxu1 %vm261_vm1, %v790_v7 }
  0xa1   : > { %2382 = vmatmul.mubr.msk.f32.gmra.mrb[2].mxu0 %vm261_vm1, %v1570_v8  ;;  %2254 = vmatprep.mubr.msk.f32.mxu1 %vm2572_vm0, %v2571_v2 }
  0xa2   : > { %2384 = vmatprep.mubr.msk.f32.mxu0 %vm2572_vm0, %v2571_v2 }
  0xa4   : > { %2255 = vmatmul.mubr.msk.f32.gmra.mrb[14].mxu1 %vm261_vm1, %v791_v9 }
  0xa5   : > { %2385 = vmatmul.mubr.msk.f32.gmra.mrb[4].mxu0 %vm261_vm1, %v1571_v10  ;;  %2257 = vmatprep.mubr.msk.f32.mxu1 %vm2572_vm0, %v2571_v2 }
  0xa6   : > { %2387 = vmatprep.mubr.msk.f32.mxu0 %vm2572_vm0, %v2571_v2 }
  0xa8   : > { %2258 = vmatmul.mubr.msk.f32.gmra.mrb[16].mxu1 %vm261_vm1, %v792_v11 }
  0xa9   : > { %2388 = vmatmul.mubr.msk.f32.gmra.mrb[6].mxu0 %vm261_vm1, %v1572_v12  ;;  %2277 = vmatprep.mubr.msk.f32.mxu1 %vm2572_vm0, %v2571_v2 }
  0xaa   : > { %2390 = vmatprep.mubr.msk.f32.mxu0 %vm2572_vm0, %v2571_v2 }
  0xac   : > { %2278 = vmatmul.mubr.msk.f32.vlgmr.msra.gmra.mrb[10].mxu1 %vm261_vm1, %v946_v13 }
  0xad   : > { %2391 = vmatmul.mubr.msk.f32.gmra.mrb[8].mxu0 %vm261_vm1, %v1573_v14  ;;  %2280 = vmatprep.mubr.msk.f32.mxu1 %vm2572_vm0, %v2571_v2 }
  0xae   : > { %2393 = vmatprep.mubr.msk.f32.mxu0 %vm2572_vm0, %v2571_v2 }
  0xb0   : > { %2281 = vmatmul.mubr.msk.f32.gmra.mrb[12].mxu1 %vm261_vm1, %v947_v15 }
  0xb1   : > { %2394 = vmatmul.mubr.msk.f32.gmra.mrb[10].mxu0 %vm261_vm1, %v1574_v16  ;;  %2283 = vmatprep.mubr.msk.f32.mxu1 %vm2572_vm0, %v2571_v2 }
  0xb2   : > { %2396 = vmatprep.mubr.msk.f32.mxu0 %vm2572_vm0, %v2571_v2 }
  0xb4   : > { %2284 = vmatmul.mubr.msk.f32.gmra.mrb[14].mxu1 %vm261_vm1, %v948_v17 }
  0xb5   : > { %2397 = vmatmul.mubr.msk.f32.gmra.mrb[12].mxu0 %vm261_vm1, %v1575_v18  ;;  %2286 = vmatprep.mubr.msk.f32.mxu1 %vm2572_vm0, %v2571_v2 }
  0xb6   : > { %2399 = vmatprep.mubr.msk.f32.mxu0 %vm2572_vm0, %v2571_v2 }
  0xb8   : > { %2287 = vmatmul.mubr.msk.f32.gmra.mrb[16].mxu1 %vm261_vm1, %v949_v19 }
  0xb9   : > { %2400 = vmatmul.mubr.msk.f32.gmra.mrb[14].mxu0 %vm261_vm1, %v1576_v20 }
  0xba   : > { %2402 = vmatprep.mubr.msk.f32.mxu0 %vm2572_vm0, %v2571_v2 }
  0xbd   : > { %2403 = vmatmul.mubr.msk.f32.gmra.mrb[16].mxu0 %vm261_vm1, %v1577_v21 }
 0x15b   : > { %v888_v22 = vpop.f32.mrb[0].mxu1 }
 0x15c   : > { %v2235_v23 = vpop.f32.mrb[1].mxu1  ;;  %v2407_v33 = vadd.f32 %v1835_v31, %v888_v22 }
 0x15f   : > { %v893_v24 = vpop.f32.mrb[2].mxu1 }
 0x160   : > { %v2238_v25 = vpop.f32.mrb[3].mxu1  ;;  %v2409_v36 = vadd.f32 %v1835_v31, %v893_v24 }
 0x163   : > { %v898_v26 = vpop.f32.mrb[4].mxu1 }
 0x164   : > { %v2241_v27 = vpop.f32.mrb[5].mxu1  ;;  %v2411_v41 = vadd.f32 %v1835_v31, %v898_v26 }
 0x167   : > { %v903_v28 = vpop.f32.mrb[6].mxu1 }
 0x168   : > { %v2244_v29 = vpop.f32.mrb[7].mxu1  ;;  %v2413_v46 = vadd.f32 %v1835_v31, %v903_v28 }
 0x16b   : > { %v908_v30 = vpop.f32.mrb[8].mxu1 }
 0x16c   : > { %v2247_v32 = vpop.f32.mrb[9].mxu1  ;;  %v2415_v51 = vadd.f32 %v1835_v31, %v908_v30 }
 0x170   : > { %v1673_v2 = vpop.f32.mrb[0].mxu0 }
 0x171   : > { %v2408_v34 = vadd.f32 %v2407_v33, %v1673_v2  ;;  %v2380_v35 = vpop.f32.mrb[1].mxu0 }
 0x173   : > { %v1936_v37 = vpack.c.bf16 %v2408_v34, %v2408_v34 }
 0x174   : > { %v1678_v38 = vpop.f32.mrb[2].mxu0 }
 0x175   : > { %1764 = vst.msk [vmem:[%s2972_s16] sm:$0xf] %vm1763_vm2, %v1936_v37  ;;  %v2410_v39 = vadd.f32 %v2409_v36, %v1678_v38  ;;  %v2383_v40 = vpop.f32.mrb[3].mxu0 }
 0x177   : > { %v1937_v42 = vpack.c.bf16 %v2410_v39, %v2410_v39 }
 0x178   : > { %v1683_v43 = vpop.f32.mrb[4].mxu0 }
 0x179   : > { %1765 = vst.msk [vmem:[%s2972_s16 + $0x4] sm:$0xf] %vm1763_vm2, %v1937_v42  ;;  %v2412_v44 = vadd.f32 %v2411_v41, %v1683_v43  ;;  %v2386_v45 = vpop.f32.mrb[5].mxu0 }
 0x17b   : > { %v1938_v47 = vpack.c.bf16 %v2412_v44, %v2412_v44 }
 0x17c   : > { %v1688_v48 = vpop.f32.mrb[6].mxu0 }
 0x17d   : > { %1766 = vst.msk [vmem:[%s2972_s16 + $0x8] sm:$0xf] %vm1763_vm2, %v1938_v47  ;;  %v2414_v49 = vadd.f32 %v2413_v46, %v1688_v48  ;;  %v2389_v50 = vpop.f32.mrb[7].mxu0 }
 0x17f   : > { %v1939_v52 = vpack.c.bf16 %v2414_v49, %v2414_v49  ;;  %v1070_v53 = vpop.f32.mrb[10].mxu1 }
 0x180   : > { %v1693_v54 = vpop.f32.mrb[8].mxu0  ;;  %v2279_v55 = vpop.f32.mrb[11].mxu1  ;;  %v2417_v58 = vadd.f32 %v1835_v31, %v1070_v53 }
 0x181   : > { %1767 = vst.msk [vmem:[%s2972_s16 + $0xc] sm:$0xf] %vm1763_vm2, %v1939_v52  ;;  %v2416_v56 = vadd.f32 %v2415_v51, %v1693_v54  ;;  %v2392_v57 = vpop.f32.mrb[9].mxu0 }
 0x183   : > { %v1940_v59 = vpack.c.bf16 %v2416_v56, %v2416_v56  ;;  %v1075_v60 = vpop.f32.mrb[12].mxu1 }
 0x184   : > { %v1698_v61 = vpop.f32.mrb[10].mxu0  ;;  %v2282_v62 = vpop.f32.mrb[13].mxu1  ;;  %v2419_v1 = vadd.f32 %v1835_v31, %v1075_v60 }
 0x185   : > { %1768 = vst.msk [vmem:[%s2972_s16 + $0x10] sm:$0xf] %vm1763_vm2, %v1940_v59  ;;  %v2418_v0 = vadd.f32 %v2417_v58, %v1698_v61  ;;  %v2395_v63 = vpop.f32.mrb[11].mxu0 }
 0x187   : > { %v1941_v3 = vpack.c.bf16 %v2418_v0, %v2418_v0  ;;  %v1080_v4 = vpop.f32.mrb[14].mxu1 }
 0x188   : > { %v1703_v5 = vpop.f32.mrb[12].mxu0  ;;  %v2285_v6 = vpop.f32.mrb[15].mxu1  ;;  %v2421_v9 = vadd.f32 %v1835_v31, %v1080_v4 }
 0x189   : > { %1769 = vst.msk [vmem:[%s2972_s16 + $0x14] sm:$0xf] %vm1763_vm2, %v1941_v3  ;;  %v2420_v7 = vadd.f32 %v2419_v1, %v1703_v5  ;;  %v2398_v8 = vpop.f32.mrb[13].mxu0 }
 0x18b   : > { %v1942_v10 = vpack.c.bf16 %v2420_v7, %v2420_v7  ;;  %v1085_v11 = vpop.f32.mrb[16].mxu1 }
 0x18c   : > { %v1708_v12 = vpop.f32.mrb[14].mxu0  ;;  %v2288_v13 = vpop.f32.mrb[17].mxu1  ;;  %v2423_v16 = vadd.f32 %v1835_v31, %v1085_v11 }
 0x18d   : > { %1770 = vst.msk [vmem:[%s2972_s16 + $0x18] sm:$0xf] %vm1763_vm2, %v1942_v10  ;;  %v2422_v14 = vadd.f32 %v2421_v9, %v1708_v12  ;;  %v2401_v15 = vpop.f32.mrb[15].mxu0 }
 0x18f   : > { %v1943_v17 = vpack.c.bf16 %v2422_v14, %v2422_v14 }
 0x190   : > { %v1713_v18 = vpop.f32.mrb[16].mxu0 }
 0x191   : > { %1771 = vst.msk [vmem:[%s2972_s16 + $0x1c] sm:$0xf] %vm1763_vm2, %v1943_v17  ;;  %v2424_v19 = vadd.f32 %v2423_v16, %v1713_v18  ;;  %v2404_v20 = vpop.f32.mrb[17].mxu0 }
 0x193   : > { %v1944_v21 = vpack.c.bf16 %v2424_v19, %v2424_v19 }
 0x195   : > { %1772 = vst.msk [vmem:[%s2972_s16 + $0x20] sm:$0xf] %vm1763_vm2, %v1944_v21 }
 0x196 PF: > { %s13_s12 = sadd.s32 1, %s2569_s12  }
 0x197   : > { %p10_p4 = scmp.ge.s32.totalorder %s13_s12, 6  }
 0x199   :  { %12 = sbr.rel (!%p10_p4) target bundleno = 1 (0x1), region = 70 }

// kernel: image_encoder_forward.5
= control target key start
LH: loop header
LB: loop body
LE: loop exit
PB: predicated region body
PF: predicated region fallthrough
CT: control target
= control target key end

     0   :  { %s1671_s12 = smov 0   ;;  %s1926_s0 = inlined_call_operand.vmem [shape: bf16[4,120,32], index: 0, kind: input, shape index: {}]   ;;  %s1927_s1 = inlined_call_operand.vmem [shape: f32[9,32,64], index: 1, kind: input, shape index: {}]   ;;  %s1928_s2 = inlined_call_operand.vmem [shape: f32[1,64], index: 2, kind: input, shape index: {}]   ;;  %s1929_s3 = inlined_call_operand.vmem [shape: bf16[4,20,64], index: 3, kind: output, shape index: {}]  }
   0x1 LB: > { %s1196_s13 = sadd.s32 4294967295, %s1646_s12   ;;  %p1200_p0 = scmp.ge.s32.totalorder %s1646_s12, 1  ;;  %s1646_s12 = sphi %s1671_s12, %s13_s12  }
   0x2   : > { %p137_p1 = scmp.lt.s32.totalorder %s1646_s12, 5 }
   0x4   : > { %p138_p2 = pnand %p1200_p0, %p137_p1 }
   0x5   : > { %v227_v0 = vld [vmem:[%s1927_s1] sm:$0xff] (!%p138_p2)  ;;  %v228_v1 = vld [vmem:[%s1927_s1 + $0x8] sm:$0xff] (!%p138_p2)  ;;  %v1648_v3 = vmov (!%p138_p2), 0.0|0.0   ;;  %v229_v6 = vld [vmem:[%s1927_s1 + $0x10] sm:$0xff] (!%p138_p2)  ;;  %p161_p3 = scmp.lt.s32.totalorder (!%p138_p2), %s1196_s13, 3  ;;  %vm1649_vm0 = vmmov (!%p138_p2), 0  }
   0x6   : > { %141 = sbr.rel (%p138_p2) target bundleno = 299 (0x12b), region = 32  ;;  %v1228_v2 = vld [vmem:[%s1927_s1 + $0x80] sm:$0xff] (!%p138_p2)  ;;  %1521 = vmatprep.subr.bf16.mxu1 (!%p138_p2), %v1648_v3  ;;  %v1522_v4 = vpack.c.bf16 (!%p138_p2), %v228_v1, %v227_v0  ;;  %1545 = vmatprep.subr.bf16.mxu0 (!%p138_p2), %v1648_v3  ;;  %v1229_v5 = vld [vmem:[%s1927_s1 + $0x88] sm:$0xff] (!%p138_p2)  ;;  %v230_v7 = vld [vmem:[%s1927_s1 + $0x18] sm:$0xff] (!%p138_p2)  ;;  %v1650_v11 = vmov (!%p138_p2), 0.0   ;;  %vm201_vm1 = vcmask (!%p138_p2), 261120  }
   0x7   : > { %v1699_v8 = vpack.c.bf16 (!%p138_p2), %v1229_v5, %v1228_v2  ;;  %v1230_v9 = vld [vmem:[%s1927_s1 + $0x90] sm:$0xff] (!%p138_p2)  ;;  %v1231_v10 = vld [vmem:[%s1927_s1 + $0x98] sm:$0xff] (!%p138_p2)  ;;  %1376 = vmatprep.mubr.msk.f32.mxu1 (!%p138_p2), %vm1649_vm0, %v1650_v11  ;;  %1444 = vmatprep.mubr.msk.f32.mxu0 (!%p138_p2), %vm1649_vm0, %v1650_v11  ;;  %v1525_v12 = vpack.c.bf16 (!%p138_p2), %v230_v7, %v229_v6  ;;  %v1207_v35 = vld [vmem:[%s1927_s1 + $0x20] sm:$0xff] (!%p138_p2)  ;;  %vm1136_vm2 = vcmask (!%p138_p2), 519168   ;;  %vm1139_vm3 = vcmask (!%p138_p2), 517120  }
   0x8   : > { %1523 = vmatpush3.bf16.msra.mxu1 (!%p138_p2), %v1522_v4  ;;  %v1715_v13 = vpack.c.bf16 (!%p138_p2), %v1231_v10, %v1230_v9  ;;  %v1208_v36 = vld [vmem:[%s1927_s1 + $0x28] sm:$0xff] (!%p138_p2)  ;;  %v1235_v37 = vld [vmem:[%s1927_s1 + $0xa0] sm:$0xff] (!%p138_p2)  ;;  %v1209_v41 = vld [vmem:[%s1927_s1 + $0x30] sm:$0xff] (!%p138_p2) }
   0x9   : > { %1547 = vmatpush3.bf16.msra.mxu0 (!%p138_p2), %v1699_v8  ;;  %1524 = vmatprep.subr.bf16.mxu1 (!%p138_p2), %v1648_v3  ;;  %v1236_v38 = vld [vmem:[%s1927_s1 + $0xa8] sm:$0xff] (!%p138_p2)  ;;  %v1528_v39 = vpack.c.bf16 (!%p138_p2), %v1208_v36, %v1207_v35  ;;  %v1210_v42 = vld [vmem:[%s1927_s1 + $0x38] sm:$0xff] (!%p138_p2)  ;;  %v1237_v44 = vld [vmem:[%s1927_s1 + $0xb0] sm:$0xff] (!%p138_p2) }
   0xa   : > { %1548 = vmatprep.subr.bf16.mxu0 (!%p138_p2), %v1648_v3  ;;  %v1552_v40 = vpack.c.bf16 (!%p138_p2), %v1236_v38, %v1235_v37  ;;  %v1238_v45 = vld [vmem:[%s1927_s1 + $0xb8] sm:$0xff] (!%p138_p2)  ;;  %v1531_v48 = vpack.c.bf16 (!%p138_p2), %v1210_v42, %v1209_v41  ;;  %v1242_v51 = vld [vmem:[%s1927_s1 + $0xc0] sm:$0xff] (!%p138_p2)  ;;  %v1243_v52 = vld [vmem:[%s1927_s1 + $0xc8] sm:$0xff] (!%p138_p2) }
   0xb   : > { %v1555_v50 = vpack.c.bf16 (!%p138_p2), %v1238_v45, %v1237_v44  ;;  %v1558_v55 = vpack.c.bf16 (!%p138_p2), %v1243_v52, %v1242_v51  ;;  %v1214_v56 = vld [vmem:[%s1927_s1 + $0x40] sm:$0xff] (!%p138_p2)  ;;  %v1215_v57 = vld [vmem:[%s1927_s1 + $0x48] sm:$0xff] (!%p138_p2)  ;;  %v1244_v58 = vld [vmem:[%s1927_s1 + $0xd0] sm:$0xff] (!%p138_p2) }
   0xc   : > { %1526 = vmatpush3.bf16.msra.mxu1 (!%p138_p2), %v1525_v12  ;;  %v1245_v59 = vld [vmem:[%s1927_s1 + $0xd8] sm:$0xff] (!%p138_p2)  ;;  %v1534_v61 = vpack.c.bf16 (!%p138_p2), %v1215_v57, %v1214_v56  ;;  %v1216_v63 = vld [vmem:[%s1927_s1 + $0x50] sm:$0xff] (!%p138_p2)  ;;  %v1249_v6 = vld [vmem:[%s1927_s1 + $0xe0] sm:$0xff] (!%p138_p2) }
   0xd   : > { %s1931_s13 = smov (!%p161_p3, %s1196_s13), 3  ;;  %1550 = vmatpush3.bf16.msra.mxu0 %v1715_v13  ;;  %1527 = vmatprep.subr.bf16.mxu1 %v1648_v3  ;;  %v1217_v0 = vld [vmem:[%s1927_s1 + $0x58] sm:$0xff]  ;;  %v1561_v1 = vpack.c.bf16 %v1245_v59, %v1244_v58  ;;  %v1250_v7 = vld [vmem:[%s1927_s1 + $0xe8] sm:$0xff]  ;;  %v1203_v44 = vld [vmem:[%s1928_s2] ss:$0 sm:$0xff] }
   0xe   : > { %s1627_s30 = smul.u32 60, %s1931_s13  ;;  %1551 = vmatprep.subr.bf16.mxu0 %v1648_v3  ;;  %v1537_v4 = vpack.c.bf16 %v1217_v0, %v1216_v63  ;;  %v1564_v12 = vpack.c.bf16 %v1250_v7, %v1249_v6 }
   0xf   : > { %s1628_s17 = smul.u32 12, %s1931_s13 }
  0x10   : > { %s165_s6 = scalar_lea.vmem %s1926_s0, %s1627_s30 }
  0x11   : > { %v1272_v14 = vld [vmem:[%s165_s6] sm:$0xff]   ;;  %v1303_v15 = vld [vmem:[%s165_s6 + $0x28] sm:$0xff]   ;;  %v1304_v18 = vld [vmem:[%s165_s6 + $0x30] sm:$0xff]   ;;  %s170_s20 = scalar_lea.vmem %s1929_s3, %s1628_s17 }
  0x12   : > { %v1273_v16 = vunpack.c.l.bf16 %v1272_v14  ;;  %v1294_v17 = vunpack.c.h.bf16 %v1303_v15  ;;  %v1274_v19 = vunpack.c.h.bf16 %v1272_v14  ;;  %v1299_v20 = vld [vmem:[%s165_s6 + $0x8] sm:$0xff]   ;;  %v1301_v21 = vld [vmem:[%s165_s6 + $0x18] sm:$0xff]   ;;  %v1297_v22 = vunpack.c.l.bf16 %v1304_v18  ;;  %v1302_v26 = vld [vmem:[%s165_s6 + $0x20] sm:$0xff]  }
  0x13   : > { %v1298_v23 = vunpack.c.h.bf16 %v1304_v18  ;;  %v1277_v24 = vunpack.c.l.bf16 %v1299_v20  ;;  %v1278_v25 = vunpack.c.h.bf16 %v1299_v20  ;;  %v1300_v27 = vld [vmem:[%s165_s6 + $0x10] sm:$0xff]   ;;  %v1286_v28 = vunpack.c.h.bf16 %v1301_v21  ;;  %v1221_v14 = vld [vmem:[%s1927_s1 + $0x60] sm:$0xff] }
  0x14   : > { %202 = vst.msk [vmem:[#allocation2] sm:$0xff] %vm201_vm1, %v1273_v16  ;;  %213 = vst.msk [vmem:[#allocation2 + $0x58] sm:$0xff] %vm201_vm1, %v1294_v17  ;;  %v1289_v29 = vunpack.c.l.bf16 %v1302_v26  ;;  %v1281_v30 = vunpack.c.l.bf16 %v1300_v27  ;;  %v1290_v31 = vunpack.c.h.bf16 %v1302_v26  ;;  %v1282_v32 = vunpack.c.h.bf16 %v1300_v27  ;;  %v1251_v16 = vld [vmem:[%s1927_s1 + $0xf0] sm:$0xff]  ;;  %v1252_v17 = vld [vmem:[%s1927_s1 + $0xf8] sm:$0xff] }
  0x15   : > { %203 = vst.msk [vmem:[#allocation2 + $0x8] sm:$0xff] %vm201_vm1, %v1274_v19  ;;  %214 = vst.msk [vmem:[#allocation2 + $0x60] sm:$0xff] %vm201_vm1, %v1297_v22  ;;  %v1293_v33 = vunpack.c.l.bf16 %v1303_v15  ;;  %v1285_v34 = vunpack.c.l.bf16 %v1301_v21  ;;  %v1222_v15 = vld [vmem:[%s1927_s1 + $0x68] sm:$0xff]  ;;  %v1223_v21 = vld [vmem:[%s1927_s1 + $0x70] sm:$0xff] }
  0x16   : > { %215 = vst.msk [vmem:[#allocation2 + $0x68] sm:$0xff] %vm201_vm1, %v1298_v23  ;;  %204 = vst.msk [vmem:[#allocation2 + $0x10] sm:$0xff] %vm201_vm1, %v1277_v24  ;;  %v1540_v19 = vpack.c.bf16 %v1222_v15, %v1221_v14  ;;  %v1224_v22 = vld [vmem:[%s1927_s1 + $0x78] sm:$0xff]  ;;  %v1567_v23 = vpack.c.bf16 %v1252_v17, %v1251_v16  ;;  %v1256_v27 = vld [vmem:[%s1927_s1 + $0x100] sm:$0xff] }
  0x17   : > { %205 = vst.msk [vmem:[#allocation2 + $0x18] sm:$0xff] %vm201_vm1, %v1278_v25  ;;  %209 = vst.msk [vmem:[#allocation2 + $0x38] sm:$0xff] %vm201_vm1, %v1286_v28  ;;  %v1543_v25 = vpack.c.bf16 %v1224_v22, %v1223_v21  ;;  %v1257_v28 = vld [vmem:[%s1927_s1 + $0x108] sm:$0xff] }
  0x18   : > { %210 = vst.msk [vmem:[#allocation2 + $0x40] sm:$0xff] %vm201_vm1, %v1289_v29  ;;  %206 = vst.msk [vmem:[#allocation2 + $0x20] sm:$0xff] %vm201_vm1, %v1281_v30 }
  0x19   : > { %211 = vst.msk [vmem:[#allocation2 + $0x48] sm:$0xff] %vm201_vm1, %v1290_v31  ;;  %207 = vst.msk [vmem:[#allocation2 + $0x28] sm:$0xff] %vm201_vm1, %v1282_v32  ;;  %v1570_v31 = vpack.c.bf16 %v1257_v28, %v1256_v27  ;;  %v1258_v32 = vld [vmem:[%s1927_s1 + $0x110] sm:$0xff] }
  0x1a   : > { %212 = vst.msk [vmem:[#allocation2 + $0x50] sm:$0xff] %vm201_vm1, %v1293_v33  ;;  %208 = vst.msk [vmem:[#allocation2 + $0x30] sm:$0xff] %vm201_vm1, %v1285_v34  ;;  %v1259_v33 = vld [vmem:[%s1927_s1 + $0x118] sm:$0xff] }
  0x1b   : > { %v224_v43 = vld [vmem:[#allocation2] sm:$0xff]  ;;  %v1573_v36 = vpack.c.bf16 %v1259_v33, %v1258_v32 }
  0x1c   : > { %1377 = vmatmul.mubr.msk.f32.vlgmr.msra.gmra.mrb[0].mxu1 %vm201_vm1, %v224_v43  ;;  %v623_v46 = vld [vmem:[#allocation2 + $0x5a] sm:$0xff]  ;;  %v225_v47 = vld [vmem:[#allocation2 + $0x8] sm:$0xff] }
  0x1d   : > { %1529 = vmatpush3.bf16.msra.mxu1 %v1528_v39  ;;  %1445 = vmatmul.mubr.msk.f32.vlgmr.msra.gmra.mrb[0].mxu0 %vm201_vm1, %v623_v46  ;;  %v624_v49 = vld [vmem:[#allocation2 + $0x62] sm:$0xff]  ;;  %v226_v53 = vld [vmem:[#allocation2 + $0x10] sm:$0xf] }
  0x1e   : > { %1553 = vmatpush3.bf16.msra.mxu0 %v1552_v40  ;;  %1379 = vmatprep.mubr.msk.f32.mxu1 %vm1649_vm0, %v1650_v11  ;;  %v823_v10 = vld [vmem:[#allocation2 + $0x5] sm:$0xff]  ;;  %v824_v20 = vld [vmem:[#allocation2 + $0xd] sm:$0xff]  ;;  %v825_v26 = vld [vmem:[#allocation2 + $0x15] sm:$0xf] }
  0x1f   : > { %1447 = vmatprep.mubr.msk.f32.mxu0 %vm1649_vm0, %v1650_v11  ;;  %1554 = vmatprep.subr.bf16.mxu0 %v1648_v3  ;;  %v723_v54 = vld [vmem:[#allocation2 + $0x3d] sm:$0xff]  ;;  %v424_v24 = vld [vmem:[#allocation2 + $0x9] sm:$0xff]  ;;  %v425_v29 = vld [vmem:[#allocation2 + $0x11] sm:$0xf] }
  0x20   : > { %1380 = vmatmul.mubr.msk.f32.gmra.mrb[2].mxu1 %vm201_vm1, %v225_v47  ;;  %1530 = vmatprep.subr.bf16.mxu1 %v1648_v3  ;;  %v323_v60 = vld [vmem:[#allocation2 + $0x1e] sm:$0xff]  ;;  %v324_v2 = vld [vmem:[#allocation2 + $0x26] sm:$0xff] }
  0x21   : > { %1448 = vmatmul.mubr.msk.f32.gmra.mrb[2].mxu0 %vm201_vm1, %v624_v49  ;;  %1532 = vmatpush3.bf16.msra.mxu1 %v1531_v48  ;;  %v724_v62 = vld [vmem:[#allocation2 + $0x45] sm:$0xff]  ;;  %v725_v5 = vld [vmem:[#allocation2 + $0x4d] sm:$0xf]  ;;  %v523_v34 = vld [vmem:[#allocation2 + $0x3c] sm:$0xff] }
  0x22   : > { %1556 = vmatpush3.bf16.msra.mxu0 %v1555_v50  ;;  %1382 = vmatprep.mubr.msk.f32.mxu1 %vm1649_vm0, %v1650_v11  ;;  %v325_v9 = vld [vmem:[#allocation2 + $0x2e] sm:$0xf]  ;;  %v423_v18 = vld [vmem:[#allocation2 + $0x1] sm:$0xff]  ;;  %v925_v38 = vld [vmem:[#allocation2 + $0x33] sm:$0xf] }
  0x23   : > { %1461 = vmatprep.mubr.msk.f32.mxu0 %vm1649_vm0, %v1650_v11  ;;  %1557 = vmatprep.subr.bf16.mxu0 %v1648_v3  ;;  %v923_v30 = vld [vmem:[#allocation2 + $0x23] sm:$0xff]  ;;  %v924_v35 = vld [vmem:[#allocation2 + $0x2b] sm:$0xff] }
  0x24   : > { %1383 = vmatmul.mubr.msk.f32.gmra.mrb[4].mxu1 %vm201_vm1, %v226_v53  ;;  %1533 = vmatprep.subr.bf16.mxu1 %v1648_v3  ;;  %v524_v37 = vld [vmem:[#allocation2 + $0x44] sm:$0xff] }
  0x25   : > { %1462 = vmatmul.mubr.msk.f32.vlgmr.msra.gmra.mrb[0].mxu0 %vm201_vm1, %v723_v54  ;;  %1393 = vmatprep.mubr.msk.f32.mxu1 %vm1649_vm0, %v1650_v11  ;;  %v1023_v39 = vld [vmem:[#allocation2 + $0x6] sm:$0xff] }
  0x26   : > { %1559 = vmatpush3.bf16.msra.mxu0 %v1558_v55  ;;  %1464 = vmatprep.mubr.msk.f32.mxu0 %vm1649_vm0, %v1650_v11  ;;  %v625_v40 = vld [vmem:[#allocation2 + $0x6a] sm:$0xf] }
  0x27   : > { %1560 = vmatprep.subr.bf16.mxu0 %v1648_v3 }
  0x28   : > { %1394 = vmatmul.mubr.msk.f32.vlgmr.msra.gmra.mrb[0].mxu1 %vm201_vm1, %v323_v60 }
  0x29   : > { %1535 = vmatpush3.bf16.msra.mxu1 %v1534_v61  ;;  %1465 = vmatmul.mubr.msk.f32.gmra.mrb[2].mxu0 %vm201_vm1, %v724_v62 }
  0x2a   : > { %1396 = vmatprep.mubr.msk.f32.mxu1 %vm1649_vm0, %v1650_v11  ;;  %1467 = vmatprep.mubr.msk.f32.mxu0 %vm1649_vm0, %v1650_v11 }
  0x2b   : > { %1562 = vmatpush3.bf16.msra.mxu0 %v1561_v1  ;;  %1536 = vmatprep.subr.bf16.mxu1 %v1648_v3 }
  0x2c   : > { %1397 = vmatmul.mubr.msk.f32.gmra.mrb[2].mxu1 %vm201_vm1, %v324_v2  ;;  %1563 = vmatprep.subr.bf16.mxu0 %v1648_v3 }
  0x2d   : > { %1468 = vmatmul.mubr.msk.f32.gmra.mrb[4].mxu0 %vm201_vm1, %v725_v5  ;;  %1538 = vmatpush3.bf16.msra.mxu1 %v1537_v4 }
  0x2e   : > { %1399 = vmatprep.mubr.msk.f32.mxu1 %vm1649_vm0, %v1650_v11  ;;  %1478 = vmatprep.mubr.msk.f32.mxu0 %vm1649_vm0, %v1650_v11 }
  0x2f   : > { %1539 = vmatprep.subr.bf16.mxu1 %v1648_v3 }
  0x30   : > { %1400 = vmatmul.mubr.msk.f32.gmra.mrb[4].mxu1 %vm201_vm1, %v325_v9 }
  0x31   : > { %1479 = vmatmul.mubr.msk.f32.vlgmr.msra.gmra.mrb[0].mxu0 %vm201_vm1, %v823_v10  ;;  %1410 = vmatprep.mubr.msk.f32.mxu1 %vm1649_vm0, %v1650_v11 }
  0x32   : > { %1565 = vmatpush3.bf16.msra.mxu0 %v1564_v12  ;;  %1481 = vmatprep.mubr.msk.f32.mxu0 %vm1649_vm0, %v1650_v11 }
  0x33   : > { %1566 = vmatprep.subr.bf16.mxu0 %v1648_v3 }
  0x34   : > { %1411 = vmatmul.mubr.msk.f32.vlgmr.msra.gmra.mrb[0].mxu1 %vm201_vm1, %v423_v18 }
  0x35   : > { %1541 = vmatpush3.bf16.msra.mxu1 %v1540_v19  ;;  %1482 = vmatmul.mubr.msk.f32.gmra.mrb[2].mxu0 %vm201_vm1, %v824_v20 }
  0x36   : > { %1413 = vmatprep.mubr.msk.f32.mxu1 %vm1649_vm0, %v1650_v11  ;;  %1484 = vmatprep.mubr.msk.f32.mxu0 %vm1649_vm0, %v1650_v11 }
  0x37   : > { %1568 = vmatpush3.bf16.msra.mxu0 %v1567_v23  ;;  %1542 = vmatprep.subr.bf16.mxu1 %v1648_v3 }
  0x38   : > { %1414 = vmatmul.mubr.msk.f32.gmra.mrb[2].mxu1 %vm201_vm1, %v424_v24  ;;  %1569 = vmatprep.subr.bf16.mxu0 %v1648_v3 }
  0x39   : > { %1485 = vmatmul.mubr.msk.f32.gmra.mrb[4].mxu0 %vm201_vm1, %v825_v26  ;;  %1544 = vmatpush3.bf16.msra.mxu1 %v1543_v25 }
  0x3a   : > { %1416 = vmatprep.mubr.msk.f32.mxu1 %vm1649_vm0, %v1650_v11  ;;  %1495 = vmatprep.mubr.msk.f32.mxu0 %vm1649_vm0, %v1650_v11 }
  0x3b   : > { %1575 = vmatprep.subr.bf16.mxu1 %v1648_v3 }
  0x3c   : > { %1417 = vmatmul.mubr.msk.f32.gmra.mrb[4].mxu1 %vm201_vm1, %v425_v29 }
  0x3d   : > { %1496 = vmatmul.mubr.msk.f32.vlgmr.msra.gmra.mrb[0].mxu0 %vm201_vm1, %v923_v30  ;;  %1427 = vmatprep.mubr.msk.f32.mxu1 %vm1649_vm0, %v1650_v11 }
  0x3e   : > { %1571 = vmatpush3.bf16.msra.mxu0 %v1570_v31  ;;  %1498 = vmatprep.mubr.msk.f32.mxu0 %vm1649_vm0, %v1650_v11 }
  0x3f   : > { %1572 = vmatprep.subr.bf16.mxu0 %v1648_v3 }
  0x40   : > { %1428 = vmatmul.mubr.msk.f32.vlgmr.msra.gmra.mrb[0].mxu1 %vm201_vm1, %v523_v34 }
  0x41   : > { %1577 = vmatpush3.bf16.msra.mxu1 %v1699_v8  ;;  %1499 = vmatmul.mubr.msk.f32.gmra.mrb[2].mxu0 %vm201_vm1, %v924_v35  ;;  %v525_v8 = vld [vmem:[#allocation2 + $0x4c] sm:$0xf] }
  0x42   : > { %1430 = vmatprep.mubr.msk.f32.mxu1 %vm1649_vm0, %v1650_v11  ;;  %1501 = vmatprep.mubr.msk.f32.mxu0 %vm1649_vm0, %v1650_v11 }
  0x43   : > { %1574 = vmatpush3.bf16.msra.mxu0 %v1573_v36  ;;  %1576 = vmatprep.subr.bf16.mxu1 %v1648_v3  ;;  %v1024_v3 = vld [vmem:[#allocation2 + $0xe] sm:$0xff] }
  0x44   : > { %1431 = vmatmul.mubr.msk.f32.gmra.mrb[2].mxu1 %vm201_vm1, %v524_v37 }
  0x45   : > { %1502 = vmatmul.mubr.msk.f32.gmra.mrb[4].mxu0 %vm201_vm1, %v925_v38  ;;  %1433 = vmatprep.mubr.msk.f32.mxu1 %vm1649_vm0, %v1650_v11 }
  0x46   : > { %1512 = vmatprep.mubr.msk.f32.mxu0 %vm1649_vm0, %v1650_v11  ;;  %1578 = vmatpush3.bf16.msra.mxu1 %v1715_v13  ;;  %v1025_v13 = vld [vmem:[#allocation2 + $0x16] sm:$0xf] }
  0x48   : > { %1434 = vmatmul.mubr.msk.f32.gmra.mrb[4].mxu1 %vm201_vm1, %v525_v8 }
  0x49   : > { %1513 = vmatmul.mubr.msk.f32.vlgmr.msra.gmra.mrb[0].mxu0 %vm201_vm1, %v1023_v39  ;;  %1450 = vmatprep.mubr.msk.f32.mxu1 %vm1649_vm0, %v1650_v11 }
  0x4a   : > { %1515 = vmatprep.mubr.msk.f32.mxu0 %vm1649_vm0, %v1650_v11 }
  0x4d   : > { %1516 = vmatmul.mubr.msk.f32.gmra.mrb[2].mxu0 %vm201_vm1, %v1024_v3 }
  0x4e   : > { %1518 = vmatprep.mubr.msk.f32.mxu0 %vm1649_vm0, %v1650_v11 }
  0x50   : > { %1451 = vmatmul.mubr.msk.f32.vlgmr.msra.gmra.mrb[4].mxu1 %vm201_vm1, %v625_v40 }
  0x51   : > { %1519 = vmatmul.mubr.msk.f32.gmra.mrb[4].mxu0 %vm201_vm1, %v1025_v13 }
 0x113   : > { %v606_v41 = vpop.f32.mrb[0].mxu1 }
 0x114   : > { %v1429_v42 = vpop.f32.mrb[1].mxu1  ;;  %v1579_v46 = vadd.f32 %v1203_v44, %v606_v41 }
 0x117   : > { %v611_v43 = vpop.f32.mrb[2].mxu1 }
 0x118   : > { %v1432_v45 = vpop.f32.mrb[3].mxu1  ;;  %v1581_v11 = vadd.f32 %v1203_v44, %v611_v43 }
 0x11c   : > { %v1106_v47 = vpop.f32.mrb[0].mxu0 }
 0x11d   : > { %v1580_v48 = vadd.f32 %v1579_v46, %v1106_v47  ;;  %v1514_v49 = vpop.f32.mrb[1].mxu0 }
 0x11f   : > { %v1268_v50 = vpack.c.bf16 %v1580_v48, %v1580_v48 }
 0x120   : > { %v1111_v51 = vpop.f32.mrb[2].mxu0 }
 0x121   : > { %1137 = vst.msk [vmem:[%s170_s20] sm:$0xf] %vm1136_vm2, %v1268_v50  ;;  %v1582_v52 = vadd.f32 %v1581_v11, %v1111_v51  ;;  %v1517_v53 = vpop.f32.mrb[3].mxu0 }
 0x123   : > { %v1269_v54 = vpack.c.bf16 %v1582_v52, %v1582_v52  ;;  %v716_v55 = vpop.f32.mrb[4].mxu1 }
 0x124   : > { %v1583_v56 = vadd.f32 %v1203_v44, %v716_v55  ;;  %v1116_v57 = vpop.f32.mrb[4].mxu0  ;;  %v1452_v58 = vpop.f32.mrb[5].mxu1 }
 0x125   : > { %1138 = vst.msk [vmem:[%s170_s20 + $0x4] sm:$0xf] %vm1136_vm2, %v1269_v54  ;;  %v1520_v59 = vpop.f32.mrb[5].mxu0 }
 0x126   : > { %v1584_v60 = vadd.f32 %v1583_v56, %v1116_v57 }
 0x128   : > { %v1270_v61 = vpack.c.bf16 %v1584_v60, %v1584_v60 }
 0x12a   : > { %1140 = vst.msk [vmem:[%s170_s20 + $0x8] sm:$0x3] %vm1139_vm3, %v1270_v61 }
 0x12b PF: > { %s13_s12 = sadd.s32 1, %s1646_s12  }
 0x12c   : > { %p10_p4 = scmp.ge.s32.totalorder %s13_s12, 6  }
 0x12e   :  { %12 = sbr.rel (!%p10_p4) target bundleno = 1 (0x1), region = 70 }

// kernel: image_encoder_forward.6
= control target key start
LH: loop header
LB: loop body
LE: loop exit
PB: predicated region body
PF: predicated region fallthrough
CT: control target
= control target key end

     0   :  { %s1521_s12 = smov 0   ;;  %s1830_s0 = inlined_call_operand.vmem [shape: bf16[4,48,64], index: 0, kind: input, shape index: {}]   ;;  %s1831_s1 = inlined_call_operand.vmem [shape: f32[9,64,128], index: 1, kind: input, shape index: {}]   ;;  %s1832_s2 = inlined_call_operand.vmem [shape: f32[1,128], index: 2, kind: input, shape index: {}]   ;;  %s1833_s3 = inlined_call_operand.vmem [shape: bf16[4,6,128], index: 3, kind: output, shape index: {}]  }
   0x1 LB: > { %s1005_s13 = sadd.s32 4294967295, %s1496_s12   ;;  %p1009_p0 = scmp.ge.s32.totalorder %s1496_s12, 1  ;;  %s1496_s12 = sphi %s1521_s12, %s13_s12  }
   0x2   : > { %p137_p1 = scmp.lt.s32.totalorder %s1496_s12, 5 }
   0x4   : > { %p138_p2 = pnand %p1009_p0, %p137_p1 }
   0x5   : > { %v196_v0 = vld [vmem:[%s1831_s1] sm:$0xff] (!%p138_p2)  ;;  %v197_v1 = vld [vmem:[%s1831_s1 + $0x8] sm:$0xff] (!%p138_p2)  ;;  %v1498_v3 = vmov (!%p138_p2), 0.0|0.0   ;;  %v198_v6 = vld [vmem:[%s1831_s1 + $0x10] sm:$0xff] (!%p138_p2)  ;;  %p160_p3 = scmp.lt.s32.totalorder (!%p138_p2), %s1005_s13, 3  ;;  %vm1499_vm0 = vmmov (!%p138_p2), 0  }
   0x6   : > { %141 = sbr.rel (%p138_p2) target bundleno = 310 (0x136), region = 32  ;;  %v1041_v2 = vld [vmem:[%s1831_s1 + $0x100] sm:$0xff] (!%p138_p2)  ;;  %1354 = vmatprep.subr.bf16.mxu1 (!%p138_p2), %v1498_v3  ;;  %1402 = vmatprep.subr.bf16.mxu0 (!%p138_p2), %v1498_v3  ;;  %v1355_v4 = vpack.c.bf16 (!%p138_p2), %v197_v1, %v196_v0  ;;  %v1042_v5 = vld [vmem:[%s1831_s1 + $0x108] sm:$0xff] (!%p138_p2)  ;;  %v199_v7 = vld [vmem:[%s1831_s1 + $0x18] sm:$0xff] (!%p138_p2)  ;;  %v1500_v11 = vmov (!%p138_p2), 0.0   ;;  %vm181_vm1 = vcmask (!%p138_p2), 523264  }
   0x7   : > { %v1403_v8 = vpack.c.bf16 (!%p138_p2), %v1042_v5, %v1041_v2  ;;  %v1043_v9 = vld [vmem:[%s1831_s1 + $0x110] sm:$0xff] (!%p138_p2)  ;;  %v1044_v10 = vld [vmem:[%s1831_s1 + $0x118] sm:$0xff] (!%p138_p2)  ;;  %1199 = vmatprep.mubr.msk.f32.mxu1 (!%p138_p2), %vm1499_vm0, %v1500_v11  ;;  %1275 = vmatprep.mubr.msk.f32.mxu0 (!%p138_p2), %vm1499_vm0, %v1500_v11  ;;  %v1358_v12 = vpack.c.bf16 (!%p138_p2), %v199_v7, %v198_v6  ;;  %v200_v14 = vld [vmem:[%s1831_s1 + $0x20] sm:$0xff] (!%p138_p2) }
   0x8   : > { %1356 = vmatpush3.bf16.msra.mxu1 (!%p138_p2), %v1355_v4  ;;  %v1406_v13 = vpack.c.bf16 (!%p138_p2), %v1044_v10, %v1043_v9  ;;  %v201_v15 = vld [vmem:[%s1831_s1 + $0x28] sm:$0xff] (!%p138_p2)  ;;  %v1045_v16 = vld [vmem:[%s1831_s1 + $0x120] sm:$0xff] (!%p138_p2)  ;;  %v202_v19 = vld [vmem:[%s1831_s1 + $0x30] sm:$0xff] (!%p138_p2) }
   0x9   : > { %1404 = vmatpush3.bf16.msra.mxu0 (!%p138_p2), %v1403_v8  ;;  %1357 = vmatprep.subr.bf16.mxu1 (!%p138_p2), %v1498_v3  ;;  %v1046_v17 = vld [vmem:[%s1831_s1 + $0x128] sm:$0xff] (!%p138_p2)  ;;  %v1361_v18 = vpack.c.bf16 (!%p138_p2), %v201_v15, %v200_v14  ;;  %v203_v21 = vld [vmem:[%s1831_s1 + $0x38] sm:$0xff] (!%p138_p2)  ;;  %v1047_v24 = vld [vmem:[%s1831_s1 + $0x130] sm:$0xff] (!%p138_p2) }
   0xa   : > { %1405 = vmatprep.subr.bf16.mxu0 (!%p138_p2), %v1498_v3  ;;  %v1409_v20 = vpack.c.bf16 (!%p138_p2), %v1046_v17, %v1045_v16  ;;  %v1048_v25 = vld [vmem:[%s1831_s1 + $0x138] sm:$0xff] (!%p138_p2)  ;;  %v1364_v30 = vpack.c.bf16 (!%p138_p2), %v203_v21, %v202_v19  ;;  %v1014_v33 = vld [vmem:[%s1831_s1 + $0x40] sm:$0xff] (!%p138_p2)  ;;  %v1015_v36 = vld [vmem:[%s1831_s1 + $0x48] sm:$0xff] (!%p138_p2) }
   0xb   : > { %v1412_v32 = vpack.c.bf16 (!%p138_p2), %v1048_v25, %v1047_v24  ;;  %v1050_v37 = vld [vmem:[%s1831_s1 + $0x140] sm:$0xff] (!%p138_p2)  ;;  %v1051_v38 = vld [vmem:[%s1831_s1 + $0x148] sm:$0xff] (!%p138_p2)  ;;  %v1367_v39 = vpack.c.bf16 (!%p138_p2), %v1015_v36, %v1014_v33  ;;  %v1016_v41 = vld [vmem:[%s1831_s1 + $0x50] sm:$0xff] (!%p138_p2) }
   0xc   : > { %1359 = vmatpush3.bf16.msra.mxu1 (!%p138_p2), %v1358_v12  ;;  %v1415_v40 = vpack.c.bf16 (!%p138_p2), %v1051_v38, %v1050_v37  ;;  %v1017_v42 = vld [vmem:[%s1831_s1 + $0x58] sm:$0xff] (!%p138_p2)  ;;  %v1052_v43 = vld [vmem:[%s1831_s1 + $0x150] sm:$0xff] (!%p138_p2)  ;;  %v1018_v49 = vld [vmem:[%s1831_s1 + $0x60] sm:$0xff] (!%p138_p2) }
   0xd   : > { %s1835_s13 = smov (!%p160_p3, %s1005_s13), 3  ;;  %1407 = vmatpush3.bf16.msra.mxu0 %v1406_v13  ;;  %1360 = vmatprep.subr.bf16.mxu1 %v1498_v3  ;;  %v1053_v44 = vld [vmem:[%s1831_s1 + $0x158] sm:$0xff]  ;;  %v1370_v47 = vpack.c.bf16 %v1017_v42, %v1016_v41  ;;  %v1019_v50 = vld [vmem:[%s1831_s1 + $0x68] sm:$0xff]  ;;  %v1054_v51 = vld [vmem:[%s1831_s1 + $0x160] sm:$0xff] }
   0xe   : > { %s1478_s11 = smul.u32 24, %s1835_s13  ;;  %1408 = vmatprep.subr.bf16.mxu0 %v1498_v3  ;;  %v1418_v48 = vpack.c.bf16 %v1053_v44, %v1052_v43  ;;  %v1055_v52 = vld [vmem:[%s1831_s1 + $0x168] sm:$0xff]  ;;  %v1373_v53 = vpack.c.bf16 %v1019_v50, %v1018_v49  ;;  %v1020_v55 = vld [vmem:[%s1831_s1 + $0x70] sm:$0xff]  ;;  %v1021_v56 = vld [vmem:[%s1831_s1 + $0x78] sm:$0xff]  ;;  %s1011_s14 = sshll.u32 %s1835_s13, 2 }
   0xf   : > { %v1421_v54 = vpack.c.bf16 %v1055_v52, %v1054_v51  ;;  %v1056_v57 = vld [vmem:[%s1831_s1 + $0x170] sm:$0xff]  ;;  %v1057_v58 = vld [vmem:[%s1831_s1 + $0x178] sm:$0xff]  ;;  %v1376_v59 = vpack.c.bf16 %v1021_v56, %v1020_v55  ;;  %v1023_v61 = vld [vmem:[%s1831_s1 + $0x80] sm:$0xff]  ;;  %s168_s17 = scalar_lea.vmem %s1833_s3, %s1011_s14 }
  0x10   : > { %s164_s18 = scalar_lea.vmem %s1830_s0, %s1478_s11  ;;  %1362 = vmatpush3.bf16.msra.mxu1 %v1361_v18  ;;  %v1424_v60 = vpack.c.bf16 %v1057_v58, %v1056_v57  ;;  %v1024_v62 = vld [vmem:[%s1831_s1 + $0x88] sm:$0xff]  ;;  %v1059_v63 = vld [vmem:[%s1831_s1 + $0x180] sm:$0xff]  ;;  %v1025_v6 = vld [vmem:[%s1831_s1 + $0x90] sm:$0xff] }
  0x11   : > { %v1089_v22 = vld [vmem:[%s164_s18] sm:$0xff]   ;;  %v1101_v23 = vld [vmem:[%s164_s18 + $0x10] sm:$0xff]   ;;  %v1100_v31 = vld [vmem:[%s164_s18 + $0x8] sm:$0xff]   ;;  %1410 = vmatpush3.bf16.msra.mxu0 %v1409_v20  ;;  %1363 = vmatprep.subr.bf16.mxu1 %v1498_v3  ;;  %v1379_v2 = vpack.c.bf16 %v1024_v62, %v1023_v61 }
  0x12   : > { %v1090_v26 = vunpack.c.l.bf16 %v1089_v22  ;;  %v1091_v27 = vunpack.c.h.bf16 %v1089_v22  ;;  %v1098_v28 = vunpack.c.l.bf16 %v1101_v23  ;;  %v1099_v29 = vunpack.c.h.bf16 %v1101_v23  ;;  %1411 = vmatprep.subr.bf16.mxu0 %v1498_v3  ;;  %v1060_v0 = vld [vmem:[%s1831_s1 + $0x188] sm:$0xff]  ;;  %v1026_v7 = vld [vmem:[%s1831_s1 + $0x98] sm:$0xff]  ;;  %v1061_v8 = vld [vmem:[%s1831_s1 + $0x190] sm:$0xff] }
  0x13   : > { %v1094_v34 = vunpack.c.l.bf16 %v1100_v31  ;;  %v1095_v35 = vunpack.c.h.bf16 %v1100_v31  ;;  %v1427_v5 = vpack.c.bf16 %v1060_v0, %v1059_v63  ;;  %v1062_v9 = vld [vmem:[%s1831_s1 + $0x198] sm:$0xff]  ;;  %v1382_v10 = vpack.c.bf16 %v1026_v7, %v1025_v6  ;;  %v1027_v13 = vld [vmem:[%s1831_s1 + $0xa0] sm:$0xff]  ;;  %v1028_v14 = vld [vmem:[%s1831_s1 + $0xa8] sm:$0xff] }
  0x14   : > { %182 = vst.msk [vmem:[#allocation2] sm:$0xff] %vm181_vm1, %v1090_v26  ;;  %183 = vst.msk [vmem:[#allocation2 + $0x8] sm:$0xff] %vm181_vm1, %v1091_v27  ;;  %1365 = vmatpush3.bf16.msra.mxu1 %v1364_v30  ;;  %v1430_v12 = vpack.c.bf16 %v1062_v9, %v1061_v8  ;;  %v1063_v15 = vld [vmem:[%s1831_s1 + $0x1a0] sm:$0xff]  ;;  %v1064_v16 = vld [vmem:[%s1831_s1 + $0x1a8] sm:$0xff]  ;;  %v1385_v17 = vpack.c.bf16 %v1028_v14, %v1027_v13 }
  0x15   : > { %186 = vst.msk [vmem:[#allocation2 + $0x20] sm:$0xff] %vm181_vm1, %v1098_v28  ;;  %187 = vst.msk [vmem:[#allocation2 + $0x28] sm:$0xff] %vm181_vm1, %v1099_v29  ;;  %1413 = vmatpush3.bf16.msra.mxu0 %v1412_v32  ;;  %1366 = vmatprep.subr.bf16.mxu1 %v1498_v3  ;;  %v1433_v18 = vpack.c.bf16 %v1064_v16, %v1063_v15  ;;  %v1029_v19 = vld [vmem:[%s1831_s1 + $0xb0] sm:$0xff]  ;;  %v1030_v20 = vld [vmem:[%s1831_s1 + $0xb8] sm:$0xff] }
  0x16   : > { %184 = vst.msk [vmem:[#allocation2 + $0x10] sm:$0xff] %vm181_vm1, %v1094_v34  ;;  %185 = vst.msk [vmem:[#allocation2 + $0x18] sm:$0xff] %vm181_vm1, %v1095_v35  ;;  %1414 = vmatprep.subr.bf16.mxu0 %v1498_v3  ;;  %v1065_v21 = vld [vmem:[%s1831_s1 + $0x1b0] sm:$0xff]  ;;  %v1066_v22 = vld [vmem:[%s1831_s1 + $0x1b8] sm:$0xff]  ;;  %v1388_v23 = vpack.c.bf16 %v1030_v20, %v1029_v19 }
  0x17   : > { %v1436_v24 = vpack.c.bf16 %v1066_v22, %v1065_v21  ;;  %v1032_v25 = vld [vmem:[%s1831_s1 + $0xc0] sm:$0xff]  ;;  %v1033_v26 = vld [vmem:[%s1831_s1 + $0xc8] sm:$0xff]  ;;  %v1034_v33 = vld [vmem:[%s1831_s1 + $0xd0] sm:$0xff] }
  0x18   : > { %v1068_v27 = vld [vmem:[%s1831_s1 + $0x1c0] sm:$0xff]  ;;  %v1069_v28 = vld [vmem:[%s1831_s1 + $0x1c8] sm:$0xff]  ;;  %v1391_v30 = vpack.c.bf16 %v1033_v26, %v1032_v25  ;;  %v1035_v34 = vld [vmem:[%s1831_s1 + $0xd8] sm:$0xff] }
  0x19   : > { %v1439_v32 = vpack.c.bf16 %v1069_v28, %v1068_v27  ;;  %v1070_v35 = vld [vmem:[%s1831_s1 + $0x1d0] sm:$0xff]  ;;  %v1071_v36 = vld [vmem:[%s1831_s1 + $0x1d8] sm:$0xff]  ;;  %v1394_v37 = vpack.c.bf16 %v1035_v34, %v1034_v33  ;;  %v1072_v41 = vld [vmem:[%s1831_s1 + $0x1e0] sm:$0xff] }
  0x1a   : > { %v1442_v38 = vpack.c.bf16 %v1071_v36, %v1070_v35  ;;  %v1073_v42 = vld [vmem:[%s1831_s1 + $0x1e8] sm:$0xff]  ;;  %v1077_v51 = vld [vmem:[%s1831_s1 + $0x200] sm:$0xff]  ;;  %v1079_v56 = vld [vmem:[%s1831_s1 + $0x210] sm:$0xff] }
  0x1b   : > { %v195_v45 = vld [vmem:[#allocation2] sm:$0x3f]  ;;  %v1445_v44 = vpack.c.bf16 %v1073_v42, %v1072_v41  ;;  %v1078_v52 = vld [vmem:[%s1831_s1 + $0x208] sm:$0xff]  ;;  %v1080_v57 = vld [vmem:[%s1831_s1 + $0x218] sm:$0xff] }
  0x1c   : > { %v530_v46 = vld [vmem:[#allocation2 + $0x24] sm:$0x3f]  ;;  %1200 = vmatmul.mubr.msk.f32.vlgmr.msra.gmra.mrb[0].mxu1 %vm181_vm1, %v195_v45  ;;  %v1038_v45 = vld [vmem:[%s1831_s1 + $0xf0] sm:$0xff]  ;;  %v1451_v55 = vpack.c.bf16 %v1078_v52, %v1077_v51  ;;  %v1454_v58 = vpack.c.bf16 %v1080_v57, %v1079_v56 }
  0x1d   : > { %1276 = vmatmul.mubr.msk.f32.vlgmr.msra.gmra.mrb[0].mxu0 %vm181_vm1, %v530_v46  ;;  %1368 = vmatpush3.bf16.msra.mxu1 %v1367_v39  ;;  %v278_v1 = vld [vmem:[#allocation2 + $0xc] sm:$0x3f]  ;;  %v614_v4 = vld [vmem:[#allocation2 + $0x19] sm:$0x3f]  ;;  %v362_v29 = vld [vmem:[#allocation2 + $0x1] sm:$0x3f] }
  0x1e   : > { %1416 = vmatpush3.bf16.msra.mxu0 %v1415_v40  ;;  %1369 = vmatprep.subr.bf16.mxu1 %v1498_v3  ;;  %v698_v31 = vld [vmem:[#allocation2 + $0x3] sm:$0x3f]  ;;  %v1039_v46 = vld [vmem:[%s1831_s1 + $0xf8] sm:$0xff]  ;;  %v1083_v62 = vld [vmem:[%s1831_s1 + $0x230] sm:$0xff] }
  0x1f   : > { %1417 = vmatprep.subr.bf16.mxu0 %v1498_v3  ;;  %1218 = vmatprep.mubr.msk.f32.mxu1 %vm1499_vm0, %v1500_v11  ;;  %v1036_v39 = vld [vmem:[%s1831_s1 + $0xe0] sm:$0xff]  ;;  %v1037_v40 = vld [vmem:[%s1831_s1 + $0xe8] sm:$0xff]  ;;  %v1400_v49 = vpack.c.bf16 %v1039_v46, %v1038_v45 }
  0x20   : > { %1294 = vmatprep.mubr.msk.f32.mxu0 %vm1499_vm0, %v1500_v11  ;;  %v1397_v43 = vpack.c.bf16 %v1037_v40, %v1036_v39  ;;  %v866_v0 = vld [vmem:[#allocation2 + $0x4] sm:$0x3f] }
  0x21   : > { %1371 = vmatpush3.bf16.msra.mxu1 %v1370_v47  ;;  %v1074_v47 = vld [vmem:[%s1831_s1 + $0x1f0] sm:$0xff] }
  0x22   : > { %1419 = vmatpush3.bf16.msra.mxu0 %v1418_v48  ;;  %1372 = vmatprep.subr.bf16.mxu1 %v1498_v3  ;;  %v1075_v48 = vld [vmem:[%s1831_s1 + $0x1f8] sm:$0xff] }
  0x23   : > { %1420 = vmatprep.subr.bf16.mxu0 %v1498_v3  ;;  %v1448_v50 = vpack.c.bf16 %v1075_v48, %v1074_v47 }
  0x25   : > { %1374 = vmatpush3.bf16.msra.mxu1 %v1373_v53  ;;  %v446_v53 = vld [vmem:[#allocation2 + $0x18] sm:$0x3f] }
  0x26   : > { %1422 = vmatpush3.bf16.msra.mxu0 %v1421_v54  ;;  %1375 = vmatprep.subr.bf16.mxu1 %v1498_v3  ;;  %v782_v54 = vld [vmem:[#allocation2 + $0xf] sm:$0x3f] }
  0x27   : > { %1423 = vmatprep.subr.bf16.mxu0 %v1498_v3 }
  0x29   : > { %1377 = vmatpush3.bf16.msra.mxu1 %v1376_v59  ;;  %v1081_v59 = vld [vmem:[%s1831_s1 + $0x220] sm:$0xff] }
  0x2a   : > { %1425 = vmatpush3.bf16.msra.mxu0 %v1424_v60  ;;  %1378 = vmatprep.subr.bf16.mxu1 %v1498_v3  ;;  %v1082_v60 = vld [vmem:[%s1831_s1 + $0x228] sm:$0xff] }
  0x2b   : > { %1426 = vmatprep.subr.bf16.mxu0 %v1498_v3  ;;  %v1457_v61 = vpack.c.bf16 %v1082_v60, %v1081_v59 }
  0x2c   : > { %1219 = vmatmul.mubr.msk.f32.vlgmr.msra.gmra.mrb[0].mxu1 %vm181_vm1, %v278_v1 }
  0x2d   : > { %1295 = vmatmul.mubr.msk.f32.vlgmr.msra.gmra.mrb[0].mxu0 %vm181_vm1, %v614_v4  ;;  %1380 = vmatpush3.bf16.msra.mxu1 %v1379_v2  ;;  %v1012_v4 = vld [vmem:[%s1832_s2] ss:$0 sm:$0xff] }
  0x2e   : > { %1428 = vmatpush3.bf16.msra.mxu0 %v1427_v5  ;;  %1381 = vmatprep.subr.bf16.mxu1 %v1498_v3 }
  0x2f   : > { %1429 = vmatprep.subr.bf16.mxu0 %v1498_v3  ;;  %1237 = vmatprep.mubr.msk.f32.mxu1 %vm1499_vm0, %v1500_v11 }
  0x30   : > { %1313 = vmatprep.mubr.msk.f32.mxu0 %vm1499_vm0, %v1500_v11 }
  0x31   : > { %1383 = vmatpush3.bf16.msra.mxu1 %v1382_v10 }
  0x32   : > { %1431 = vmatpush3.bf16.msra.mxu0 %v1430_v12  ;;  %1384 = vmatprep.subr.bf16.mxu1 %v1498_v3 }
  0x33   : > { %1432 = vmatprep.subr.bf16.mxu0 %v1498_v3 }
  0x35   : > { %1386 = vmatpush3.bf16.msra.mxu1 %v1385_v17 }
  0x36   : > { %1434 = vmatpush3.bf16.msra.mxu0 %v1433_v18  ;;  %1387 = vmatprep.subr.bf16.mxu1 %v1498_v3 }
  0x37   : > { %1435 = vmatprep.subr.bf16.mxu0 %v1498_v3 }
  0x39   : > { %1389 = vmatpush3.bf16.msra.mxu1 %v1388_v23 }
  0x3a   : > { %1437 = vmatpush3.bf16.msra.mxu0 %v1436_v24  ;;  %1390 = vmatprep.subr.bf16.mxu1 %v1498_v3 }
  0x3b   : > { %1438 = vmatprep.subr.bf16.mxu0 %v1498_v3 }
  0x3c   : > { %1238 = vmatmul.mubr.msk.f32.vlgmr.msra.gmra.mrb[0].mxu1 %vm181_vm1, %v362_v29 }
  0x3d   : > { %1314 = vmatmul.mubr.msk.f32.vlgmr.msra.gmra.mrb[0].mxu0 %vm181_vm1, %v698_v31  ;;  %1392 = vmatpush3.bf16.msra.mxu1 %v1391_v30 }
  0x3e   : > { %1440 = vmatpush3.bf16.msra.mxu0 %v1439_v32  ;;  %1393 = vmatprep.subr.bf16.mxu1 %v1498_v3 }
  0x3f   : > { %1441 = vmatprep.subr.bf16.mxu0 %v1498_v3  ;;  %1256 = vmatprep.mubr.msk.f32.mxu1 %vm1499_vm0, %v1500_v11 }
  0x40   : > { %1332 = vmatprep.mubr.msk.f32.mxu0 %vm1499_vm0, %v1500_v11 }
  0x41   : > { %1395 = vmatpush3.bf16.msra.mxu1 %v1394_v37 }
  0x42   : > { %1443 = vmatpush3.bf16.msra.mxu0 %v1442_v38  ;;  %1396 = vmatprep.subr.bf16.mxu1 %v1498_v3 }
  0x43   : > { %1444 = vmatprep.subr.bf16.mxu0 %v1498_v3 }
  0x45   : > { %1398 = vmatpush3.bf16.msra.mxu1 %v1397_v43 }
  0x46   : > { %1446 = vmatpush3.bf16.msra.mxu0 %v1445_v44  ;;  %1399 = vmatprep.subr.bf16.mxu1 %v1498_v3 }
  0x47   : > { %1447 = vmatprep.subr.bf16.mxu0 %v1498_v3 }
  0x49   : > { %1401 = vmatpush3.bf16.msra.mxu1 %v1400_v49 }
  0x4a   : > { %1449 = vmatpush3.bf16.msra.mxu0 %v1448_v50 }
  0x4b   : > { %1450 = vmatprep.subr.bf16.mxu0 %v1498_v3 }
  0x4c   : > { %1257 = vmatmul.mubr.msk.f32.vlgmr.msra.gmra.mrb[0].mxu1 %vm181_vm1, %v446_v53 }
  0x4d   : > { %1333 = vmatmul.mubr.msk.f32.vlgmr.msra.gmra.mrb[0].mxu0 %vm181_vm1, %v782_v54 }
  0x4e   : > { %1452 = vmatpush3.bf16.msra.mxu0 %v1451_v55  ;;  %1351 = vmatprep.mubr.msk.f32.mxu0 %vm1499_vm0, %v1500_v11  ;;  %v1084_v11 = vld [vmem:[%s1831_s1 + $0x238] sm:$0xff] }
  0x4f   : > { %1453 = vmatprep.subr.bf16.mxu0 %v1498_v3  ;;  %v1460_v63 = vpack.c.bf16 %v1084_v11, %v1083_v62 }
  0x52   : > { %1455 = vmatpush3.bf16.msra.mxu0 %v1454_v58 }
  0x53   : > { %1456 = vmatprep.subr.bf16.mxu0 %v1498_v3 }
  0x56   : > { %1458 = vmatpush3.bf16.msra.mxu0 %v1457_v61 }
  0x57   : > { %1459 = vmatprep.subr.bf16.mxu0 %v1498_v3 }
  0x5a   : > { %1461 = vmatpush3.bf16.msra.mxu0 %v1460_v63 }
  0x5d   : > { %1352 = vmatmul.mubr.msk.f32.vlgmr.msra.gmra.mrb[0].mxu0 %vm181_vm1, %v866_v0 }
 0x11f   : > { %v525_v1 = vpop.f32.mrb[0].mxu1 }
 0x120   : > { %v1258_v2 = vpop.f32.mrb[1].mxu1  ;;  %v1462_v5 = vadd.f32 %v1012_v4, %v525_v1 }
 0x130   : > { %v945_v6 = vpop.f32.mrb[0].mxu0 }
 0x131   : > { %v1463_v7 = vadd.f32 %v1462_v5, %v945_v6  ;;  %v1353_v8 = vpop.f32.mrb[1].mxu0 }
 0x133   : > { %v950_v3 = vpack.c.bf16 %v1463_v7, %v1463_v7 }
 0x135   : > { %951 = vst [vmem:[%s168_s17] sm:$0x7] %v950_v3 }
 0x136 PF: > { %s13_s12 = sadd.s32 1, %s1496_s12  }
 0x137   : > { %p10_p4 = scmp.ge.s32.totalorder %s13_s12, 6  }
 0x139   :  { %12 = sbr.rel (!%p10_p4) target bundleno = 1 (0x1), region = 70 }

// kernel: image_encoder_forward.7
= control target key start
LH: loop header
LB: loop body
LE: loop exit
PB: predicated region body
PF: predicated region fallthrough
CT: control target
= control target key end

     0   :  { %s1925_s12 = smov 0   ;;  %s2471_s0 = inlined_call_operand.vmem [shape: bf16[4,24,128], index: 0, kind: input, shape index: {}]   ;;  %s2472_s1 = inlined_call_operand.vmem [shape: f32[9,128,8], index: 1, kind: input, shape index: {}]   ;;  %s2473_s2 = inlined_call_operand.vmem [shape: f32[1,8], index: 2, kind: input, shape index: {}]   ;;  %s2474_s3 = inlined_call_operand.vmem [shape: f32[4,2,8], index: 3, kind: output, shape index: {}]  }
   0x1 LB: > { %s1040_s13 = sadd.s32 4294967295, %s1900_s12   ;;  %p1044_p0 = scmp.ge.s32.totalorder %s1900_s12, 1  ;;  %s1900_s12 = sphi %s1925_s12, %s13_s12  }
   0x2   : > { %p137_p1 = scmp.lt.s32.totalorder %s1900_s12, 5 }
   0x4   : > { %p138_p2 = pnand %p1044_p0, %p137_p1 }
   0x5   : > { %v186_v0 = vld [vmem:[%s2472_s1] sm:$0xff] (!%p138_p2)  ;;  %v187_v1 = vld [vmem:[%s2472_s1 + $0x8] sm:$0xff] (!%p138_p2)  ;;  %v1902_v3 = vmov (!%p138_p2), 0.0|0.0   ;;  %v188_v6 = vld [vmem:[%s2472_s1 + $0x10] sm:$0xff] (!%p138_p2)  ;;  %p160_p3 = scmp.lt.s32.totalorder (!%p138_p2), %s1040_s13, 3  ;;  %vm1903_vm0 = vmmov (!%p138_p2), 0  }
   0x6   : > { %141 = sbr.rel (%p138_p2) target bundleno = 383 (0x17f), region = 32  ;;  %v1096_v2 = vld [vmem:[%s2472_s1 + $0x200] sm:$0xff] (!%p138_p2)  ;;  %1650 = vmatprep.subr.bf16.mxu1 (!%p138_p2), %v1902_v3  ;;  %1746 = vmatprep.subr.bf16.mxu0 (!%p138_p2), %v1902_v3  ;;  %v1651_v4 = vpack.c.bf16 (!%p138_p2), %v187_v1, %v186_v0  ;;  %v1097_v5 = vld [vmem:[%s2472_s1 + $0x208] sm:$0xff] (!%p138_p2)  ;;  %v189_v7 = vld [vmem:[%s2472_s1 + $0x18] sm:$0xff] (!%p138_p2)  ;;  %v1904_v11 = vmov (!%p138_p2), 0.0   ;;  %vm985_vm1 = vcmask (!%p138_p2), 58368  }
   0x7   : > { %v1747_v8 = vpack.c.bf16 (!%p138_p2), %v1097_v5, %v1096_v2  ;;  %v1098_v9 = vld [vmem:[%s2472_s1 + $0x210] sm:$0xff] (!%p138_p2)  ;;  %v1099_v10 = vld [vmem:[%s2472_s1 + $0x218] sm:$0xff] (!%p138_p2)  ;;  %1367 = vmatprep.mubr.msk.f32.mxu1 (!%p138_p2), %vm1903_vm0, %v1904_v11  ;;  %1507 = vmatprep.mubr.msk.f32.mxu0 (!%p138_p2), %vm1903_vm0, %v1904_v11  ;;  %v1654_v12 = vpack.c.bf16 (!%p138_p2), %v189_v7, %v188_v6  ;;  %v190_v14 = vld [vmem:[%s2472_s1 + $0x20] sm:$0xff] (!%p138_p2) }
   0x8   : > { %1652 = vmatpush3.bf16.msra.mxu1 (!%p138_p2), %v1651_v4  ;;  %v1750_v13 = vpack.c.bf16 (!%p138_p2), %v1099_v10, %v1098_v9  ;;  %v191_v15 = vld [vmem:[%s2472_s1 + $0x28] sm:$0xff] (!%p138_p2)  ;;  %v1100_v16 = vld [vmem:[%s2472_s1 + $0x220] sm:$0xff] (!%p138_p2)  ;;  %v192_v20 = vld [vmem:[%s2472_s1 + $0x30] sm:$0xff] (!%p138_p2) }
   0x9   : > { %1748 = vmatpush3.bf16.msra.mxu0 (!%p138_p2), %v1747_v8  ;;  %1653 = vmatprep.subr.bf16.mxu1 (!%p138_p2), %v1902_v3  ;;  %v1101_v17 = vld [vmem:[%s2472_s1 + $0x228] sm:$0xff] (!%p138_p2)  ;;  %v1657_v18 = vpack.c.bf16 (!%p138_p2), %v191_v15, %v190_v14  ;;  %v193_v21 = vld [vmem:[%s2472_s1 + $0x38] sm:$0xff] (!%p138_p2)  ;;  %v1102_v22 = vld [vmem:[%s2472_s1 + $0x230] sm:$0xff] (!%p138_p2) }
   0xa   : > { %1749 = vmatprep.subr.bf16.mxu0 (!%p138_p2), %v1902_v3  ;;  %v1753_v19 = vpack.c.bf16 (!%p138_p2), %v1101_v17, %v1100_v16  ;;  %v1103_v23 = vld [vmem:[%s2472_s1 + $0x238] sm:$0xff] (!%p138_p2)  ;;  %v1660_v25 = vpack.c.bf16 (!%p138_p2), %v193_v21, %v192_v20  ;;  %v194_v30 = vld [vmem:[%s2472_s1 + $0x40] sm:$0xff] (!%p138_p2)  ;;  %v195_v31 = vld [vmem:[%s2472_s1 + $0x48] sm:$0xff] (!%p138_p2) }
   0xb   : > { %v1756_v29 = vpack.c.bf16 (!%p138_p2), %v1103_v23, %v1102_v22  ;;  %v1104_v33 = vld [vmem:[%s2472_s1 + $0x240] sm:$0xff] (!%p138_p2)  ;;  %v1105_v34 = vld [vmem:[%s2472_s1 + $0x248] sm:$0xff] (!%p138_p2)  ;;  %v1663_v35 = vpack.c.bf16 (!%p138_p2), %v195_v31, %v194_v30  ;;  %v196_v37 = vld [vmem:[%s2472_s1 + $0x50] sm:$0xff] (!%p138_p2) }
   0xc   : > { %1655 = vmatpush3.bf16.msra.mxu1 (!%p138_p2), %v1654_v12  ;;  %v1759_v36 = vpack.c.bf16 (!%p138_p2), %v1105_v34, %v1104_v33  ;;  %v197_v38 = vld [vmem:[%s2472_s1 + $0x58] sm:$0xff] (!%p138_p2)  ;;  %v1106_v39 = vld [vmem:[%s2472_s1 + $0x250] sm:$0xff] (!%p138_p2)  ;;  %v198_v43 = vld [vmem:[%s2472_s1 + $0x60] sm:$0xff] (!%p138_p2) }
   0xd   : > { %s2476_s13 = smov (!%p160_p3, %s1040_s13), 3  ;;  %1751 = vmatpush3.bf16.msra.mxu0 %v1750_v13  ;;  %1656 = vmatprep.subr.bf16.mxu1 %v1902_v3  ;;  %v1107_v40 = vld [vmem:[%s2472_s1 + $0x258] sm:$0xff]  ;;  %v1666_v41 = vpack.c.bf16 %v197_v38, %v196_v37  ;;  %v199_v44 = vld [vmem:[%s2472_s1 + $0x68] sm:$0xff]  ;;  %v1108_v45 = vld [vmem:[%s2472_s1 + $0x260] sm:$0xff] }
   0xe   : > { %s1882_s11 = smul.u32 12, %s2476_s13  ;;  %1752 = vmatprep.subr.bf16.mxu0 %v1902_v3  ;;  %v1762_v42 = vpack.c.bf16 %v1107_v40, %v1106_v39  ;;  %v1109_v46 = vld [vmem:[%s2472_s1 + $0x268] sm:$0xff]  ;;  %v1669_v47 = vpack.c.bf16 %v199_v44, %v198_v43  ;;  %v200_v49 = vld [vmem:[%s2472_s1 + $0x70] sm:$0xff]  ;;  %v201_v50 = vld [vmem:[%s2472_s1 + $0x78] sm:$0xff]  ;;  %s1046_s6 = sshll.u32 %s2476_s13, 1 }
   0xf   : > { %v1765_v48 = vpack.c.bf16 %v1109_v46, %v1108_v45  ;;  %v1110_v51 = vld [vmem:[%s2472_s1 + $0x270] sm:$0xff]  ;;  %v1111_v52 = vld [vmem:[%s2472_s1 + $0x278] sm:$0xff]  ;;  %v1672_v53 = vpack.c.bf16 %v201_v50, %v200_v49  ;;  %v1048_v55 = vld [vmem:[%s2472_s1 + $0x80] sm:$0xff]  ;;  %s168_s9 = scalar_lea.vmem %s2474_s3, %s1046_s6 }
  0x10   : > { %s164_s16 = scalar_lea.vmem %s2471_s0, %s1882_s11  ;;  %1658 = vmatpush3.bf16.msra.mxu1 %v1657_v18  ;;  %v1768_v54 = vpack.c.bf16 %v1111_v52, %v1110_v51  ;;  %v1049_v56 = vld [vmem:[%s2472_s1 + $0x88] sm:$0xff]  ;;  %v1112_v57 = vld [vmem:[%s2472_s1 + $0x280] sm:$0xff]  ;;  %v1050_v63 = vld [vmem:[%s2472_s1 + $0x90] sm:$0xff] }
  0x11   : > { %v1179_v24 = vld [vmem:[%s164_s16] sm:$0xff]   ;;  %v171_v27 = vld [vmem:[%s164_s16 + $0x8] sm:$0xf]  ;;  %1754 = vmatpush3.bf16.msra.mxu0 %v1753_v19  ;;  %1659 = vmatprep.subr.bf16.mxu1 %v1902_v3  ;;  %v1675_v60 = vpack.c.bf16 %v1049_v56, %v1048_v55  ;;  %v1051_v0 = vld [vmem:[%s2472_s1 + $0x98] sm:$0xff] }
  0x12   : > { %v1180_v26 = vunpack.c.l.bf16 %v1179_v24  ;;  %v1181_v28 = vunpack.c.h.bf16 %v1179_v24  ;;  %v174_v32 = vunpack.c.l.bf16 %v171_v27  ;;  %1755 = vmatprep.subr.bf16.mxu0 %v1902_v3  ;;  %v1113_v58 = vld [vmem:[%s2472_s1 + $0x288] sm:$0xff]  ;;  %v1114_v1 = vld [vmem:[%s2472_s1 + $0x290] sm:$0xff]  ;;  %v1115_v2 = vld [vmem:[%s2472_s1 + $0x298] sm:$0xff]  ;;  %v1678_v4 = vpack.c.bf16 %v1051_v0, %v1050_v63 }
  0x13   : > { %v1771_v62 = vpack.c.bf16 %v1113_v58, %v1112_v57  ;;  %v1774_v5 = vpack.c.bf16 %v1115_v2, %v1114_v1  ;;  %v1052_v6 = vld [vmem:[%s2472_s1 + $0xa0] sm:$0xff]  ;;  %v1053_v7 = vld [vmem:[%s2472_s1 + $0xa8] sm:$0xff]  ;;  %v1054_v13 = vld [vmem:[%s2472_s1 + $0xb0] sm:$0xff] }
  0x14   : > { %175 = vst [vmem:[#allocation2] sm:$0xff] %v1180_v26  ;;  %176 = vst [vmem:[#allocation2 + $0x8] sm:$0xff] %v1181_v28  ;;  %1661 = vmatpush3.bf16.msra.mxu1 %v1660_v25  ;;  %v1116_v8 = vld [vmem:[%s2472_s1 + $0x2a0] sm:$0xff]  ;;  %v1117_v9 = vld [vmem:[%s2472_s1 + $0x2a8] sm:$0xff]  ;;  %v1681_v10 = vpack.c.bf16 %v1053_v7, %v1052_v6 }
  0x15   : > { %177 = vst [vmem:[#allocation2 + $0x10] sm:$0xff] %v174_v32  ;;  %1757 = vmatpush3.bf16.msra.mxu0 %v1756_v29  ;;  %1662 = vmatprep.subr.bf16.mxu1 %v1902_v3  ;;  %v1777_v12 = vpack.c.bf16 %v1117_v9, %v1116_v8  ;;  %v1055_v14 = vld [vmem:[%s2472_s1 + $0xb8] sm:$0xff]  ;;  %v1118_v15 = vld [vmem:[%s2472_s1 + $0x2b0] sm:$0xff]  ;;  %v1056_v19 = vld [vmem:[%s2472_s1 + $0xc0] sm:$0xff] }
  0x16   : > { %1758 = vmatprep.subr.bf16.mxu0 %v1902_v3  ;;  %v1119_v16 = vld [vmem:[%s2472_s1 + $0x2b8] sm:$0xff]  ;;  %v1684_v17 = vpack.c.bf16 %v1055_v14, %v1054_v13  ;;  %v1057_v20 = vld [vmem:[%s2472_s1 + $0xc8] sm:$0xff]  ;;  %v1120_v21 = vld [vmem:[%s2472_s1 + $0x2c0] sm:$0xff] }
  0x17   : > { %v1780_v18 = vpack.c.bf16 %v1119_v16, %v1118_v15  ;;  %v1121_v22 = vld [vmem:[%s2472_s1 + $0x2c8] sm:$0xff]  ;;  %v1687_v23 = vpack.c.bf16 %v1057_v20, %v1056_v19  ;;  %v1058_v25 = vld [vmem:[%s2472_s1 + $0xd0] sm:$0xff]  ;;  %v1059_v26 = vld [vmem:[%s2472_s1 + $0xd8] sm:$0xff] }
  0x18   : > { %1664 = vmatpush3.bf16.msra.mxu1 %v1663_v35  ;;  %v1783_v24 = vpack.c.bf16 %v1121_v22, %v1120_v21  ;;  %v1122_v27 = vld [vmem:[%s2472_s1 + $0x2d0] sm:$0xff]  ;;  %v1123_v28 = vld [vmem:[%s2472_s1 + $0x2d8] sm:$0xff]  ;;  %v1690_v29 = vpack.c.bf16 %v1059_v26, %v1058_v25  ;;  %v1060_v31 = vld [vmem:[%s2472_s1 + $0xe0] sm:$0xff] }
  0x19   : > { %1760 = vmatpush3.bf16.msra.mxu0 %v1759_v36  ;;  %1665 = vmatprep.subr.bf16.mxu1 %v1902_v3  ;;  %v1786_v30 = vpack.c.bf16 %v1123_v28, %v1122_v27  ;;  %v1061_v32 = vld [vmem:[%s2472_s1 + $0xe8] sm:$0xff]  ;;  %v1124_v33 = vld [vmem:[%s2472_s1 + $0x2e0] sm:$0xff]  ;;  %v1062_v37 = vld [vmem:[%s2472_s1 + $0xf0] sm:$0xff] }
  0x1a   : > { %1761 = vmatprep.subr.bf16.mxu0 %v1902_v3  ;;  %v1125_v34 = vld [vmem:[%s2472_s1 + $0x2e8] sm:$0xff]  ;;  %v1693_v35 = vpack.c.bf16 %v1061_v32, %v1060_v31  ;;  %v1063_v38 = vld [vmem:[%s2472_s1 + $0xf8] sm:$0xff]  ;;  %v1126_v39 = vld [vmem:[%s2472_s1 + $0x2f0] sm:$0xff] }
  0x1b   : > { %v185_v59 = vld [vmem:[#allocation2] sm:$0x3]  ;;  %v1789_v36 = vpack.c.bf16 %v1125_v34, %v1124_v33  ;;  %v1127_v40 = vld [vmem:[%s2472_s1 + $0x2f8] sm:$0xff]  ;;  %v1065_v44 = vld [vmem:[%s2472_s1 + $0x108] sm:$0xff] }
  0x1c   : > { %1667 = vmatpush3.bf16.msra.mxu1 %v1666_v41  ;;  %v540_v61 = vld [vmem:[#allocation2 + $0x12] sm:$0x3]  ;;  %v1696_v41 = vpack.c.bf16 %v1063_v38, %v1062_v37  ;;  %v1064_v43 = vld [vmem:[%s2472_s1 + $0x100] sm:$0xff]  ;;  %v1129_v46 = vld [vmem:[%s2472_s1 + $0x308] sm:$0xff] }
  0x1d   : > { %1763 = vmatpush3.bf16.msra.mxu0 %v1762_v42  ;;  %1668 = vmatprep.subr.bf16.mxu1 %v1902_v3  ;;  %v1792_v42 = vpack.c.bf16 %v1127_v40, %v1126_v39  ;;  %v1128_v45 = vld [vmem:[%s2472_s1 + $0x300] sm:$0xff]  ;;  %v629_v49 = vld [vmem:[#allocation2 + $0xd] sm:$0x3]  ;;  %v1066_v51 = vld [vmem:[%s2472_s1 + $0x110] sm:$0xff] }
  0x1e   : > { %1764 = vmatprep.subr.bf16.mxu0 %v1902_v3  ;;  %v1795_v50 = vpack.c.bf16 %v1129_v46, %v1128_v45  ;;  %v1067_v52 = vld [vmem:[%s2472_s1 + $0x118] sm:$0xff]  ;;  %v1068_v57 = vld [vmem:[%s2472_s1 + $0x120] sm:$0xff]  ;;  %v1069_v58 = vld [vmem:[%s2472_s1 + $0x128] sm:$0xff] }
  0x1f   : > { %v1702_v55 = vpack.c.bf16 %v1067_v52, %v1066_v51  ;;  %v1070_v63 = vld [vmem:[%s2472_s1 + $0x130] sm:$0xff]  ;;  %v1071_v0 = vld [vmem:[%s2472_s1 + $0x138] sm:$0xff]  ;;  %v1072_v6 = vld [vmem:[%s2472_s1 + $0x140] sm:$0xff] }
  0x20   : > { %1670 = vmatpush3.bf16.msra.mxu1 %v1669_v47  ;;  %v273_v47 = vld [vmem:[#allocation2 + $0x6] sm:$0x3]  ;;  %v1134_v1 = vld [vmem:[%s2472_s1 + $0x330] sm:$0xff]  ;;  %v1135_v2 = vld [vmem:[%s2472_s1 + $0x338] sm:$0xff] }
  0x21   : > { %1766 = vmatpush3.bf16.msra.mxu0 %v1765_v48  ;;  %1671 = vmatprep.subr.bf16.mxu1 %v1902_v3  ;;  %v1699_v48 = vpack.c.bf16 %v1065_v44, %v1064_v43  ;;  %v1073_v7 = vld [vmem:[%s2472_s1 + $0x148] sm:$0xff]  ;;  %v1136_v8 = vld [vmem:[%s2472_s1 + $0x340] sm:$0xff]  ;;  %v1074_v13 = vld [vmem:[%s2472_s1 + $0x150] sm:$0xff] }
  0x22   : > { %1767 = vmatprep.subr.bf16.mxu0 %v1902_v3  ;;  %v1137_v9 = vld [vmem:[%s2472_s1 + $0x348] sm:$0xff]  ;;  %v1075_v14 = vld [vmem:[%s2472_s1 + $0x158] sm:$0xff]  ;;  %v1138_v15 = vld [vmem:[%s2472_s1 + $0x350] sm:$0xff] }
  0x23   : > { %v1139_v16 = vld [vmem:[%s2472_s1 + $0x358] sm:$0xff]  ;;  %v1076_v19 = vld [vmem:[%s2472_s1 + $0x160] sm:$0xff]  ;;  %v1077_v20 = vld [vmem:[%s2472_s1 + $0x168] sm:$0xff] }
  0x24   : > { %1673 = vmatpush3.bf16.msra.mxu1 %v1672_v53  ;;  %v1130_v53 = vld [vmem:[%s2472_s1 + $0x310] sm:$0xff]  ;;  %v1140_v21 = vld [vmem:[%s2472_s1 + $0x360] sm:$0xff]  ;;  %v1141_v22 = vld [vmem:[%s2472_s1 + $0x368] sm:$0xff] }
  0x25   : > { %1769 = vmatpush3.bf16.msra.mxu0 %v1768_v54  ;;  %1674 = vmatprep.subr.bf16.mxu1 %v1902_v3  ;;  %v1131_v54 = vld [vmem:[%s2472_s1 + $0x318] sm:$0xff]  ;;  %v1078_v25 = vld [vmem:[%s2472_s1 + $0x170] sm:$0xff]  ;;  %v1080_v31 = vld [vmem:[%s2472_s1 + $0x180] sm:$0xff] }
  0x26   : > { %1770 = vmatprep.subr.bf16.mxu0 %v1902_v3  ;;  %v1798_v56 = vpack.c.bf16 %v1131_v54, %v1130_v53  ;;  %v1079_v26 = vld [vmem:[%s2472_s1 + $0x178] sm:$0xff]  ;;  %v1142_v27 = vld [vmem:[%s2472_s1 + $0x370] sm:$0xff]  ;;  %v1081_v32 = vld [vmem:[%s2472_s1 + $0x188] sm:$0xff] }
  0x27   : > { %1368 = vmatmul.mubr.f32.vlgmr.msra.gmra.mrb[0].mxu1 %v185_v59  ;;  %v1132_v59 = vld [vmem:[%s2472_s1 + $0x320] sm:$0xff]  ;;  %v1143_v28 = vld [vmem:[%s2472_s1 + $0x378] sm:$0xff]  ;;  %v1145_v34 = vld [vmem:[%s2472_s1 + $0x388] sm:$0xff] }
  0x28   : > { %1676 = vmatpush3.bf16.msra.mxu1 %v1675_v60  ;;  %1508 = vmatmul.mubr.f32.vlgmr.msra.gmra.mrb[0].mxu0 %v540_v61  ;;  %v1133_v60 = vld [vmem:[%s2472_s1 + $0x328] sm:$0xff]  ;;  %v1705_v61 = vpack.c.bf16 %v1069_v58, %v1068_v57  ;;  %v1144_v33 = vld [vmem:[%s2472_s1 + $0x380] sm:$0xff]  ;;  %v1082_v39 = vld [vmem:[%s2472_s1 + $0x190] sm:$0xff] }
  0x29   : > { %1772 = vmatpush3.bf16.msra.mxu0 %v1771_v62  ;;  %1677 = vmatprep.subr.bf16.mxu1 %v1902_v3  ;;  %v1801_v62 = vpack.c.bf16 %v1133_v60, %v1132_v59  ;;  %v718_v37 = vld [vmem:[#allocation2 + $0x2] sm:$0x3]  ;;  %v1819_v38 = vpack.c.bf16 %v1145_v34, %v1144_v33  ;;  %v1083_v40 = vld [vmem:[%s2472_s1 + $0x198] sm:$0xff]  ;;  %v1085_v46 = vld [vmem:[%s2472_s1 + $0x1a8] sm:$0xff] }
  0x2a   : > { %1773 = vmatprep.subr.bf16.mxu0 %v1902_v3  ;;  %1402 = vmatprep.mubr.msk.f32.mxu1 %vm1903_vm0, %v1904_v11  ;;  %v1726_v43 = vpack.c.bf16 %v1083_v40, %v1082_v39  ;;  %v1084_v45 = vld [vmem:[%s2472_s1 + $0x1a0] sm:$0xff]  ;;  %v1086_v51 = vld [vmem:[%s2472_s1 + $0x1b0] sm:$0xff]  ;;  %v1087_v52 = vld [vmem:[%s2472_s1 + $0x1b8] sm:$0xff] }
  0x2b   : > { %1542 = vmatprep.mubr.msk.f32.mxu0 %vm1903_vm0, %v1904_v11  ;;  %v1150_v53 = vld [vmem:[%s2472_s1 + $0x3b0] sm:$0xff]  ;;  %v1151_v54 = vld [vmem:[%s2472_s1 + $0x3b8] sm:$0xff]  ;;  %v1088_v57 = vld [vmem:[%s2472_s1 + $0x1c0] sm:$0xff] }
  0x2c   : > { %1679 = vmatpush3.bf16.msra.mxu1 %v1678_v4  ;;  %v1708_v4 = vpack.c.bf16 %v1071_v0, %v1070_v63  ;;  %v1089_v58 = vld [vmem:[%s2472_s1 + $0x1c8] sm:$0xff]  ;;  %v1152_v59 = vld [vmem:[%s2472_s1 + $0x3c0] sm:$0xff]  ;;  %v1090_v63 = vld [vmem:[%s2472_s1 + $0x1d0] sm:$0xff] }
  0x2d   : > { %1775 = vmatpush3.bf16.msra.mxu0 %v1774_v5  ;;  %1680 = vmatprep.subr.bf16.mxu1 %v1902_v3  ;;  %v1804_v5 = vpack.c.bf16 %v1135_v2, %v1134_v1  ;;  %v1153_v60 = vld [vmem:[%s2472_s1 + $0x3c8] sm:$0xff]  ;;  %v1091_v0 = vld [vmem:[%s2472_s1 + $0x1d8] sm:$0xff]  ;;  %v1154_v1 = vld [vmem:[%s2472_s1 + $0x3d0] sm:$0xff] }
  0x2e   : > { %1776 = vmatprep.subr.bf16.mxu0 %v1902_v3  ;;  %v1155_v2 = vld [vmem:[%s2472_s1 + $0x3d8] sm:$0xff]  ;;  %v1169_v33 = vld [vmem:[%s2472_s1 + $0x448] sm:$0xff] }
  0x2f   : > { %v1173_v39 = vld [vmem:[%s2472_s1 + $0x468] sm:$0xff] }
  0x30   : > { %1682 = vmatpush3.bf16.msra.mxu1 %v1681_v10  ;;  %v1711_v10 = vpack.c.bf16 %v1073_v7, %v1072_v6  ;;  %v1092_v6 = vld [vmem:[%s2472_s1 + $0x1e0] sm:$0xff]  ;;  %v1093_v7 = vld [vmem:[%s2472_s1 + $0x1e8] sm:$0xff] }
  0x31   : > { %1778 = vmatpush3.bf16.msra.mxu0 %v1777_v12  ;;  %1683 = vmatprep.subr.bf16.mxu1 %v1902_v3  ;;  %v1807_v12 = vpack.c.bf16 %v1137_v9, %v1136_v8  ;;  %v1156_v8 = vld [vmem:[%s2472_s1 + $0x3e0] sm:$0xff]  ;;  %v1157_v9 = vld [vmem:[%s2472_s1 + $0x3e8] sm:$0xff] }
  0x32   : > { %1779 = vmatprep.subr.bf16.mxu0 %v1902_v3 }
  0x34   : > { %1685 = vmatpush3.bf16.msra.mxu1 %v1684_v17  ;;  %v1714_v17 = vpack.c.bf16 %v1075_v14, %v1074_v13  ;;  %v1094_v13 = vld [vmem:[%s2472_s1 + $0x1f0] sm:$0xff]  ;;  %v1095_v14 = vld [vmem:[%s2472_s1 + $0x1f8] sm:$0xff] }
  0x35   : > { %1781 = vmatpush3.bf16.msra.mxu0 %v1780_v18  ;;  %1686 = vmatprep.subr.bf16.mxu1 %v1902_v3  ;;  %v1810_v18 = vpack.c.bf16 %v1139_v16, %v1138_v15  ;;  %v1158_v15 = vld [vmem:[%s2472_s1 + $0x3f0] sm:$0xff]  ;;  %v1159_v16 = vld [vmem:[%s2472_s1 + $0x3f8] sm:$0xff] }
  0x36   : > { %1782 = vmatprep.subr.bf16.mxu0 %v1902_v3 }
  0x38   : > { %1688 = vmatpush3.bf16.msra.mxu1 %v1687_v23  ;;  %v1717_v23 = vpack.c.bf16 %v1077_v20, %v1076_v19  ;;  %v1160_v19 = vld [vmem:[%s2472_s1 + $0x400] sm:$0xff]  ;;  %v1161_v20 = vld [vmem:[%s2472_s1 + $0x408] sm:$0xff] }
  0x39   : > { %1784 = vmatpush3.bf16.msra.mxu0 %v1783_v24  ;;  %1689 = vmatprep.subr.bf16.mxu1 %v1902_v3  ;;  %v1813_v24 = vpack.c.bf16 %v1141_v22, %v1140_v21  ;;  %v451_v21 = vld [vmem:[#allocation2 + $0xc] sm:$0x3]  ;;  %v807_v22 = vld [vmem:[#allocation2 + $0x8] sm:$0x3] }
  0x3a   : > { %1785 = vmatprep.subr.bf16.mxu0 %v1902_v3 }
  0x3c   : > { %1691 = vmatpush3.bf16.msra.mxu1 %v1690_v29  ;;  %v1720_v29 = vpack.c.bf16 %v1079_v26, %v1078_v25  ;;  %v1163_v25 = vld [vmem:[%s2472_s1 + $0x418] sm:$0xff] }
  0x3d   : > { %1787 = vmatpush3.bf16.msra.mxu0 %v1786_v30  ;;  %1692 = vmatprep.subr.bf16.mxu1 %v1902_v3  ;;  %v1816_v30 = vpack.c.bf16 %v1143_v28, %v1142_v27  ;;  %v1164_v27 = vld [vmem:[%s2472_s1 + $0x420] sm:$0xff]  ;;  %v1165_v28 = vld [vmem:[%s2472_s1 + $0x428] sm:$0xff] }
  0x3e   : > { %1788 = vmatprep.subr.bf16.mxu0 %v1902_v3 }
  0x40   : > { %1694 = vmatpush3.bf16.msra.mxu1 %v1693_v35  ;;  %v362_v35 = vld [vmem:[#allocation2 + $0x1] sm:$0x3] }
  0x41   : > { %1790 = vmatpush3.bf16.msra.mxu0 %v1789_v36  ;;  %1695 = vmatprep.subr.bf16.mxu1 %v1902_v3  ;;  %v1723_v36 = vpack.c.bf16 %v1081_v32, %v1080_v31  ;;  %v1168_v32 = vld [vmem:[%s2472_s1 + $0x440] sm:$0xff] }
  0x42   : > { %1791 = vmatprep.subr.bf16.mxu0 %v1902_v3  ;;  %v1855_v34 = vpack.c.bf16 %v1169_v33, %v1168_v32 }
  0x44   : > { %1697 = vmatpush3.bf16.msra.mxu1 %v1696_v41  ;;  %v1146_v41 = vld [vmem:[%s2472_s1 + $0x390] sm:$0xff] }
  0x45   : > { %1793 = vmatpush3.bf16.msra.mxu0 %v1792_v42  ;;  %1698 = vmatprep.subr.bf16.mxu1 %v1902_v3  ;;  %v1147_v42 = vld [vmem:[%s2472_s1 + $0x398] sm:$0xff] }
  0x46   : > { %1794 = vmatprep.subr.bf16.mxu0 %v1902_v3  ;;  %v1822_v44 = vpack.c.bf16 %v1147_v42, %v1146_v41  ;;  %v1174_v41 = vld [vmem:[%s2472_s1 + $0x470] sm:$0xff]  ;;  %v1175_v42 = vld [vmem:[%s2472_s1 + $0x478] sm:$0xff] }
  0x47   : > { %1403 = vmatmul.mubr.f32.vlgmr.msra.gmra.mrb[0].mxu1 %v273_v47  ;;  %v1148_v47 = vld [vmem:[%s2472_s1 + $0x3a0] sm:$0xff] }
  0x48   : > { %1700 = vmatpush3.bf16.msra.mxu1 %v1699_v48  ;;  %1543 = vmatmul.mubr.f32.vlgmr.msra.gmra.mrb[0].mxu0 %v629_v49  ;;  %v1149_v48 = vld [vmem:[%s2472_s1 + $0x3a8] sm:$0xff]  ;;  %v1729_v49 = vpack.c.bf16 %v1085_v46, %v1084_v45 }
  0x49   : > { %1796 = vmatpush3.bf16.msra.mxu0 %v1795_v50  ;;  %1701 = vmatprep.subr.bf16.mxu1 %v1902_v3  ;;  %v1825_v50 = vpack.c.bf16 %v1149_v48, %v1148_v47  ;;  %v1047_v47 = vld [vmem:[%s2473_s2] ss:$0 sm:$0xff] }
  0x4a   : > { %1797 = vmatprep.subr.bf16.mxu0 %v1902_v3  ;;  %1437 = vmatprep.mubr.msk.f32.mxu1 %vm1903_vm0, %v1904_v11 }
  0x4b   : > { %1577 = vmatprep.mubr.msk.f32.mxu0 %vm1903_vm0, %v1904_v11 }
  0x4c   : > { %1703 = vmatpush3.bf16.msra.mxu1 %v1702_v55  ;;  %v1732_v55 = vpack.c.bf16 %v1087_v52, %v1086_v51 }
  0x4d   : > { %1799 = vmatpush3.bf16.msra.mxu0 %v1798_v56  ;;  %1704 = vmatprep.subr.bf16.mxu1 %v1902_v3  ;;  %v1828_v56 = vpack.c.bf16 %v1151_v54, %v1150_v53 }
  0x4e   : > { %1800 = vmatprep.subr.bf16.mxu0 %v1902_v3 }
  0x50   : > { %1706 = vmatpush3.bf16.msra.mxu1 %v1705_v61  ;;  %v1735_v61 = vpack.c.bf16 %v1089_v58, %v1088_v57 }
  0x51   : > { %1802 = vmatpush3.bf16.msra.mxu0 %v1801_v62  ;;  %1707 = vmatprep.subr.bf16.mxu1 %v1902_v3  ;;  %v1831_v62 = vpack.c.bf16 %v1153_v60, %v1152_v59 }
  0x52   : > { %1803 = vmatprep.subr.bf16.mxu0 %v1902_v3 }
  0x54   : > { %1709 = vmatpush3.bf16.msra.mxu1 %v1708_v4  ;;  %v1738_v4 = vpack.c.bf16 %v1091_v0, %v1090_v63 }
  0x55   : > { %1805 = vmatpush3.bf16.msra.mxu0 %v1804_v5  ;;  %1710 = vmatprep.subr.bf16.mxu1 %v1902_v3  ;;  %v1834_v5 = vpack.c.bf16 %v1155_v2, %v1154_v1 }
  0x56   : > { %1806 = vmatprep.subr.bf16.mxu0 %v1902_v3 }
  0x58   : > { %1712 = vmatpush3.bf16.msra.mxu1 %v1711_v10  ;;  %v1741_v10 = vpack.c.bf16 %v1093_v7, %v1092_v6 }
  0x59   : > { %1808 = vmatpush3.bf16.msra.mxu0 %v1807_v12  ;;  %1713 = vmatprep.subr.bf16.mxu1 %v1902_v3  ;;  %v1837_v12 = vpack.c.bf16 %v1157_v9, %v1156_v8 }
  0x5a   : > { %1809 = vmatprep.subr.bf16.mxu0 %v1902_v3 }
  0x5c   : > { %1715 = vmatpush3.bf16.msra.mxu1 %v1714_v17  ;;  %v1744_v17 = vpack.c.bf16 %v1095_v14, %v1094_v13 }
  0x5d   : > { %1811 = vmatpush3.bf16.msra.mxu0 %v1810_v18  ;;  %1716 = vmatprep.subr.bf16.mxu1 %v1902_v3  ;;  %v1840_v18 = vpack.c.bf16 %v1159_v16, %v1158_v15 }
  0x5e   : > { %1812 = vmatprep.subr.bf16.mxu0 %v1902_v3 }
  0x60   : > { %1718 = vmatpush3.bf16.msra.mxu1 %v1717_v23  ;;  %v1843_v23 = vpack.c.bf16 %v1161_v20, %v1160_v19 }
  0x61   : > { %1814 = vmatpush3.bf16.msra.mxu0 %v1813_v24  ;;  %1719 = vmatprep.subr.bf16.mxu1 %v1902_v3  ;;  %v1162_v24 = vld [vmem:[%s2472_s1 + $0x410] sm:$0xff] }
  0x62   : > { %1815 = vmatprep.subr.bf16.mxu0 %v1902_v3  ;;  %v1846_v26 = vpack.c.bf16 %v1163_v25, %v1162_v24 }
  0x64   : > { %1721 = vmatpush3.bf16.msra.mxu1 %v1720_v29  ;;  %v1849_v29 = vpack.c.bf16 %v1165_v28, %v1164_v27 }
  0x65   : > { %1817 = vmatpush3.bf16.msra.mxu0 %v1816_v30  ;;  %1722 = vmatprep.subr.bf16.mxu1 %v1902_v3  ;;  %v1166_v30 = vld [vmem:[%s2472_s1 + $0x430] sm:$0xff] }
  0x66   : > { %1818 = vmatprep.subr.bf16.mxu0 %v1902_v3 }
  0x67   : > { %1438 = vmatmul.mubr.f32.vlgmr.msra.gmra.mrb[0].mxu1 %v362_v35  ;;  %v1170_v35 = vld [vmem:[%s2472_s1 + $0x450] sm:$0xff] }
  0x68   : > { %1724 = vmatpush3.bf16.msra.mxu1 %v1723_v36  ;;  %1578 = vmatmul.mubr.f32.vlgmr.msra.gmra.mrb[0].mxu0 %v718_v37  ;;  %v1171_v36 = vld [vmem:[%s2472_s1 + $0x458] sm:$0xff] }
  0x69   : > { %1820 = vmatpush3.bf16.msra.mxu0 %v1819_v38  ;;  %1725 = vmatprep.subr.bf16.mxu1 %v1902_v3  ;;  %v1858_v37 = vpack.c.bf16 %v1171_v36, %v1170_v35  ;;  %v1172_v38 = vld [vmem:[%s2472_s1 + $0x460] sm:$0xff] }
  0x6a   : > { %1821 = vmatprep.subr.bf16.mxu0 %v1902_v3  ;;  %1472 = vmatprep.mubr.msk.f32.mxu1 %vm1903_vm0, %v1904_v11  ;;  %v1861_v40 = vpack.c.bf16 %v1173_v39, %v1172_v38 }
  0x6b   : > { %1612 = vmatprep.mubr.msk.f32.mxu0 %vm1903_vm0, %v1904_v11 }
  0x6c   : > { %1727 = vmatpush3.bf16.msra.mxu1 %v1726_v43  ;;  %v1864_v43 = vpack.c.bf16 %v1175_v42, %v1174_v41 }
  0x6d   : > { %1823 = vmatpush3.bf16.msra.mxu0 %v1822_v44  ;;  %1728 = vmatprep.subr.bf16.mxu1 %v1902_v3  ;;  %v896_v44 = vld [vmem:[#allocation2 + $0x3] sm:$0x3] }
  0x6e   : > { %1824 = vmatprep.subr.bf16.mxu0 %v1902_v3 }
  0x70   : > { %1730 = vmatpush3.bf16.msra.mxu1 %v1729_v49 }
  0x71   : > { %1826 = vmatpush3.bf16.msra.mxu0 %v1825_v50  ;;  %1731 = vmatprep.subr.bf16.mxu1 %v1902_v3 }
  0x72   : > { %1827 = vmatprep.subr.bf16.mxu0 %v1902_v3 }
  0x74   : > { %1733 = vmatpush3.bf16.msra.mxu1 %v1732_v55 }
  0x75   : > { %1829 = vmatpush3.bf16.msra.mxu0 %v1828_v56  ;;  %1734 = vmatprep.subr.bf16.mxu1 %v1902_v3 }
  0x76   : > { %1830 = vmatprep.subr.bf16.mxu0 %v1902_v3 }
  0x78   : > { %1736 = vmatpush3.bf16.msra.mxu1 %v1735_v61 }
  0x79   : > { %1832 = vmatpush3.bf16.msra.mxu0 %v1831_v62  ;;  %1737 = vmatprep.subr.bf16.mxu1 %v1902_v3 }
  0x7a   : > { %1833 = vmatprep.subr.bf16.mxu0 %v1902_v3 }
  0x7c   : > { %1739 = vmatpush3.bf16.msra.mxu1 %v1738_v4 }
  0x7d   : > { %1835 = vmatpush3.bf16.msra.mxu0 %v1834_v5  ;;  %1740 = vmatprep.subr.bf16.mxu1 %v1902_v3 }
  0x7e   : > { %1836 = vmatprep.subr.bf16.mxu0 %v1902_v3 }
  0x80   : > { %1742 = vmatpush3.bf16.msra.mxu1 %v1741_v10 }
  0x81   : > { %1838 = vmatpush3.bf16.msra.mxu0 %v1837_v12  ;;  %1743 = vmatprep.subr.bf16.mxu1 %v1902_v3 }
  0x82   : > { %1839 = vmatprep.subr.bf16.mxu0 %v1902_v3 }
  0x84   : > { %1745 = vmatpush3.bf16.msra.mxu1 %v1744_v17 }
  0x85   : > { %1841 = vmatpush3.bf16.msra.mxu0 %v1840_v18 }
  0x86   : > { %1842 = vmatprep.subr.bf16.mxu0 %v1902_v3 }
  0x87   : > { %1473 = vmatmul.mubr.f32.vlgmr.msra.gmra.mrb[0].mxu1 %v451_v21 }
  0x88   : > { %1613 = vmatmul.mubr.f32.vlgmr.msra.gmra.mrb[0].mxu0 %v807_v22 }
  0x89   : > { %1844 = vmatpush3.bf16.msra.mxu0 %v1843_v23  ;;  %1647 = vmatprep.mubr.msk.f32.mxu0 %vm1903_vm0, %v1904_v11  ;;  %v1167_v11 = vld [vmem:[%s2472_s1 + $0x438] sm:$0xff] }
  0x8a   : > { %1845 = vmatprep.subr.bf16.mxu0 %v1902_v3  ;;  %v1852_v31 = vpack.c.bf16 %v1167_v11, %v1166_v30 }
  0x8d   : > { %1847 = vmatpush3.bf16.msra.mxu0 %v1846_v26 }
  0x8e   : > { %1848 = vmatprep.subr.bf16.mxu0 %v1902_v3 }
  0x91   : > { %1850 = vmatpush3.bf16.msra.mxu0 %v1849_v29 }
  0x92   : > { %1851 = vmatprep.subr.bf16.mxu0 %v1902_v3 }
  0x95   : > { %1853 = vmatpush3.bf16.msra.mxu0 %v1852_v31 }
  0x96   : > { %1854 = vmatprep.subr.bf16.mxu0 %v1902_v3 }
  0x99   : > { %1856 = vmatpush3.bf16.msra.mxu0 %v1855_v34 }
  0x9a   : > { %1857 = vmatprep.subr.bf16.mxu0 %v1902_v3 }
  0x9d   : > { %1859 = vmatpush3.bf16.msra.mxu0 %v1858_v37 }
  0x9e   : > { %1860 = vmatprep.subr.bf16.mxu0 %v1902_v3 }
  0xa1   : > { %1862 = vmatpush3.bf16.msra.mxu0 %v1861_v40 }
  0xa2   : > { %1863 = vmatprep.subr.bf16.mxu0 %v1902_v3 }
  0xa5   : > { %1865 = vmatpush3.bf16.msra.mxu0 %v1864_v43 }
  0xa8   : > { %1648 = vmatmul.mubr.f32.vlgmr.msra.gmra.mrb[0].mxu0 %v896_v44 }
 0x15a   : > { %v535_v45 = vpop.f32.mrb[0].mxu1 }
 0x15b   : > { %v1474_v46 = vpop.f32.mrb[1].mxu1  ;;  %v1866_v48 = vadd.f32 %v1047_v47, %v535_v45 }
 0x17b   : > { %v980_v49 = vpop.f32.mrb[0].mxu0 }
 0x17c   : > { %v1867_v50 = vadd.f32 %v1866_v48, %v980_v49  ;;  %v1649_v51 = vpop.f32.mrb[1].mxu0 }
 0x17e   : > { %986 = vst.msk [vmem:[%s168_s9] sm:$0x3] %vm985_vm1, %v1867_v50 }
 0x17f PF: > { %s13_s12 = sadd.s32 1, %s1900_s12  }
 0x180   : > { %p10_p4 = scmp.ge.s32.totalorder %s13_s12, 6  }
 0x182   :  { %12 = sbr.rel (!%p10_p4) target bundleno = 1 (0x1), region = 70 }

</bundles_post_ra>
